<compile_context>
chip_gen: v5e
topology: v5e:2x2
jax: 0.10.0
libtpu: 0.0.40
codegen_flags: <defaults>
</compile_context>

<pallas_src>
import jax
import jax.numpy as jnp
import numpy as np
from jax.experimental import pallas as pl
from jax.experimental.pallas import tpu as pltpu

CONV_K = 5
CONV_OUT_C = 6
CONV_OUT_H, CONV_OUT_W = 22, 64        # for a 26x68 input, VALID 5x5 conv
POOL_H, POOL_W = 11, 32                # after 2x2/2 max pool
POOL_HW = POOL_H * POOL_W              # 352
FLAT = 704                             # x.view(-1, 704) == 2 channels * 352
FC1, FC2, FC3 = 120, 84, 19
PAD = 128                              # lane-padded hidden width


# ----------------------------- single fused kernel ----------------------------
def convnet_kernel(p_ref, wc_ref, bc_ref, w1e_ref, w1o_ref, b1_ref,
                   w2_ref, b2_ref, w3_ref, b3_ref, o_ref):
    """conv1 + ReLU + MaxPool + view(-1,704) + fc1/relu + fc2/relu + fc3.

    p_ref : (4, 25, R)   im2col patches; axis0 = 2x2 pool offset, axis1 = 5x5 tap,
                         axis2 = pooled position r = b*352 + i*32 + j (lane-dense).
    wc_ref: (6, 25)      conv1 weight, channel rows pre-permuted to [0,2,4,1,3,5].
    bc_ref: (6, 1)       conv1 bias (same permutation).
    w1e/w1o: (352, 128)  fc1 weight halves (even / odd channel blocks of the
                         704-wide flattened input), out dim zero-padded 120->128.
    w2_ref: (128, 128)   fc2, zero-padded (120->128 in, 84->128 out).
    w3_ref: (128, 19)    fc3, zero-padded (84->128 in).
    o_ref : (3B, 19)
    """
    wc = wc_ref[...]                                           # (6, 25)

    # conv1 for each of the 4 pool offsets, max-reduced on the fly (maxpool):
    #   relu(max_s(conv_s) + b) == maxpool(relu(conv + b)).
    m = jnp.dot(wc, p_ref[0], preferred_element_type=jnp.float32)        # (6, R)
    for s in range(1, 4):
        m = jnp.maximum(m, jnp.dot(wc, p_ref[s],
                                   preferred_element_type=jnp.float32))
    q = jnp.maximum(m + bc_ref[...], 0.0)          # (6, R): channel-major, NCHW order

    # x.view(-1, 704): sample b -> rows 3b+g, row g uses channels {2g, 2g+1}.
    # Channels were pre-permuted to [0,2,4,1,3,5], so rows 0:3 of q are the even
    # channels and rows 3:6 the odd ones; the flatten is folded into fc1.
    n_batch = q.shape[1] // POOL_HW                # static
    qe = jnp.concatenate([q[0:3, b * POOL_HW:(b + 1) * POOL_HW]
                          for b in range(n_batch)], axis=0)    # (3B, 352)
    qo = jnp.concatenate([q[3:6, b * POOL_HW:(b + 1) * POOL_HW]
                          for b in range(n_batch)], axis=0)    # (3B, 352)

    h = (jnp.dot(qe, w1e_ref[...], preferred_element_type=jnp.float32)
         + jnp.dot(qo, w1o_ref[...], preferred_element_type=jnp.float32))
    h = jnp.maximum(h + b1_ref[...], 0.0)                      # (3B, 128)
    h = jnp.dot(h, w2_ref[...], preferred_element_type=jnp.float32)
    h = jnp.maximum(h + b2_ref[...], 0.0)                      # (3B, 128)
    o_ref[...] = jnp.dot(h, w3_ref[...],
                         preferred_element_type=jnp.float32) + b3_ref[...]


# ----------------------------- host-side one-time param prep ------------------
def prepare_params(params):
    cw, cb, w1, b1, w2, b2, w3, b3 = params
    perm = np.array([0, 2, 4, 1, 3, 5])            # even channels first
    wc = cw.reshape(CONV_OUT_C, CONV_K * CONV_K)[perm]         # (6, 25)
    bc = cb[perm].reshape(CONV_OUT_C, 1)                       # (6, 1)
    w1e = jnp.zeros((POOL_HW, PAD), jnp.float32).at[:, :FC1].set(w1[:POOL_HW])
    w1o = jnp.zeros((POOL_HW, PAD), jnp.float32).at[:, :FC1].set(w1[POOL_HW:])
    b1p = jnp.zeros((1, PAD), jnp.float32).at[:, :FC1].set(b1)
    w2p = jnp.zeros((PAD, PAD), jnp.float32).at[:FC1, :FC2].set(w2)
    b2p = jnp.zeros((1, PAD), jnp.float32).at[:, :FC2].set(b2)
    w3p = jnp.zeros((PAD, FC3), jnp.float32).at[:FC2, :].set(w3)
    b3p = b3.reshape(1, FC3)
    return wc, bc, w1e, w1o, b1p, w2p, b2p, w3p, b3p


# ----------------------------- forward (minimal XLA glue + one pallas_call) ---
def convnet_forward(x, kparams):
    wc, bc, w1e, w1o, b1p, w2p, b2p, w3p, b3p = kparams
    B = x.shape[0]
    R = B * POOL_HW

    # im2col with the 2x2 pool offsets split out:
    #   patches[s, t, b*352 + i*32 + j] = x[b, 0, 2i + di + ky, 2j + dj + kx]
    # with s = 2*di + dj, t = 5*ky + kx.  Kept in XLA: it is the only step that
    # needs lane-merge reshapes; everything else runs inside the fused kernel.
    x2 = x[:, 0]                                               # (B, 26, 68)
    cols = [x2[:, ky:ky + CONV_OUT_H, kx:kx + CONV_OUT_W]
            for ky in range(CONV_K) for kx in range(CONV_K)]
    pt = jnp.stack(cols, axis=0)                               # (25, B, 22, 64)
    pt = pt.reshape(CONV_K * CONV_K, B, POOL_H, 2, POOL_W, 2)  # [t, b, i, di, j, dj]
    pt = jnp.transpose(pt, (3, 5, 0, 1, 2, 4))                 # [di, dj, t, b, i, j]
    patches = pt.reshape(4, CONV_K * CONV_K, R)                # (4, 25, R)

    vmem = pl.BlockSpec(memory_space=pltpu.MemorySpace.VMEM)
    return pl.pallas_call(
        convnet_kernel,
        out_shape=jax.ShapeDtypeStruct((3 * B, FC3), jnp.float32),
        in_specs=[vmem] * 10,
        out_specs=vmem,
    )(patches, wc, bc, w1e, w1o, b1p, w2p, b2p, w3p, b3p)


# ----------------------------- Deterministic parameter init -------------------
def init_params(key):
    def uniform(k, shape, fan_in):
        bound = 1.0 / np.sqrt(fan_in)
        return jax.random.uniform(k, shape, jnp.float32, -bound, bound)

    ks = jax.random.split(key, 8)
    cw = uniform(ks[0], (6, 1, 5, 5), 25)      # conv1 weight (OIHW)
    cb = uniform(ks[1], (6,), 25)              # conv1 bias
    w1 = uniform(ks[2], (704, 120), 704)       # fc1 (stored as in x out)
    b1 = uniform(ks[3], (120,), 704)
    w2 = uniform(ks[4], (120, 84), 120)
    b2 = uniform(ks[5], (84,), 120)
    w3 = uniform(ks[6], (84, 19), 84)
    b3 = uniform(ks[7], (19,), 84)
    return cw, cb, w1, b1, w2, b2, w3, b3


# ----------------------------- Pure-JAX reference -----------------------------
def reference_forward(x, params):
    cw, cb, w1, b1, w2, b2, w3, b3 = params
    y = jax.lax.conv_general_dilated(x, cw, (1, 1), "VALID",
                                     dimension_numbers=("NCHW", "OIHW", "NCHW"))
    y = jnp.maximum(y + cb.reshape(1, -1, 1, 1), 0.0)
    y = jax.lax.reduce_window(y, -jnp.inf, jax.lax.max, (1, 1, 2, 2), (1, 1, 2, 2), "VALID")
    y = y.reshape(-1, FLAT)
    y = jnp.maximum(y @ w1 + b1, 0.0)
    y = jnp.maximum(y @ w2 + b2, 0.0)
    return y @ w3 + b3


if __name__ == "__main__":
    key = jax.random.PRNGKey(0)
    kx_, kp = jax.random.split(key)

    # (B=2, C=1, H=26, W=68): pooled conv has 2*6*11*32 = 4224 = 6*704 elements,
    # so x.view(-1, 704) gives a (6, 704) matrix and a (6, 19) output.
    x = jax.random.normal(kx_, (2, 1, 26, 68), jnp.float32)
    params = init_params(kp)
    kparams = prepare_params(params)           # one-time host-side prep (padding/permute)

    with jax.default_matmul_precision("float32"):
        out = jax.jit(convnet_forward)(x, kparams)
        out = jax.block_until_ready(out)
        ref = reference_forward(x, params)

    assert out.shape == (6, 19), out.shape
    np.testing.assert_allclose(np.asarray(out), np.asarray(ref), rtol=1e-4, atol=1e-4)
    print("KERNEL_OK")
</pallas_src>

<mosaic_0001>
module attributes {stable_mosaic.version = 11 : i64} {
  func.func @convnet_kernel(%arg0: memref<4x25x704xf32, #tpu.memory_space<vmem>>, %arg1: memref<6x25xf32, #tpu.memory_space<vmem>>, %arg2: memref<6x1xf32, #tpu.memory_space<vmem>>, %arg3: memref<352x128xf32, #tpu.memory_space<vmem>>, %arg4: memref<352x128xf32, #tpu.memory_space<vmem>>, %arg5: memref<1x128xf32, #tpu.memory_space<vmem>>, %arg6: memref<128x128xf32, #tpu.memory_space<vmem>>, %arg7: memref<1x128xf32, #tpu.memory_space<vmem>>, %arg8: memref<128x19xf32, #tpu.memory_space<vmem>>, %arg9: memref<1x19xf32, #tpu.memory_space<vmem>>, %arg10: memref<6x19xf32, #tpu.memory_space<vmem>>) attributes {dimension_semantics = [], scalar_prefetch = 0 : i64, scratch_operands = 0 : i64, tpu.core_type = #tpu.core_type<tc>} {
    %c0 = arith.constant 0 : index
    %c0_0 = arith.constant 0 : index
    %0 = vector.load %arg1[%c0, %c0_0] : memref<6x25xf32, #tpu.memory_space<vmem>>, vector<6x25xf32>
    %c0_1 = arith.constant 0 : index
    %c0_2 = arith.constant 0 : index
    %c0_3 = arith.constant 0 : index
    %1 = vector.load %arg0[%c0_1, %c0_2, %c0_3] : memref<4x25x704xf32, #tpu.memory_space<vmem>>, vector<1x25x704xf32>
    %2 = vector.shape_cast %1 : vector<1x25x704xf32> to vector<25x704xf32>
    %cst = arith.constant dense<0.000000e+00> : vector<6x704xf32>
    %3 = tpu.matmul %0, %2, %cst {dimension_numbers = #tpu.dot_dimension_numbers<[1], [0], [0], [1], [0, 0, 1, 1], [], []>, precision = #tpu.contract_precision<fp32>} : vector<6x25xf32>, vector<25x704xf32>, vector<6x704xf32> -> vector<6x704xf32>
    %c1 = arith.constant 1 : index
    %c0_4 = arith.constant 0 : index
    %c0_5 = arith.constant 0 : index
    %4 = vector.load %arg0[%c1, %c0_4, %c0_5] : memref<4x25x704xf32, #tpu.memory_space<vmem>>, vector<1x25x704xf32>
    %5 = vector.shape_cast %4 : vector<1x25x704xf32> to vector<25x704xf32>
    %cst_6 = arith.constant dense<0.000000e+00> : vector<6x704xf32>
    %6 = tpu.matmul %0, %5, %cst_6 {dimension_numbers = #tpu.dot_dimension_numbers<[1], [0], [0], [1], [0, 0, 1, 1], [], []>, precision = #tpu.contract_precision<fp32>} : vector<6x25xf32>, vector<25x704xf32>, vector<6x704xf32> -> vector<6x704xf32>
    %7 = arith.maximumf %3, %6 : vector<6x704xf32>
    %c2 = arith.constant 2 : index
    %c0_7 = arith.constant 0 : index
    %c0_8 = arith.constant 0 : index
    %8 = vector.load %arg0[%c2, %c0_7, %c0_8] : memref<4x25x704xf32, #tpu.memory_space<vmem>>, vector<1x25x704xf32>
    %9 = vector.shape_cast %8 : vector<1x25x704xf32> to vector<25x704xf32>
    %cst_9 = arith.constant dense<0.000000e+00> : vector<6x704xf32>
    %10 = tpu.matmul %0, %9, %cst_9 {dimension_numbers = #tpu.dot_dimension_numbers<[1], [0], [0], [1], [0, 0, 1, 1], [], []>, precision = #tpu.contract_precision<fp32>} : vector<6x25xf32>, vector<25x704xf32>, vector<6x704xf32> -> vector<6x704xf32>
    %11 = arith.maximumf %7, %10 : vector<6x704xf32>
    %c3 = arith.constant 3 : index
    %c0_10 = arith.constant 0 : index
    %c0_11 = arith.constant 0 : index
    %12 = vector.load %arg0[%c3, %c0_10, %c0_11] : memref<4x25x704xf32, #tpu.memory_space<vmem>>, vector<1x25x704xf32>
    %13 = vector.shape_cast %12 : vector<1x25x704xf32> to vector<25x704xf32>
    %cst_12 = arith.constant dense<0.000000e+00> : vector<6x704xf32>
    %14 = tpu.matmul %0, %13, %cst_12 {dimension_numbers = #tpu.dot_dimension_numbers<[1], [0], [0], [1], [0, 0, 1, 1], [], []>, precision = #tpu.contract_precision<fp32>} : vector<6x25xf32>, vector<25x704xf32>, vector<6x704xf32> -> vector<6x704xf32>
    %15 = arith.maximumf %11, %14 : vector<6x704xf32>
    %c0_13 = arith.constant 0 : index
    %c0_14 = arith.constant 0 : index
    %16 = vector.load %arg2[%c0_13, %c0_14] : memref<6x1xf32, #tpu.memory_space<vmem>>, vector<6x1xf32>
    %17 = vector.broadcast %16 : vector<6x1xf32> to vector<6x704xf32>
    %18 = arith.addf %15, %17 : vector<6x704xf32>
    %cst_15 = arith.constant 0.000000e+00 : f32
    %19 = vector.broadcast %cst_15 : f32 to vector<6x704xf32>
    %20 = arith.maximumf %18, %19 : vector<6x704xf32>
    %21 = vector.extract_strided_slice %20 {offsets = [0, 0], sizes = [3, 352], strides = [1, 1]} : vector<6x704xf32> to vector<3x352xf32>
    %22 = vector.extract_strided_slice %20 {offsets = [0, 352], sizes = [3, 352], strides = [1, 1]} : vector<6x704xf32> to vector<3x352xf32>
    %23 = tpu.concatenate %21, %22 in 0 : vector<3x352xf32>, vector<3x352xf32> -> vector<6x352xf32>
    %24 = vector.extract_strided_slice %20 {offsets = [3, 0], sizes = [3, 352], strides = [1, 1]} : vector<6x704xf32> to vector<3x352xf32>
    %25 = vector.extract_strided_slice %20 {offsets = [3, 352], sizes = [3, 352], strides = [1, 1]} : vector<6x704xf32> to vector<3x352xf32>
    %26 = tpu.concatenate %24, %25 in 0 : vector<3x352xf32>, vector<3x352xf32> -> vector<6x352xf32>
    %c0_16 = arith.constant 0 : index
    %c0_17 = arith.constant 0 : index
    %27 = vector.load %arg3[%c0_16, %c0_17] : memref<352x128xf32, #tpu.memory_space<vmem>>, vector<352x128xf32>
    %cst_18 = arith.constant dense<0.000000e+00> : vector<6x128xf32>
    %28 = tpu.matmul %23, %27, %cst_18 {dimension_numbers = #tpu.dot_dimension_numbers<[1], [0], [0], [1], [0, 0, 1, 1], [], []>, precision = #tpu.contract_precision<fp32>} : vector<6x352xf32>, vector<352x128xf32>, vector<6x128xf32> -> vector<6x128xf32>
    %c0_19 = arith.constant 0 : index
    %c0_20 = arith.constant 0 : index
    %29 = vector.load %arg4[%c0_19, %c0_20] : memref<352x128xf32, #tpu.memory_space<vmem>>, vector<352x128xf32>
    %cst_21 = arith.constant dense<0.000000e+00> : vector<6x128xf32>
    %30 = tpu.matmul %26, %29, %cst_21 {dimension_numbers = #tpu.dot_dimension_numbers<[1], [0], [0], [1], [0, 0, 1, 1], [], []>, precision = #tpu.contract_precision<fp32>} : vector<6x352xf32>, vector<352x128xf32>, vector<6x128xf32> -> vector<6x128xf32>
    %31 = arith.addf %28, %30 : vector<6x128xf32>
    %c0_22 = arith.constant 0 : index
    %c0_23 = arith.constant 0 : index
    %32 = vector.load %arg5[%c0_22, %c0_23] : memref<1x128xf32, #tpu.memory_space<vmem>>, vector<1x128xf32>
    %33 = vector.broadcast %32 : vector<1x128xf32> to vector<6x128xf32>
    %34 = arith.addf %31, %33 : vector<6x128xf32>
    %cst_24 = arith.constant 0.000000e+00 : f32
    %35 = vector.broadcast %cst_24 : f32 to vector<6x128xf32>
    %36 = arith.maximumf %34, %35 : vector<6x128xf32>
    %c0_25 = arith.constant 0 : index
    %c0_26 = arith.constant 0 : index
    %37 = vector.load %arg6[%c0_25, %c0_26] : memref<128x128xf32, #tpu.memory_space<vmem>>, vector<128x128xf32>
    %cst_27 = arith.constant dense<0.000000e+00> : vector<6x128xf32>
    %38 = tpu.matmul %36, %37, %cst_27 {dimension_numbers = #tpu.dot_dimension_numbers<[1], [0], [0], [1], [0, 0, 1, 1], [], []>, precision = #tpu.contract_precision<fp32>} : vector<6x128xf32>, vector<128x128xf32>, vector<6x128xf32> -> vector<6x128xf32>
    %c0_28 = arith.constant 0 : index
    %c0_29 = arith.constant 0 : index
    %39 = vector.load %arg7[%c0_28, %c0_29] : memref<1x128xf32, #tpu.memory_space<vmem>>, vector<1x128xf32>
    %40 = vector.broadcast %39 : vector<1x128xf32> to vector<6x128xf32>
    %41 = arith.addf %38, %40 : vector<6x128xf32>
    %cst_30 = arith.constant 0.000000e+00 : f32
    %42 = vector.broadcast %cst_30 : f32 to vector<6x128xf32>
    %43 = arith.maximumf %41, %42 : vector<6x128xf32>
    %c0_31 = arith.constant 0 : index
    %c0_32 = arith.constant 0 : index
    %44 = vector.load %arg8[%c0_31, %c0_32] : memref<128x19xf32, #tpu.memory_space<vmem>>, vector<128x19xf32>
    %cst_33 = arith.constant dense<0.000000e+00> : vector<6x19xf32>
    %45 = tpu.matmul %43, %44, %cst_33 {dimension_numbers = #tpu.dot_dimension_numbers<[1], [0], [0], [1], [0, 0, 1, 1], [], []>, precision = #tpu.contract_precision<fp32>} : vector<6x128xf32>, vector<128x19xf32>, vector<6x19xf32> -> vector<6x19xf32>
    %c0_34 = arith.constant 0 : index
    %c0_35 = arith.constant 0 : index
    %46 = vector.load %arg9[%c0_34, %c0_35] : memref<1x19xf32, #tpu.memory_space<vmem>>, vector<1x19xf32>
    %47 = vector.broadcast %46 : vector<1x19xf32> to vector<6x19xf32>
    %48 = arith.addf %45, %47 : vector<6x19xf32>
    %c0_36 = arith.constant 0 : index
    %c0_37 = arith.constant 0 : index
    %49 = vector.load %arg10[%c0_36, %c0_37] : memref<6x19xf32, #tpu.memory_space<vmem>>, vector<6x19xf32>
    tpu.vector_store %arg10[%c0_36, %c0_37], %48 {strides = array<i32>} : memref<6x19xf32, #tpu.memory_space<vmem>>, vector<6x19xf32>,
    return
  }
}

</mosaic_0001>

<bundles_post_ra>
// kernel: convnet_forward.1
= control target key start
LH: loop header
LB: loop body
LE: loop exit
PB: predicated region body
PF: predicated region fallthrough
CT: control target
= control target key end

     0   :  { %vm65_vm0 = vcmask 1040384   ;;  %vm61_vm1 = vcmask 203776   ;;  %s12119_s0 = inlined_call_operand.vmem [shape: f32[4,25,704], index: 0, kind: input, shape index: {}]   ;;  %s12120_s1 = inlined_call_operand.vmem [shape: f32[6,25], index: 1, kind: input, shape index: {}]   ;;  %s12121_s2 = inlined_call_operand.vmem [shape: f32[6,1], index: 2, kind: input, shape index: {}]   ;;  %s12122_s3 = inlined_call_operand.vmem [shape: f32[352,128], index: 3, kind: input, shape index: {}]   ;;  %s12123_s4 = inlined_call_operand.vmem [shape: f32[352,128], index: 4, kind: input, shape index: {}]   ;;  %s12124_s5 = inlined_call_operand.vmem [shape: f32[1,128], index: 5, kind: input, shape index: {}]   ;;  %s12125_s6 = inlined_call_operand.vmem [shape: f32[128,128], index: 6, kind: input, shape index: {}]   ;;  %s12126_s7 = inlined_call_operand.vmem [shape: f32[1,128], index: 7, kind: input, shape index: {}]   ;;  %s12127_s8 = inlined_call_operand.vmem [shape: f32[128,19], index: 8, kind: input, shape index: {}]   ;;  %s12128_s9 = inlined_call_operand.vmem [shape: f32[1,19], index: 9, kind: input, shape index: {}]   ;;  %s12129_s10 = inlined_call_operand.hbm [shape: f32[6,19], index: 10, kind: output, shape index: {}]  }
   0x1   :  { %v55_v0 = vld [vmem:[%s12119_s0 + $0x90] sm:$0x1]  ;;  %v49_v1 = vld [vmem:[%s12119_s0 + $0x60] sm:$0xff]  ;;  %v56_v11 = vld [vmem:[%s12119_s0 + $0x98] sm:$0x1] }
   0x2   :  { %v43_v2 = vld [vmem:[%s12119_s0 + $0x30] sm:$0xff]  ;;  %v67_v3 = vsel %vm65_vm0, %v55_v0, 0  ;;  %v7698_v4 = vand.u32 4294901760, %v49_v1  ;;  %v37_v6 = vld [vmem:[%s12119_s0] sm:$0xff]  ;;  %v50_v12 = vld [vmem:[%s12119_s0 + $0x68] sm:$0xff]  ;;  %v70_v16 = vsel %vm65_vm0, %v56_v11, 0 }
   0x3   :  { %v7700_v5 = vand.u32 4294901760, %v43_v2  ;;  %v36_v7 = vld [vmem:[%s12120_s1] sm:$0x3f]  ;;  %v7708_v8 = vand.u32 4294901760, %v67_v3  ;;  %v7710_v9 = vand.u32 4294901760, %v37_v6  ;;  %v44_v17 = vld [vmem:[%s12119_s0 + $0x38] sm:$0xff] }
   0x4   :  { %v63_v10 = vsel %vm61_vm1, %v36_v7, 0  ;;  %v7719_v13 = vsub.f32 %v49_v1, %v7698_v4  ;;  %v7736_v20 = vand.u32 4294901760, %v70_v16  ;;  %v7738_v21 = vand.u32 4294901760, %v50_v12 }
   0x5   :  { %v7722_v14 = vsub.f32 %v43_v2, %v7700_v5  ;;  %v7724_v15 = vand.u32 4294901760, %v63_v10  ;;  %97 = vmatpush.msra.mxu0 %v7708_v8  ;;  %v126_v18 = vsub.f32 %v67_v3, %v7708_v8  ;;  %197 = vmatpush.msra.mxu3 %v7708_v8  ;;  %v7734_v19 = vsub.f32 %v37_v6, %v7710_v9 }
   0x6   :  { %v133_v22 = vand.u32 4294901760, %v7719_v13  ;;  %v7745_v25 = vand.u32 4294901760, %v44_v17  ;;  %v7749_v27 = vsub.f32 %v70_v16, %v7736_v20  ;;  %v7753_v29 = vsub.f32 %v50_v12, %v7738_v21 }
   0x7   :  { %v7742_v23 = vsub.f32 %v63_v10, %v7724_v15  ;;  %v139_v24 = vand.u32 4294901760, %v7722_v14  ;;  %168 = vmatpush.msra.mxu2 %v126_v18  ;;  %99 = vmatpush.msra.mxu0 %v7698_v4  ;;  %v127_v26 = vand.u32 4294901760, %v126_v18  ;;  %v145_v28 = vand.u32 4294901760, %v7734_v19 }
   0x8   :  { %199 = vmatpush.msra.mxu3 %v7698_v4  ;;  %v134_v30 = vsub.f32 %v7719_v13, %v133_v22  ;;  %v7761_v32 = vsub.f32 %v44_v17, %v7745_v25 }
   0x9   :  { %v7758_v31 = vand.u32 4294901760, %v7742_v23 }
   0xa   :  { %15 = vsyncpa [#allocation3], 0  ;;  %171 = vmatpush.msra.mxu2 %v7719_v13  ;;  %101 = vmatpush.msra.mxu0 %v7700_v5  ;;  %v128_v33 = vsub.f32 %v126_v18, %v127_v26  ;;  %v140_v34 = vsub.f32 %v7722_v14, %v139_v24  ;;  %v312_v35 = vand.u32 4294901760, %v7749_v27  ;;  %v318_v36 = vand.u32 4294901760, %v7753_v29  ;;  %v38_v37 = vld [vmem:[%s12119_s0 + $0x8] sm:$0xff]  ;;  %v51_v58 = vld [vmem:[%s12119_s0 + $0x70] sm:$0xff] }
   0xb   :  { %201 = vmatpush.msra.mxu3 %v7700_v5  ;;  %v107_v38 = vsub.f32 %v7742_v23, %v7758_v31  ;;  %v146_v39 = vsub.f32 %v7734_v19, %v145_v28  ;;  %v324_v40 = vand.u32 4294901760, %v7761_v32  ;;  %v135_v42 = vand.u32 4294901760, %v134_v30  ;;  %v57_v52 = vld [vmem:[%s12119_s0 + $0xa0] sm:$0x1]  ;;  %v58_v61 = vld [vmem:[%s12119_s0 + $0xa8] sm:$0x1] }
   0xc   :  { %v129_v41 = vand.u32 4294901760, %v128_v33  ;;  %174 = vmatpush.msra.mxu2 %v7722_v14  ;;  %103 = vmatpush.msra.mxu0 %v7710_v9  ;;  %v313_v43 = vsub.f32 %v7749_v27, %v312_v35  ;;  %v319_v44 = vsub.f32 %v7753_v29, %v318_v36  ;;  %v7787_v46 = vand.u32 4294901760, %v38_v37  ;;  %v45_v63 = vld [vmem:[%s12119_s0 + $0x40] sm:$0xff]  ;;  %v39_v1 = vld [vmem:[%s12119_s0 + $0x10] sm:$0xff]  ;;  %v52_v6 = vld [vmem:[%s12119_s0 + $0x78] sm:$0xff]  ;;  %s7632_s21 = smov [#allocation2]  }
   0xd   :  { %203 = vmatpush.msra.mxu3 %v7710_v9  ;;  %v7785_v45 = vand.u32 4294901760, %v107_v38  ;;  %v141_v47 = vand.u32 4294901760, %v140_v34  ;;  %v325_v49 = vsub.f32 %v7761_v32, %v324_v40  ;;  %v147_v53 = vand.u32 4294901760, %v146_v39  ;;  %v46_v10 = vld [vmem:[%s12119_s0 + $0x48] sm:$0xff]  ;;  %v40_v13 = vld [vmem:[%s12119_s0 + $0x18] sm:$0xff]  ;;  %s7514_s22 = sshll.u32 %s7632_s21, 4  ;;  %s7515_s22 = int_to_ptr.vmem [resolvable:$true] %s7514_s22 }
   0xe   :  { %226 = vmatpush.msrb.mxu0 %v127_v26  ;;  %130 = vmatpush.msra.mxu1 %v129_v41  ;;  %v314_v48 = vand.u32 4294901760, %v313_v43  ;;  %v320_v50 = vand.u32 4294901760, %v319_v44  ;;  %v7796_v51 = vsub.f32 %v38_v37, %v7787_v46  ;;  %v73_v56 = vsel %vm65_vm0, %v57_v52, 0  ;;  %s7516_s25 = sshll.u32 %s12129_s10, 4  ;;  %s7517_s25 = int_to_ptr.hbm [resolvable:$true] %s7516_s25 }
   0xf   :  { %177 = vmatpush.msra.mxu2 %v7734_v19  ;;  %109 = vmatmul.f32.vlgmr.msra.gmra.mxu0 %v7785_v45  ;;  %v326_v55 = vand.u32 4294901760, %v325_v49  ;;  %v7812_v60 = vand.u32 4294901760, %v73_v56  ;;  %v7819_v62 = vand.u32 4294901760, %v51_v58  ;;  %v76_v2 = vsel %vm65_vm0, %v58_v61, 0  ;;  %v53_v49 = vld [vmem:[%s12119_s0 + $0x80] sm:$0xff] }
  0x10   :  { %180 = vmatmul.f32.vlgmr.msra.gmra.mxu2 %v7742_v23  ;;  %136 = vmatpush.msra.mxu1 %v135_v42  ;;  %v330_v54 = vand.u32 4294901760, %v7796_v51  ;;  %v7836_v3 = vand.u32 4294901760, %v45_v63  ;;  %v7849_v7 = vand.u32 4294901760, %v39_v1  ;;  %v7865_v11 = vand.u32 4294901760, %v52_v6  ;;  %v59_v42 = vld [vmem:[%s12119_s0 + $0xb0] sm:$0x1] }
  0x11   :  { %207 = vmatmul.f32.vlgmr.msra.gmra.mxu3 %v7758_v31  ;;  %282 = vmatpush.msrb.mxu2 %v7736_v20  ;;  %v7828_v0 = vsub.f32 %v73_v56, %v7812_v60  ;;  %v7882_v17 = vand.u32 4294901760, %v46_v10  ;;  %v7967_v52 = vand.u32 4294901760, %v53_v49  ;;  %vm4705_vm2 = vcmask 261120  }
  0x12   :  { %315 = vmatpush.msrb.mxu3 %v314_v48  ;;  %142 = vmatpush.msra.mxu1 %v141_v47  ;;  %v331_v57 = vsub.f32 %v7796_v51, %v330_v54  ;;  %v7877_v14 = vsub.f32 %v39_v1, %v7849_v7  ;;  %v79_v47 = vsel %vm65_vm0, %v59_v42, 0  ;;  %v7531_v42 = vld [vmem:[%s12119_s0 + $0xf0] sm:$0xff]  ;;  %vm4712_vm3 = vcmask 1042432  }
  0x13   :  { %230 = vmatpush.msrb.mxu0 %v133_v22  ;;  %284 = vmatpush.msrb.mxu2 %v7738_v21  ;;  %v7894_v22 = vand.u32 4294901760, %v40_v13  ;;  %vm4829_vm4 = vcmask 785408   ;;  %vm7507_vm5 = vcmask 152576  }
  0x14   :  { %321 = vmatpush.msrb.mxu3 %v320_v50  ;;  %148 = vmatpush.msra.mxu1 %v147_v53  ;;  %v332_v59 = vand.u32 4294901760, %v331_v57  ;;  %v515_v26 = vand.u32 4294901760, %v7877_v14  ;;  %v7960_v50 = vand.u32 4294901760, %v79_v47  ;;  %v47_v53 = vld [vmem:[%s12119_s0 + $0x50] sm:$0xff] }
  0x15   :  { %234 = vmatpush.msrb.mxu0 %v139_v24  ;;  %150 = vmatmul.f32.vlgmr.msra.gmra.mxu1 %v7724_v15  ;;  %v7915_v30 = vsub.f32 %v40_v13, %v7894_v22  ;;  %v7984_v57 = vand.u32 4294901760, %v47_v53 }
  0x16   :  { %286 = vmatpush.msrb.mxu2 %v7745_v25  ;;  %257 = vmatpush.msrb.mxu1 %v7708_v8  ;;  %v497_v8 = vand.u32 4294901760, %v7828_v0  ;;  %v516_v34 = vsub.f32 %v7877_v14, %v515_v26 }
  0x17   :  { %327 = vmatpush.msrb.mxu3 %v326_v55  ;;  %238 = vmatpush.msrb.mxu0 %v145_v28  ;;  %v700_v38 = vand.u32 4294901760, %v7915_v30  ;;  %v41_v55 = vld [vmem:[%s12119_s0 + $0x20] sm:$0xff] }
  0x18   :  { %288 = vmatpush.msrb.mxu2 %v7787_v46  ;;  %259 = vmatpush.msrb.mxu1 %v7698_v4  ;;  %v7842_v4 = vsub.f32 %v51_v58, %v7819_v62  ;;  %v498_v18 = vsub.f32 %v7828_v0, %v497_v8  ;;  %v7990_v58 = vsub.f32 %v53_v49, %v7967_v52  ;;  %v7538_v49 = vld [vmem:[%s12119_s0 + $0x128] sm:$0xff] }
  0x19   :  { %333 = vmatpush.msrb.mxu3 %v332_v59  ;;  %240 = vmatmul.f32.vlgmr.msrb.gmra.mxu0 %v7724_v15  ;;  %v701_v44 = vsub.f32 %v7915_v30, %v700_v38  ;;  %v54_v59 = vld [vmem:[%s12119_s0 + $0x88] sm:$0xff] }
  0x1a   :  { %294 = vmatmul.f32.vlgmr.msrb.gmra.mxu2 %v7785_v45  ;;  %335 = vmatmul.f32.vlgmr.msrb.gmra.mxu3 %v7724_v15  ;;  %v503_v12 = vand.u32 4294901760, %v7842_v4  ;;  %v499_v28 = vand.u32 4294901760, %v498_v18  ;;  %v8013_v1 = vand.u32 4294901760, %v54_v59 }
  0x1b   :  { %261 = vmatpush.msrb.mxu1 %v7700_v5  ;;  %353 = vmatpush.msra.mxu0 %v7749_v27  ;;  %v7851_v5 = vand.u32 4294901760, %v76_v2  ;;  %v7906_v27 = vsub.f32 %v46_v10, %v7882_v17  ;;  %v702_v48 = vand.u32 4294901760, %v701_v44  ;;  %v7525_v44 = vld [vmem:[%s12119_s0 + $0xc0] sm:$0xff] }
  0x1c   :  { %411 = vmatpush.msra.mxu2 %v312_v35  ;;  %442 = vmatpush.msra.mxu3 %v7736_v20  ;;  %v8042_v10 = vsub.f32 %v54_v59, %v8013_v1 }
  0x1d   :  { %263 = vmatpush.msrb.mxu1 %v7710_v9  ;;  %356 = vmatpush.msra.mxu0 %v7753_v29  ;;  %v7863_v9 = vsub.f32 %v45_v63, %v7836_v3  ;;  %v7880_v16 = vsub.f32 %v76_v2, %v7851_v5  ;;  %v694_v35 = vand.u32 4294901760, %v7906_v27  ;;  %v48_v63 = vld [vmem:[%s12119_s0 + $0x58] sm:$0xff]  ;;  %v873_v2 = vand.u32 4294901760, %v7990_v58 }
  0x1e   :  { %415 = vmatpush.msra.mxu2 %v318_v36  ;;  %444 = vmatpush.msra.mxu3 %v7738_v21 }
  0x1f   :  { %265 = vmatmul.f32.vlgmr.msrb.gmra.mxu1 %v7724_v15  ;;  %359 = vmatpush.msra.mxu0 %v7761_v32  ;;  %v509_v19 = vand.u32 4294901760, %v7863_v9  ;;  %v682_v24 = vand.u32 4294901760, %v7880_v16  ;;  %v695_v41 = vsub.f32 %v7906_v27, %v694_v35 }
  0x20   :  { %382 = vmatpush.msra.mxu1 %v7736_v20  ;;  %419 = vmatpush.msra.mxu2 %v324_v40  ;;  %v7892_v20 = vsub.f32 %v52_v6, %v7865_v11  ;;  %v517_v40 = vand.u32 4294901760, %v516_v34 }
  0x21   :  { %446 = vmatpush.msra.mxu3 %v7745_v25  ;;  %362 = vmatpush.msra.mxu0 %v7796_v51  ;;  %v510_v29 = vsub.f32 %v7863_v9, %v509_v19  ;;  %v683_v33 = vsub.f32 %v7880_v16, %v682_v24  ;;  %v60_v51 = vld [vmem:[%s12119_s0 + $0xb8] sm:$0x1] }
  0x22   :  { %384 = vmatpush.msra.mxu1 %v7738_v21  ;;  %423 = vmatpush.msra.mxu2 %v330_v54  ;;  %v504_v21 = vsub.f32 %v7842_v4, %v503_v12  ;;  %v7976_v54 = vsub.f32 %v79_v47, %v7960_v50  ;;  %v82_v56 = vsel %vm65_vm0, %v60_v51, 0  ;;  %v8134_v47 = vand.u32 4294901760, %v7531_v42 }
  0x23   :  { %448 = vmatpush.msra.mxu3 %v7787_v46  ;;  %365 = vmatmul.f32.vlgmr.msra.gmra.mxu0 %v7742_v23  ;;  %v511_v36 = vand.u32 4294901760, %v510_v29  ;;  %v684_v39 = vand.u32 4294901760, %v683_v33  ;;  %v7999_v61 = vand.u32 4294901760, %v82_v56 }
  0x24   :  { %425 = vmatmul.f32.vlgmr.msra.gmra.mxu2 %v7724_v15  ;;  %450 = vmatmul.f32.vlgmr.msra.gmra.mxu3 %v7724_v15  ;;  %v505_v32 = vand.u32 4294901760, %v504_v21 }
  0x25   :  { %386 = vmatpush.msra.mxu1 %v7745_v25  ;;  %467 = vmatpush.msrb.mxu0 %v7812_v60  ;;  %v688_v25 = vand.u32 4294901760, %v7892_v20  ;;  %v8028_v6 = vsub.f32 %v82_v56, %v7999_v61 }
  0x26   :  { %538 = vmatpush.msrb.mxu2 %v7828_v0  ;;  %567 = vmatpush.msrb.mxu3 %v7812_v60  ;;  %v8011_v0 = vsub.f32 %v47_v53, %v7984_v57  ;;  %v7532_v53 = vld [vmem:[%s12119_s0 + $0xf8] sm:$0xff] }
  0x27   :  { %388 = vmatpush.msra.mxu1 %v7787_v46  ;;  %469 = vmatpush.msrb.mxu0 %v7819_v62  ;;  %v689_v37 = vsub.f32 %v7892_v20, %v688_v25  ;;  %v696_v46 = vand.u32 4294901760, %v695_v41 }
  0x28   :  { %541 = vmatpush.msrb.mxu2 %v7842_v4  ;;  %569 = vmatpush.msrb.mxu3 %v7819_v62 }
  0x29   :  { %392 = vmatmul.f32.vlgmr.msra.gmra.mxu1 %v7758_v31  ;;  %471 = vmatpush.msrb.mxu0 %v7836_v3  ;;  %v690_v43 = vand.u32 4294901760, %v689_v37 }
  0x2a   :  { %500 = vmatpush.msrb.mxu1 %v499_v28  ;;  %544 = vmatpush.msrb.mxu2 %v7863_v9 }
  0x2b   :  { %571 = vmatpush.msrb.mxu3 %v7836_v3  ;;  %473 = vmatpush.msrb.mxu0 %v7849_v7 }
  0x2c   :  { %506 = vmatpush.msrb.mxu1 %v505_v32  ;;  %547 = vmatpush.msrb.mxu2 %v7877_v14  ;;  %v7543_v32 = vld [vmem:[%s12119_s0 + $0x150] sm:$0x1] }
  0x2d   :  { %573 = vmatpush.msrb.mxu3 %v7849_v7  ;;  %479 = vmatmul.f32.vlgmr.msrb.gmra.mxu0 %v7785_v45 }
  0x2e   :  { %550 = vmatmul.f32.vlgmr.msrb.gmra.mxu2 %v7742_v23  ;;  %577 = vmatmul.f32.vlgmr.msrb.gmra.mxu3 %v7758_v31 }
  0x2f   :  { %512 = vmatpush.msrb.mxu1 %v511_v36  ;;  %596 = vmatpush.msra.mxu0 %v497_v8  ;;  %v879_v8 = vand.u32 4294901760, %v8011_v0  ;;  %v1220_v36 = vsel %vm65_vm0, %v7543_v32, 0  ;;  %v7533_v32 = vld [vmem:[%s12119_s0 + $0x100] sm:$0xff] }
  0x30   :  { %652 = vmatpush.msra.mxu2 %v7851_v5  ;;  %685 = vmatpush.msra.mxu3 %v684_v39  ;;  %v8110_v39 = vand.u32 4294901760, %v1220_v36 }
  0x31   :  { %518 = vmatpush.msrb.mxu1 %v517_v40  ;;  %600 = vmatpush.msra.mxu0 %v503_v12  ;;  %v1052_v12 = vand.u32 4294901760, %v8028_v6  ;;  %v880_v18 = vsub.f32 %v8011_v0, %v879_v8  ;;  %v7544_v40 = vld [vmem:[%s12119_s0 + $0x158] sm:$0x1] }
  0x32   :  { %654 = vmatpush.msra.mxu2 %v7865_v11  ;;  %691 = vmatpush.msra.mxu3 %v690_v43  ;;  %v8126_v43 = vsub.f32 %v1220_v36, %v8110_v39  ;;  %v8284_v36 = vand.u32 4294901760, %v7533_v32 }
  0x33   :  { %520 = vmatmul.f32.vlgmr.msrb.gmra.mxu1 %v7724_v15  ;;  %604 = vmatpush.msra.mxu0 %v509_v19 }
  0x34   :  { %627 = vmatpush.msra.mxu1 %v7812_v60  ;;  %656 = vmatpush.msra.mxu2 %v7882_v17  ;;  %v7997_v60 = vand.u32 4294901760, %v41_v55 }
  0x35   :  { %697 = vmatpush.msra.mxu3 %v696_v46  ;;  %608 = vmatpush.msra.mxu0 %v515_v26  ;;  %v881_v26 = vand.u32 4294901760, %v880_v18  ;;  %v1223_v46 = vsel %vm65_vm0, %v7544_v40, 0 }
  0x36   :  { %629 = vmatpush.msra.mxu1 %v7819_v62  ;;  %658 = vmatpush.msra.mxu2 %v7894_v22  ;;  %v867_v62 = vand.u32 4294901760, %v7976_v54  ;;  %v8025_v4 = vsub.f32 %v41_v55, %v7997_v60  ;;  %v8149_v51 = vand.u32 4294901760, %v1223_v46  ;;  %v8163_v55 = vand.u32 4294901760, %v7538_v49 }
  0x37   :  { %703 = vmatpush.msra.mxu3 %v702_v48  ;;  %610 = vmatmul.f32.vlgmr.msra.gmra.mxu0 %v7724_v15 }
  0x38   :  { %664 = vmatmul.f32.vlgmr.msra.gmra.mxu2 %v7785_v45  ;;  %705 = vmatmul.f32.vlgmr.msra.gmra.mxu3 %v7724_v15  ;;  %v885_v13 = vand.u32 4294901760, %v8025_v4  ;;  %v8178_v59 = vsub.f32 %v1223_v46, %v8149_v51 }
  0x39   :  { %631 = vmatpush.msra.mxu1 %v7836_v3  ;;  %723 = vmatpush.msrb.mxu0 %v7880_v16  ;;  %v42_v3 = vld [vmem:[%s12119_s0 + $0x28] sm:$0xff] }
  0x3a   :  { %781 = vmatpush.msrb.mxu2 %v682_v24  ;;  %812 = vmatpush.msrb.mxu3 %v7851_v5  ;;  %v8044_v9 = vand.u32 4294901760, %v42_v3  ;;  %v886_v21 = vsub.f32 %v8025_v4, %v885_v13 }
  0x3b   :  { %633 = vmatpush.msra.mxu1 %v7849_v7  ;;  %726 = vmatpush.msrb.mxu0 %v7892_v20  ;;  %v8030_v7 = vand.u32 4294901760, %v48_v63 }
  0x3c   :  { %785 = vmatpush.msrb.mxu2 %v688_v25  ;;  %814 = vmatpush.msrb.mxu3 %v7865_v11  ;;  %v8065_v19 = vsub.f32 %v42_v3, %v8044_v9  ;;  %v887_v25 = vand.u32 4294901760, %v886_v21 }
  0x3d   :  { %635 = vmatmul.f32.vlgmr.msra.gmra.mxu1 %v7724_v15  ;;  %729 = vmatpush.msrb.mxu0 %v7906_v27  ;;  %v8056_v14 = vsub.f32 %v48_v63, %v8030_v7  ;;  %v8192_v63 = vsub.f32 %v7538_v49, %v8163_v55 }
  0x3e   :  { %752 = vmatpush.msrb.mxu1 %v7851_v5  ;;  %789 = vmatpush.msrb.mxu2 %v694_v35  ;;  %v868_v5 = vsub.f32 %v7976_v54, %v867_v62  ;;  %v1070_v28 = vand.u32 4294901760, %v8065_v19 }
  0x3f   :  { %816 = vmatpush.msrb.mxu3 %v7882_v17  ;;  %732 = vmatpush.msrb.mxu0 %v7915_v30  ;;  %v1064_v24 = vand.u32 4294901760, %v8056_v14 }
  0x40   :  { %754 = vmatpush.msrb.mxu1 %v7865_v11  ;;  %793 = vmatpush.msrb.mxu2 %v700_v38  ;;  %v874_v11 = vsub.f32 %v7990_v58, %v873_v2  ;;  %v869_v16 = vand.u32 4294901760, %v868_v5  ;;  %v1071_v34 = vsub.f32 %v8065_v19, %v1070_v28  ;;  %v7537_v38 = vld [vmem:[%s12119_s0 + $0x120] sm:$0xff] }
  0x41   :  { %818 = vmatpush.msrb.mxu3 %v7894_v22  ;;  %735 = vmatmul.f32.vlgmr.msrb.gmra.mxu0 %v7742_v23  ;;  %v1065_v30 = vsub.f32 %v8056_v14, %v1064_v24  ;;  %v8117_v41 = vand.u32 4294901760, %v7537_v38 }
  0x42   :  { %795 = vmatmul.f32.vlgmr.msrb.gmra.mxu2 %v7724_v15  ;;  %820 = vmatmul.f32.vlgmr.msrb.gmra.mxu3 %v7724_v15  ;;  %v875_v20 = vand.u32 4294901760, %v874_v11  ;;  %v1072_v37 = vand.u32 4294901760, %v1071_v34  ;;  %v7527_v34 = vld [vmem:[%s12119_s0 + $0xd0] sm:$0xff] }
  0x43   :  { %756 = vmatpush.msrb.mxu1 %v7882_v17  ;;  %837 = vmatpush.msra.mxu0 %v7960_v50  ;;  %v1058_v17 = vand.u32 4294901760, %v8042_v10  ;;  %v1066_v35 = vand.u32 4294901760, %v1065_v30  ;;  %v8140_v48 = vsub.f32 %v7537_v38, %v8117_v41  ;;  %v7540_v38 = vld [vmem:[%s12119_s0 + $0x138] sm:$0xff] }
  0x44   :  { %908 = vmatpush.msra.mxu2 %v7976_v54  ;;  %937 = vmatpush.msra.mxu3 %v7960_v50  ;;  %v8161_v54 = vsub.f32 %v7531_v42, %v8134_v47  ;;  %v7534_v42 = vld [vmem:[%s12119_s0 + $0x108] sm:$0xff] }
  0x45   :  { %758 = vmatpush.msrb.mxu1 %v7894_v22  ;;  %839 = vmatpush.msra.mxu0 %v7967_v52  ;;  %v1053_v22 = vsub.f32 %v8028_v6, %v1052_v12  ;;  %v1059_v27 = vsub.f32 %v8042_v10, %v1058_v17  ;;  %v1286_v56 = vand.u32 4294901760, %v8140_v48 }
  0x46   :  { %911 = vmatpush.msra.mxu2 %v7990_v58  ;;  %939 = vmatpush.msra.mxu3 %v7967_v52 }
  0x47   :  { %762 = vmatmul.f32.vlgmr.msrb.gmra.mxu1 %v7758_v31  ;;  %841 = vmatpush.msra.mxu0 %v7984_v57  ;;  %v1054_v29 = vand.u32 4294901760, %v1053_v22  ;;  %v1060_v33 = vand.u32 4294901760, %v1059_v27 }
  0x48   :  { %870 = vmatpush.msra.mxu1 %v869_v16  ;;  %914 = vmatpush.msra.mxu2 %v8011_v0 }
  0x49   :  { %941 = vmatpush.msra.mxu3 %v7984_v57  ;;  %843 = vmatpush.msra.mxu0 %v7997_v60 }
  0x4a   :  { %876 = vmatpush.msra.mxu1 %v875_v20  ;;  %917 = vmatpush.msra.mxu2 %v8025_v4  ;;  %v7545_v20 = vld [vmem:[%s12119_s0 + $0x160] sm:$0x1] }
  0x4b   :  { %943 = vmatpush.msra.mxu3 %v7997_v60  ;;  %849 = vmatmul.f32.vlgmr.msra.gmra.mxu0 %v7785_v45 }
  0x4c   :  { %920 = vmatmul.f32.vlgmr.msra.gmra.mxu2 %v7742_v23  ;;  %947 = vmatmul.f32.vlgmr.msra.gmra.mxu3 %v7758_v31 }
  0x4d   :  { %882 = vmatpush.msra.mxu1 %v881_v26  ;;  %966 = vmatpush.msrb.mxu0 %v867_v62  ;;  %v1292_v62 = vand.u32 4294901760, %v8161_v54  ;;  %v1226_v26 = vsel %vm65_vm0, %v7545_v20, 0 }
  0x4e   :  { %1022 = vmatpush.msrb.mxu2 %v7999_v61  ;;  %1055 = vmatpush.msrb.mxu3 %v1054_v29  ;;  %v8260_v29 = vand.u32 4294901760, %v1226_v26 }
  0x4f   :  { %888 = vmatpush.msra.mxu1 %v887_v25  ;;  %970 = vmatpush.msrb.mxu0 %v873_v2  ;;  %v1465_v2 = vand.u32 4294901760, %v8178_v59  ;;  %v1293_v5 = vsub.f32 %v8161_v54, %v1292_v62  ;;  %v7546_v25 = vld [vmem:[%s12119_s0 + $0x168] sm:$0x1] }
  0x50   :  { %1024 = vmatpush.msrb.mxu2 %v8013_v1  ;;  %1061 = vmatpush.msrb.mxu3 %v1060_v33  ;;  %v8276_v33 = vsub.f32 %v1226_v26, %v8260_v29 }
  0x51   :  { %890 = vmatmul.f32.vlgmr.msra.gmra.mxu1 %v7724_v15  ;;  %974 = vmatpush.msrb.mxu0 %v879_v8 }
  0x52   :  { %997 = vmatpush.msrb.mxu1 %v7960_v50  ;;  %1026 = vmatpush.msrb.mxu2 %v8030_v7  ;;  %v8147_v50 = vand.u32 4294901760, %v7525_v44 }
  0x53   :  { %1067 = vmatpush.msrb.mxu3 %v1066_v35  ;;  %978 = vmatpush.msrb.mxu0 %v885_v13  ;;  %v1294_v13 = vand.u32 4294901760, %v1293_v5  ;;  %v1229_v35 = vsel %vm65_vm0, %v7546_v25, 0  ;;  %v7542_v25 = vld [vmem:[%s12119_s0 + $0x148] sm:$0xff] }
  0x54   :  { %999 = vmatpush.msrb.mxu1 %v7967_v52  ;;  %1028 = vmatpush.msrb.mxu2 %v8044_v9  ;;  %v1280_v52 = vand.u32 4294901760, %v8126_v43  ;;  %v8175_v58 = vsub.f32 %v7525_v44, %v8147_v50  ;;  %v8299_v40 = vand.u32 4294901760, %v1229_v35  ;;  %v8313_v44 = vand.u32 4294901760, %v7540_v38 }
  0x55   :  { %1073 = vmatpush.msrb.mxu3 %v1072_v37  ;;  %980 = vmatmul.f32.vlgmr.msrb.gmra.mxu0 %v7724_v15 }
  0x56   :  { %1034 = vmatmul.f32.vlgmr.msrb.gmra.mxu2 %v7785_v45  ;;  %1075 = vmatmul.f32.vlgmr.msrb.gmra.mxu3 %v7724_v15  ;;  %v1298_v3 = vand.u32 4294901760, %v8175_v58  ;;  %v8328_v49 = vsub.f32 %v1229_v35, %v8299_v40 }
  0x57   :  { %1001 = vmatpush.msrb.mxu1 %v7984_v57  ;;  %1093 = vmatpush.msra.mxu0 %v8028_v6  ;;  %v7526_v57 = vld [vmem:[%s12119_s0 + $0xc8] sm:$0xff] }
  0x58   :  { %1151 = vmatpush.msra.mxu2 %v1052_v12  ;;  %1182 = vmatpush.msra.mxu3 %v7999_v61  ;;  %v8194_v0 = vand.u32 4294901760, %v7526_v57  ;;  %v1299_v11 = vsub.f32 %v8175_v58, %v1298_v3 }
  0x59   :  { %1003 = vmatpush.msrb.mxu1 %v7997_v60  ;;  %1096 = vmatpush.msra.mxu0 %v8042_v10  ;;  %v8180_v60 = vand.u32 4294901760, %v7532_v53 }
  0x5a   :  { %1155 = vmatpush.msra.mxu2 %v1058_v17  ;;  %1184 = vmatpush.msra.mxu3 %v8013_v1  ;;  %v8215_v8 = vsub.f32 %v7526_v57, %v8194_v0  ;;  %v1300_v17 = vand.u32 4294901760, %v1299_v11 }
  0x5b   :  { %1005 = vmatmul.f32.vlgmr.msrb.gmra.mxu1 %v7724_v15  ;;  %1099 = vmatpush.msra.mxu0 %v8056_v14  ;;  %v8206_v4 = vsub.f32 %v7532_v53, %v8180_v60  ;;  %v8342_v53 = vsub.f32 %v7540_v38, %v8313_v44  ;;  %v8471_v38 = vand.u32 4294901760, %v7542_v25 }
  0x5c   :  { %1122 = vmatpush.msra.mxu1 %v7999_v61  ;;  %1159 = vmatpush.msra.mxu2 %v1064_v24  ;;  %v1281_v61 = vsub.f32 %v8126_v43, %v1280_v52  ;;  %v1483_v16 = vand.u32 4294901760, %v8215_v8 }
  0x5d   :  { %1186 = vmatpush.msra.mxu3 %v8030_v7  ;;  %1102 = vmatpush.msra.mxu0 %v8065_v19  ;;  %v1477_v12 = vand.u32 4294901760, %v8206_v4 }
  0x5e   :  { %1124 = vmatpush.msra.mxu1 %v8013_v1  ;;  %1163 = vmatpush.msra.mxu2 %v1070_v28  ;;  %v1287_v1 = vsub.f32 %v8140_v48, %v1286_v56  ;;  %v1282_v6 = vand.u32 4294901760, %v1281_v61  ;;  %v1484_v21 = vsub.f32 %v8215_v8, %v1483_v16  ;;  %v7539_v28 = vld [vmem:[%s12119_s0 + $0x130] sm:$0xff] }
  0x5f   :  { %1188 = vmatpush.msra.mxu3 %v8044_v9  ;;  %1105 = vmatmul.f32.vlgmr.msra.gmra.mxu0 %v7742_v23  ;;  %v1478_v19 = vsub.f32 %v8206_v4, %v1477_v12  ;;  %v8267_v30 = vand.u32 4294901760, %v7539_v28 }
  0x60   :  { %1165 = vmatmul.f32.vlgmr.msra.gmra.mxu2 %v7724_v15  ;;  %1190 = vmatmul.f32.vlgmr.msra.gmra.mxu3 %v7724_v15  ;;  %v1288_v10 = vand.u32 4294901760, %v1287_v1  ;;  %v1485_v27 = vand.u32 4294901760, %v1484_v21 }
  0x61   :  { %1126 = vmatpush.msra.mxu1 %v8030_v7  ;;  %1250 = vmatpush.msrb.mxu0 %v8110_v39  ;;  %v1471_v7 = vand.u32 4294901760, %v8192_v63  ;;  %v1479_v24 = vand.u32 4294901760, %v1478_v19  ;;  %v8290_v37 = vsub.f32 %v7539_v28, %v8267_v30  ;;  %v7548_v19 = vld [vmem:[%s12119_s0 + $0x178] sm:$0x1] }
  0x62   :  { %1321 = vmatpush.msrb.mxu2 %v8126_v43  ;;  %1350 = vmatpush.msrb.mxu3 %v8110_v39  ;;  %v8311_v43 = vsub.f32 %v7533_v32, %v8284_v36  ;;  %v1235_v26 = vsel %vm65_vm0, %v7548_v19, 0 }
  0x63   :  { %1128 = vmatpush.msra.mxu1 %v8044_v9  ;;  %1252 = vmatpush.msrb.mxu0 %v8117_v41  ;;  %v1466_v9 = vsub.f32 %v8178_v59, %v1465_v2  ;;  %v1472_v14 = vsub.f32 %v8192_v63, %v1471_v7  ;;  %v1656_v46 = vand.u32 4294901760, %v8290_v37 }
  0x64   :  { %1324 = vmatpush.msrb.mxu2 %v8140_v48  ;;  %1352 = vmatpush.msrb.mxu3 %v8117_v41 }
  0x65   :  { %1132 = vmatmul.f32.vlgmr.msra.gmra.mxu1 %v7758_v31  ;;  %1254 = vmatpush.msrb.mxu0 %v8134_v47  ;;  %v1467_v18 = vand.u32 4294901760, %v1466_v9  ;;  %v1473_v22 = vand.u32 4294901760, %v1472_v14 }
  0x66   :  { %1283 = vmatpush.msrb.mxu1 %v1282_v6  ;;  %1327 = vmatpush.msrb.mxu2 %v8161_v54 }
  0x67   :  { %1354 = vmatpush.msrb.mxu3 %v8134_v47  ;;  %1256 = vmatpush.msrb.mxu0 %v8147_v50 }
  0x68   :  { %1289 = vmatpush.msrb.mxu1 %v1288_v10  ;;  %1330 = vmatpush.msrb.mxu2 %v8175_v58  ;;  %v7547_v10 = vld [vmem:[%s12119_s0 + $0x170] sm:$0x1] }
  0x69   :  { %1356 = vmatpush.msrb.mxu3 %v8147_v50  ;;  %1262 = vmatmul.f32.vlgmr.msrb.gmra.mxu0 %v7785_v45 }
  0x6a   :  { %1333 = vmatmul.f32.vlgmr.msrb.gmra.mxu2 %v7742_v23  ;;  %1360 = vmatmul.f32.vlgmr.msrb.gmra.mxu3 %v7758_v31 }
  0x6b   :  { %1295 = vmatpush.msrb.mxu1 %v1294_v13  ;;  %1379 = vmatpush.msra.mxu0 %v1280_v52  ;;  %v1662_v52 = vand.u32 4294901760, %v8311_v43  ;;  %v1232_v13 = vsel %vm65_vm0, %v7547_v10, 0 }
  0x6c   :  { %1435 = vmatpush.msra.mxu2 %v8149_v51  ;;  %1468 = vmatpush.msra.mxu3 %v1467_v18 }
  0x6d   :  { %1301 = vmatpush.msrb.mxu1 %v1300_v17  ;;  %1383 = vmatpush.msra.mxu0 %v1286_v56  ;;  %v1835_v56 = vand.u32 4294901760, %v8328_v49  ;;  %v1663_v61 = vsub.f32 %v8311_v43, %v1662_v52  ;;  %v8412_v17 = vand.u32 4294901760, %v1232_v13 }
  0x6e   :  { %1437 = vmatpush.msra.mxu2 %v8163_v55  ;;  %1474 = vmatpush.msra.mxu3 %v1473_v22  ;;  %v7535_v22 = vld [vmem:[%s12119_s0 + $0x110] sm:$0xff] }
  0x6f   :  { %1303 = vmatmul.f32.vlgmr.msrb.gmra.mxu1 %v7724_v15  ;;  %1387 = vmatpush.msra.mxu0 %v1292_v62  ;;  %v8428_v21 = vsub.f32 %v1232_v13, %v8412_v17 }
  0x70   :  { %1410 = vmatpush.msra.mxu1 %v8110_v39  ;;  %1439 = vmatpush.msra.mxu2 %v8180_v60  ;;  %v8297_v39 = vand.u32 4294901760, %v7527_v34 }
  0x71   :  { %1480 = vmatpush.msra.mxu3 %v1479_v24  ;;  %1391 = vmatpush.msra.mxu0 %v1298_v3  ;;  %v1664_v3 = vand.u32 4294901760, %v1663_v61  ;;  %v7529_v24 = vld [vmem:[%s12119_s0 + $0xe0] sm:$0xff]  ;;  %v2020_v35 = vand.u32 4294901760, %v8428_v21 }
  0x72   :  { %1412 = vmatpush.msra.mxu1 %v8117_v41  ;;  %1441 = vmatpush.msra.mxu2 %v8194_v0  ;;  %v1650_v41 = vand.u32 4294901760, %v8276_v33  ;;  %v8325_v48 = vsub.f32 %v7527_v34, %v8297_v39  ;;  %v8457_v34 = vand.u32 4294901760, %v1235_v26 }
  0x73   :  { %1486 = vmatpush.msra.mxu3 %v1485_v27  ;;  %1393 = vmatmul.f32.vlgmr.msra.gmra.mxu0 %v7724_v15  ;;  %v8436_v27 = vand.u32 4294901760, %v7535_v22 }
  0x74   :  { %1447 = vmatmul.f32.vlgmr.msra.gmra.mxu2 %v7785_v45  ;;  %1488 = vmatmul.f32.vlgmr.msra.gmra.mxu3 %v7724_v15  ;;  %v1668_v57 = vand.u32 4294901760, %v8325_v48 }
  0x75   :  { %1414 = vmatpush.msra.mxu1 %v8134_v47  ;;  %1506 = vmatpush.msrb.mxu0 %v8178_v59  ;;  %v7528_v47 = vld [vmem:[%s12119_s0 + $0xd8] sm:$0xff] }
  0x76   :  { %1564 = vmatpush.msrb.mxu2 %v1465_v2  ;;  %1595 = vmatpush.msrb.mxu3 %v8149_v51  ;;  %v8344_v54 = vand.u32 4294901760, %v7528_v47  ;;  %v1669_v1 = vsub.f32 %v8325_v48, %v1668_v57 }
  0x77   :  { %1416 = vmatpush.msra.mxu1 %v8147_v50  ;;  %1509 = vmatpush.msrb.mxu0 %v8192_v63  ;;  %v8330_v50 = vand.u32 4294901760, %v7534_v42 }
  0x78   :  { %1568 = vmatpush.msrb.mxu2 %v1471_v7  ;;  %1597 = vmatpush.msrb.mxu3 %v8163_v55  ;;  %v8365_v62 = vsub.f32 %v7528_v47, %v8344_v54  ;;  %v1670_v7 = vand.u32 4294901760, %v1669_v1 }
  0x79   :  { %1418 = vmatmul.f32.vlgmr.msra.gmra.mxu1 %v7724_v15  ;;  %1512 = vmatpush.msrb.mxu0 %v8206_v4  ;;  %v8356_v58 = vsub.f32 %v7534_v42, %v8330_v50  ;;  %v7530_v42 = vld [vmem:[%s12119_s0 + $0xe8] sm:$0xff] }
  0x7a   :  { %1535 = vmatpush.msrb.mxu1 %v8149_v51  ;;  %1572 = vmatpush.msrb.mxu2 %v1477_v12  ;;  %v1651_v51 = vsub.f32 %v8276_v33, %v1650_v41  ;;  %v1853_v6 = vand.u32 4294901760, %v8365_v62 }
  0x7b   :  { %1599 = vmatpush.msrb.mxu3 %v8180_v60  ;;  %1515 = vmatpush.msrb.mxu0 %v8215_v8  ;;  %v1847_v2 = vand.u32 4294901760, %v8356_v58 }
  0x7c   :  { %1537 = vmatpush.msrb.mxu1 %v8163_v55  ;;  %1576 = vmatpush.msrb.mxu2 %v1483_v16  ;;  %v1657_v55 = vsub.f32 %v8290_v37, %v1656_v46  ;;  %v1652_v59 = vand.u32 4294901760, %v1651_v51  ;;  %v1854_v11 = vsub.f32 %v8365_v62, %v1853_v6  ;;  %v7541_v16 = vld [vmem:[%s12119_s0 + $0x140] sm:$0xff]  ;;  %v8504_v51 = vand.u32 4294901760, %v7530_v42 }
  0x7d   :  { %1601 = vmatpush.msrb.mxu3 %v8194_v0  ;;  %1518 = vmatmul.f32.vlgmr.msrb.gmra.mxu0 %v7742_v23  ;;  %v1848_v8 = vsub.f32 %v8356_v58, %v1847_v2  ;;  %v8419_v20 = vand.u32 4294901760, %v7541_v16 }
  0x7e   :  { %1578 = vmatmul.f32.vlgmr.msrb.gmra.mxu2 %v7724_v15  ;;  %1603 = vmatmul.f32.vlgmr.msrb.gmra.mxu3 %v7724_v15  ;;  %v1658_v63 = vand.u32 4294901760, %v1657_v55  ;;  %v1855_v14 = vand.u32 4294901760, %v1854_v11 }
  0x7f   :  { %1539 = vmatpush.msrb.mxu1 %v8180_v60  ;;  %1620 = vmatpush.msra.mxu0 %v8260_v29  ;;  %v1841_v60 = vand.u32 4294901760, %v8342_v53  ;;  %v1849_v12 = vand.u32 4294901760, %v1848_v8  ;;  %v7567_v8 = vld [vmem:[%s12119_s0 + $0x210] sm:$0x1] }
  0x80   :  { %1691 = vmatpush.msra.mxu2 %v8276_v33  ;;  %1720 = vmatpush.msra.mxu3 %v8260_v29  ;;  %v8455_v33 = vand.u32 4294901760, %v7529_v24 }
  0x81   :  { %1541 = vmatpush.msrb.mxu1 %v8194_v0  ;;  %1622 = vmatpush.msra.mxu0 %v8267_v30  ;;  %v1836_v0 = vsub.f32 %v8328_v49, %v1835_v56  ;;  %v1842_v4 = vsub.f32 %v8342_v53, %v1841_v60 }
  0x82   :  { %1694 = vmatpush.msra.mxu2 %v8290_v37  ;;  %1722 = vmatpush.msra.mxu3 %v8267_v30  ;;  %v8469_v37 = vsub.f32 %v7535_v22, %v8436_v27  ;;  %v7561_v22 = vld [vmem:[%s12119_s0 + $0x1e0] sm:$0xff] }
  0x83   :  { %1545 = vmatmul.f32.vlgmr.msrb.gmra.mxu1 %v7758_v31  ;;  %1624 = vmatpush.msra.mxu0 %v8284_v36  ;;  %v1837_v5 = vand.u32 4294901760, %v1836_v0  ;;  %v1843_v9 = vand.u32 4294901760, %v1842_v4 }
  0x84   :  { %1653 = vmatpush.msra.mxu1 %v1652_v59  ;;  %1697 = vmatpush.msra.mxu2 %v8311_v43  ;;  %v8485_v43 = vsub.f32 %v7529_v24, %v8455_v33 }
  0x85   :  { %1724 = vmatpush.msra.mxu3 %v8284_v36  ;;  %1626 = vmatpush.msra.mxu0 %v8297_v39 }
  0x86   :  { %1659 = vmatpush.msra.mxu1 %v1658_v63  ;;  %1700 = vmatpush.msra.mxu2 %v8325_v48  ;;  %v2032_v48 = vand.u32 4294901760, %v8469_v37  ;;  %v2038_v55 = vand.u32 4294901760, %v8485_v43 }
  0x87   :  { %1726 = vmatpush.msra.mxu3 %v8297_v39  ;;  %1632 = vmatmul.f32.vlgmr.msra.gmra.mxu0 %v7785_v45 }
  0x88   :  { %1703 = vmatmul.f32.vlgmr.msra.gmra.mxu2 %v7742_v23  ;;  %1730 = vmatmul.f32.vlgmr.msra.gmra.mxu3 %v7758_v31  ;;  %v2039_v63 = vsub.f32 %v8485_v43, %v2038_v55 }
  0x89   :  { %1665 = vmatpush.msra.mxu1 %v1664_v3  ;;  %1749 = vmatpush.msrb.mxu0 %v1650_v41 }
  0x8a   :  { %1805 = vmatpush.msrb.mxu2 %v8299_v40  ;;  %1838 = vmatpush.msrb.mxu3 %v1837_v5  ;;  %v2040_v5 = vand.u32 4294901760, %v2039_v63 }
  0x8b   :  { %1671 = vmatpush.msra.mxu1 %v1670_v7  ;;  %1753 = vmatpush.msrb.mxu0 %v1656_v46  ;;  %v8488_v46 = vsub.f32 %v1235_v26, %v8457_v34  ;;  %v7568_v26 = vld [vmem:[%s12119_s0 + $0x218] sm:$0x1] }
  0x8c   :  { %1807 = vmatpush.msrb.mxu2 %v8313_v44  ;;  %1844 = vmatpush.msrb.mxu3 %v1843_v9  ;;  %v8409_v18 = vpop.f32.mrf.mxu0 }
  0x8d   :  { %1673 = vmatmul.f32.vlgmr.msra.gmra.mxu1 %v7724_v15  ;;  %12196 = vst [vmem:[#allocation5_spill] sm:$0xff] %v8409_v18  ;;  %1757 = vmatpush.msrb.mxu0 %v1662_v52 }
  0x8e   :  { %1780 = vmatpush.msrb.mxu1 %v8260_v29  ;;  %1809 = vmatpush.msrb.mxu2 %v8330_v50  ;;  %v8444_v29 = vsub.f32 %v7541_v16, %v8419_v20  ;;  %v2379_v16 = vsel %vm65_vm0, %v7567_v8, 0 }
  0x8f   :  { %1850 = vmatpush.msrb.mxu3 %v1849_v12  ;;  %1761 = vmatpush.msrb.mxu0 %v1668_v57  ;;  %v8592_v24 = vand.u32 4294901760, %v2379_v16 }
  0x90   :  { %1782 = vmatpush.msrb.mxu1 %v8267_v30  ;;  %1811 = vmatpush.msrb.mxu2 %v8344_v54  ;;  %v2026_v41 = vand.u32 4294901760, %v8444_v29 }
  0x91   :  { %1856 = vmatpush.msrb.mxu3 %v1855_v14  ;;  %1763 = vmatmul.f32.vlgmr.msrb.gmra.mxu0 %v7724_v15 }
  0x92   :  { %1817 = vmatmul.f32.vlgmr.msrb.gmra.mxu2 %v7785_v45  ;;  %1858 = vmatmul.f32.vlgmr.msrb.gmra.mxu3 %v7724_v15  ;;  %v8438_v28 = vpop.f32.mrf.mxu1 }
  0x93   :  { %1784 = vmatpush.msrb.mxu1 %v8284_v36  ;;  %12197 = vst [vmem:[#allocation6_spill] sm:$0xff] %v8438_v28  ;;  %1876 = vmatpush.msra.mxu0 %v8328_v49  ;;  %v8449_v30 = vpop.f32.mrf.mxu2  ;;  %v7536_v36 = vld [vmem:[%s12119_s0 + $0x118] sm:$0xff]  ;;  %v8502_v49 = vsub.f32 %v7542_v25, %v8471_v38  ;;  %v8610_v25 = vsub.f32 %v2379_v16, %v8592_v24 }
  0x94   :  { %1934 = vmatpush.msra.mxu2 %v1835_v56  ;;  %12198 = vst [vmem:[#allocation7_spill] sm:$0xff] %v8449_v30  ;;  %v8451_v32 = vpop.f32.mrf.mxu3  ;;  %1965 = vmatpush.msra.mxu3 %v8299_v40  ;;  %v8490_v47 = vand.u32 4294901760, %v7536_v36 }
  0x95   :  { %12199 = vst [vmem:[#allocation8_spill] sm:$0xff] %v8451_v32  ;;  %1786 = vmatpush.msrb.mxu1 %v8297_v39  ;;  %1879 = vmatpush.msra.mxu0 %v8342_v53  ;;  %v2205_v53 = vand.u32 4294901760, %v8488_v46  ;;  %v2211_v61 = vand.u32 4294901760, %v8502_v49 }
  0x96   :  { %1938 = vmatpush.msra.mxu2 %v1841_v60  ;;  %1967 = vmatpush.msra.mxu3 %v8313_v44  ;;  %v8473_v39 = vpop.f32.mrf.mxu0  ;;  %v8518_v56 = vsub.f32 %v7536_v36, %v8490_v47  ;;  %v8533_v60 = vsub.f32 %v7530_v42, %v8504_v51  ;;  %v7562_v42 = vld [vmem:[%s12119_s0 + $0x1e8] sm:$0xff] }
  0x97   :  { %1788 = vmatmul.f32.vlgmr.msrb.gmra.mxu1 %v7724_v15  ;;  %12200 = vst [vmem:[#allocation9_spill] sm:$0xff] %v8473_v39  ;;  %1882 = vmatpush.msra.mxu0 %v8356_v58  ;;  %v2212_v3 = vsub.f32 %v8502_v49, %v2211_v61 }
  0x98   :  { %1905 = vmatpush.msra.mxu1 %v8299_v40  ;;  %1942 = vmatpush.msra.mxu2 %v1847_v2  ;;  %v2021_v40 = vsub.f32 %v8428_v21, %v2020_v35  ;;  %v2217_v0 = vand.u32 4294901760, %v8518_v56  ;;  %v2223_v4 = vand.u32 4294901760, %v8533_v60 }
  0x99   :  { %1969 = vmatpush.msra.mxu3 %v8330_v50  ;;  %1885 = vmatpush.msra.mxu0 %v8365_v62  ;;  %v2213_v9 = vand.u32 4294901760, %v2212_v3 }
  0x9a   :  { %1907 = vmatpush.msra.mxu1 %v8313_v44  ;;  %1946 = vmatpush.msra.mxu2 %v1853_v6  ;;  %v2027_v44 = vsub.f32 %v8444_v29, %v2026_v41  ;;  %v2022_v57 = vand.u32 4294901760, %v2021_v40  ;;  %v2218_v7 = vsub.f32 %v8518_v56, %v2217_v0  ;;  %v2224_v11 = vsub.f32 %v8533_v60, %v2223_v4 }
  0x9b   :  { %1971 = vmatpush.msra.mxu3 %v8344_v54  ;;  %1888 = vmatmul.f32.vlgmr.msra.gmra.mxu0 %v7742_v23 }
  0x9c   :  { %1948 = vmatmul.f32.vlgmr.msra.gmra.mxu2 %v7724_v15  ;;  %v8511_v52 = vpop.f32.mrf.mxu1  ;;  %1973 = vmatmul.f32.vlgmr.msra.gmra.mxu3 %v7724_v15  ;;  %v2028_v62 = vand.u32 4294901760, %v2027_v44  ;;  %v2219_v14 = vand.u32 4294901760, %v2218_v7  ;;  %v2225_v19 = vand.u32 4294901760, %v2224_v11  ;;  %v7556_v44 = vld [vmem:[%s12119_s0 + $0x1b8] sm:$0xff] }
  0x9d   :  { %12201 = vst [vmem:[#allocation10_spill] sm:$0xff] %v8511_v52  ;;  %1909 = vmatpush.msra.mxu1 %v8330_v50  ;;  %1990 = vmatpush.msrb.mxu0 %v8412_v17  ;;  %v8522_v58 = vpop.f32.mrf.mxu2  ;;  %v8524_v59 = vpop.f32.mrf.mxu3  ;;  %v2033_v50 = vsub.f32 %v8469_v37, %v2032_v48 }
  0x9e   :  { %2061 = vmatpush.msrb.mxu2 %v8428_v21  ;;  %12202 = vst [vmem:[#allocation11_spill] sm:$0xff] %v8522_v58  ;;  %2090 = vmatpush.msrb.mxu3 %v8412_v17 }
  0x9f   :  { %12203 = vst [vmem:[#allocation12_spill] sm:$0xff] %v8524_v59  ;;  %1911 = vmatpush.msra.mxu1 %v8344_v54  ;;  %1992 = vmatpush.msrb.mxu0 %v8419_v20  ;;  %v2206_v54 = vsub.f32 %v8488_v46, %v2205_v53  ;;  %v2034_v2 = vand.u32 4294901760, %v2033_v50 }
  0xa0   :  { %2064 = vmatpush.msrb.mxu2 %v8444_v29  ;;  %2092 = vmatpush.msrb.mxu3 %v8419_v20  ;;  %v8546_v1 = vpop.f32.mrf.mxu0  ;;  %v8601_v29 = vand.u32 4294901760, %v7561_v22 }
  0xa1   :  { %1915 = vmatmul.f32.vlgmr.msra.gmra.mxu1 %v7758_v31  ;;  %12204 = vst [vmem:[#allocation13_spill] sm:$0xff] %v8546_v1  ;;  %1994 = vmatpush.msrb.mxu0 %v8436_v27  ;;  %v2207_v6 = vand.u32 4294901760, %v2206_v54 }
  0xa2   :  { %2023 = vmatpush.msrb.mxu1 %v2022_v57  ;;  %2067 = vmatpush.msrb.mxu2 %v8469_v37  ;;  %v7550_v57 = vld [vmem:[%s12119_s0 + $0x188] sm:$0xff] }
  0xa3   :  { %2094 = vmatpush.msrb.mxu3 %v8436_v27  ;;  %1996 = vmatpush.msrb.mxu0 %v8455_v33  ;;  %v8686_v63 = vand.u32 4294901760, %v7550_v57 }
  0xa4   :  { %2029 = vmatpush.msrb.mxu1 %v2028_v62  ;;  %2070 = vmatpush.msrb.mxu2 %v8485_v43  ;;  %v8672_v62 = vand.u32 4294901760, %v7556_v44 }
  0xa5   :  { %2096 = vmatpush.msrb.mxu3 %v8455_v33  ;;  %2002 = vmatmul.f32.vlgmr.msrb.gmra.mxu0 %v7785_v45  ;;  %v8715_v8 = vsub.f32 %v7550_v57, %v8686_v63 }
  0xa6   :  { %2073 = vmatmul.f32.vlgmr.msrb.gmra.mxu2 %v7742_v23  ;;  %v8566_v10 = vpop.f32.mrf.mxu1  ;;  %2100 = vmatmul.f32.vlgmr.msrb.gmra.mxu3 %v7758_v31  ;;  %v8700_v3 = vsub.f32 %v7556_v44, %v8672_v62 }
  0xa7   :  { %12205 = vst [vmem:[#allocation14_spill] sm:$0xff] %v8566_v10  ;;  %2035 = vmatpush.msrb.mxu1 %v2034_v2  ;;  %2119 = vmatpush.msra.mxu0 %v2020_v35  ;;  %v8575_v12 = vpop.f32.mrf.mxu2  ;;  %v8577_v13 = vpop.f32.mrf.mxu3  ;;  %v2382_v35 = vsel %vm65_vm0, %v7568_v26, 0  ;;  %v2642_v26 = vand.u32 4294901760, %v8715_v8 }
  0xa8   :  { %2175 = vmatpush.msra.mxu2 %v8457_v34  ;;  %12206 = vst [vmem:[#allocation15_spill] sm:$0xff] %v8575_v12  ;;  %2208 = vmatpush.msra.mxu3 %v2207_v6 }
  0xa9   :  { %12207 = vst [vmem:[#allocation16_spill] sm:$0xff] %v8577_v13  ;;  %2041 = vmatpush.msrb.mxu1 %v2040_v5  ;;  %2123 = vmatpush.msra.mxu0 %v2026_v41  ;;  %v8626_v41 = vsub.f32 %v7561_v22, %v8601_v29 }
  0xaa   :  { %2177 = vmatpush.msra.mxu2 %v8471_v38  ;;  %2214 = vmatpush.msra.mxu3 %v2213_v9  ;;  %v8587_v21 = vpop.f32.mrf.mxu0 }
  0xab   :  { %2043 = vmatmul.f32.vlgmr.msrb.gmra.mxu1 %v7724_v15  ;;  %2127 = vmatpush.msra.mxu0 %v2032_v48  ;;  %v8639_v48 = vand.u32 4294901760, %v2382_v35 }
  0xac   :  { %2150 = vmatpush.msra.mxu1 %v8412_v17  ;;  %2179 = vmatpush.msra.mxu2 %v8490_v47  ;;  %v7555_v17 = vld [vmem:[%s12119_s0 + $0x1b0] sm:$0xff] }
  0xad   :  { %2220 = vmatpush.msra.mxu3 %v2219_v14  ;;  %2131 = vmatpush.msra.mxu0 %v2038_v55  ;;  %v8620_v37 = vand.u32 4294901760, %v7555_v17  ;;  %v2636_v14 = vand.u32 4294901760, %v8700_v3 }
  0xae   :  { %2152 = vmatpush.msra.mxu1 %v8419_v20  ;;  %2181 = vmatpush.msra.mxu2 %v8504_v51  ;;  %v7549_v20 = vld [vmem:[%s12119_s0 + $0x180] sm:$0xff] }
  0xaf   :  { %2226 = vmatpush.msra.mxu3 %v2225_v19  ;;  %2133 = vmatmul.f32.vlgmr.msra.gmra.mxu0 %v7724_v15 }
  0xb0   :  { %2187 = vmatmul.f32.vlgmr.msra.gmra.mxu2 %v7785_v45  ;;  %v8616_v36 = vpop.f32.mrf.mxu1  ;;  %2228 = vmatmul.f32.vlgmr.msra.gmra.mxu3 %v7724_v15 }
  0xb1   :  { %2154 = vmatpush.msra.mxu1 %v8436_v27  ;;  %2246 = vmatpush.msrb.mxu0 %v8488_v46  ;;  %v8631_v43 = vpop.f32.mrf.mxu2  ;;  %v8633_v40 = vpop.f32.mrf.mxu3  ;;  %v8637_v27 = vand.u32 4294901760, %v7549_v20  ;;  %v2439_v46 = vand.u32 4294901760, %v8610_v25 }
  0xb2   :  { %2304 = vmatpush.msrb.mxu2 %v2205_v53  ;;  %2335 = vmatpush.msrb.mxu3 %v8457_v34  ;;  %v8653_v53 = vand.u32 4294901760, %v7562_v42 }
  0xb3   :  { %2156 = vmatpush.msra.mxu1 %v8455_v33  ;;  %2249 = vmatpush.msrb.mxu0 %v8502_v49  ;;  %v8651_v33 = vsub.f32 %v7555_v17, %v8620_v37  ;;  %v2445_v49 = vand.u32 4294901760, %v8626_v41  ;;  %v8667_v50 = vsub.f32 %v7549_v20, %v8637_v27 }
  0xb4   :  { %2308 = vmatpush.msrb.mxu2 %v2211_v61  ;;  %2337 = vmatpush.msrb.mxu3 %v8471_v38  ;;  %v8655_v55 = vpop.f32.mrf.mxu0  ;;  %v8670_v61 = vsub.f32 %v2382_v35, %v8639_v48  ;;  %v8684_v54 = vsub.f32 %v7562_v42, %v8653_v53  ;;  %v2637_v35 = vsub.f32 %v8700_v3, %v2636_v14  ;;  %v7569_v42 = vld [vmem:[%s12119_s0 + $0x220] sm:$0x1] }
  0xb5   :  { %2158 = vmatmul.f32.vlgmr.msra.gmra.mxu1 %v7724_v15  ;;  %2252 = vmatpush.msrb.mxu0 %v8518_v56  ;;  %v2451_v56 = vand.u32 4294901760, %v8651_v33  ;;  %v2457_v2 = vand.u32 4294901760, %v8667_v50 }
  0xb6   :  { %2275 = vmatpush.msrb.mxu1 %v8457_v34  ;;  %2312 = vmatpush.msrb.mxu2 %v2217_v0  ;;  %v2440_v34 = vsub.f32 %v8610_v25, %v2439_v46  ;;  %v2630_v7 = vand.u32 4294901760, %v8684_v54 }
  0xb7   :  { %2339 = vmatpush.msrb.mxu3 %v8490_v47  ;;  %2255 = vmatpush.msrb.mxu0 %v8533_v60  ;;  %v2624_v60 = vand.u32 4294901760, %v8670_v61  ;;  %v2458_v11 = vsub.f32 %v8667_v50, %v2457_v2 }
  0xb8   :  { %2277 = vmatpush.msrb.mxu1 %v8471_v38  ;;  %2316 = vmatpush.msrb.mxu2 %v2223_v4  ;;  %v2446_v38 = vsub.f32 %v8626_v41, %v2445_v49  ;;  %v2441_v4 = vand.u32 4294901760, %v2440_v34  ;;  %v2631_v22 = vsub.f32 %v8684_v54, %v2630_v7  ;;  %v2643_v34 = vsub.f32 %v8715_v8, %v2642_v26 }
  0xb9   :  { %2341 = vmatpush.msrb.mxu3 %v8504_v51  ;;  %2258 = vmatmul.f32.vlgmr.msrb.gmra.mxu0 %v7742_v23  ;;  %v2459_v20 = vand.u32 4294901760, %v2458_v11 }
  0xba   :  { %2318 = vmatmul.f32.vlgmr.msrb.gmra.mxu2 %v7724_v15  ;;  %v8693_v0 = vpop.f32.mrf.mxu1  ;;  %2343 = vmatmul.f32.vlgmr.msrb.gmra.mxu3 %v7724_v15  ;;  %v2447_v9 = vand.u32 4294901760, %v2446_v38  ;;  %v2632_v57 = vand.u32 4294901760, %v2631_v22  ;;  %v7564_v22 = vld [vmem:[%s12119_s0 + $0x1f8] sm:$0xff] }
  0xbb   :  { %2279 = vmatpush.msrb.mxu1 %v8490_v47  ;;  %2409 = vmatpush.msra.mxu0 %v8592_v24  ;;  %v8704_v6 = vpop.f32.mrf.mxu2  ;;  %v8706_v5 = vpop.f32.mrf.mxu3  ;;  %v2452_v47 = vsub.f32 %v8651_v33, %v2451_v56 }
  0xbc   :  { %2480 = vmatpush.msra.mxu2 %v8610_v25  ;;  %2509 = vmatpush.msra.mxu3 %v8592_v24  ;;  %v2644_v25 = vand.u32 4294901760, %v2643_v34 }
  0xbd   :  { %2281 = vmatpush.msrb.mxu1 %v8504_v51  ;;  %2411 = vmatpush.msra.mxu0 %v8601_v29  ;;  %v2625_v51 = vsub.f32 %v8670_v61, %v2624_v60  ;;  %v2453_v19 = vand.u32 4294901760, %v2452_v47  ;;  %v2638_v47 = vand.u32 4294901760, %v2637_v35 }
  0xbe   :  { %2483 = vmatpush.msra.mxu2 %v8626_v41  ;;  %2511 = vmatpush.msra.mxu3 %v8601_v29  ;;  %v8728_v16 = vpop.f32.mrf.mxu0  ;;  %v7570_v41 = vld [vmem:[%s12119_s0 + $0x228] sm:$0x1] }
  0xbf   :  { %2285 = vmatmul.f32.vlgmr.msrb.gmra.mxu1 %v7758_v31  ;;  %2413 = vmatpush.msra.mxu0 %v8620_v37  ;;  %v2626_v17 = vand.u32 4294901760, %v2625_v51 }
  0xc0   :  { %2442 = vmatpush.msra.mxu1 %v2441_v4  ;;  %2486 = vmatpush.msra.mxu2 %v8651_v33 }
  0xc1   :  { %2513 = vmatpush.msra.mxu3 %v8620_v37  ;;  %2415 = vmatpush.msra.mxu0 %v8637_v27 }
  0xc2   :  { %2448 = vmatpush.msra.mxu1 %v2447_v9  ;;  %2489 = vmatpush.msra.mxu2 %v8667_v50  ;;  %v2385_v9 = vsel %vm65_vm0, %v7569_v42, 0  ;;  %v2388_v50 = vsel %vm65_vm0, %v7570_v41, 0  ;;  %v8835_v42 = vand.u32 4294901760, %v7564_v22 }
  0xc3   :  { %2515 = vmatpush.msra.mxu3 %v8637_v27  ;;  %2421 = vmatmul.f32.vlgmr.msra.gmra.mxu0 %v7785_v45  ;;  %v8774_v11 = vand.u32 4294901760, %v2385_v9  ;;  %v8821_v35 = vand.u32 4294901760, %v2388_v50 }
  0xc4   :  { %2492 = vmatmul.f32.vlgmr.msra.gmra.mxu2 %v7742_v23  ;;  %v8748_v44 = vpop.f32.mrf.mxu1  ;;  %2519 = vmatmul.f32.vlgmr.msra.gmra.mxu3 %v7758_v31 }
  0xc5   :  { %2454 = vmatpush.msra.mxu1 %v2453_v19  ;;  %2538 = vmatpush.msrb.mxu0 %v2439_v46  ;;  %v8757_v38 = vpop.f32.mrf.mxu2  ;;  %v8759_v4 = vpop.f32.mrf.mxu3  ;;  %v7563_v46 = vld [vmem:[%s12119_s0 + $0x1f0] sm:$0xff]  ;;  %v8792_v33 = vsub.f32 %v2385_v9, %v8774_v11 }
  0xc6   :  { %2594 = vmatpush.msrb.mxu2 %v8639_v48  ;;  %2627 = vmatpush.msrb.mxu3 %v2626_v17 }
  0xc7   :  { %2460 = vmatpush.msra.mxu1 %v2459_v20  ;;  %2542 = vmatpush.msrb.mxu0 %v2445_v49  ;;  %v8783_v49 = vand.u32 4294901760, %v7563_v46 }
  0xc8   :  { %2596 = vmatpush.msrb.mxu2 %v8653_v53  ;;  %2633 = vmatpush.msrb.mxu3 %v2632_v57  ;;  %v8769_v51 = vpop.f32.mrf.mxu0 }
  0xc9   :  { %2462 = vmatmul.f32.vlgmr.msra.gmra.mxu1 %v7724_v15  ;;  %2546 = vmatpush.msrb.mxu0 %v2451_v56  ;;  %v8808_v19 = vsub.f32 %v7563_v46, %v8783_v49 }
  0xca   :  { %2569 = vmatpush.msrb.mxu1 %v8592_v24  ;;  %2598 = vmatpush.msrb.mxu2 %v8672_v62  ;;  %v7557_v24 = vld [vmem:[%s12119_s0 + $0x1c0] sm:$0xff] }
  0xcb   :  { %2639 = vmatpush.msrb.mxu3 %v2638_v47  ;;  %2550 = vmatpush.msrb.mxu0 %v2457_v2  ;;  %v8802_v2 = vand.u32 4294901760, %v7557_v24  ;;  %v8852_v47 = vsub.f32 %v2388_v50, %v8821_v35 }
  0xcc   :  { %2571 = vmatpush.msrb.mxu1 %v8601_v29  ;;  %2600 = vmatpush.msrb.mxu2 %v8686_v63  ;;  %v7551_v29 = vld [vmem:[%s12119_s0 + $0x190] sm:$0xff] }
  0xcd   :  { %2645 = vmatpush.msrb.mxu3 %v2644_v25  ;;  %2552 = vmatmul.f32.vlgmr.msrb.gmra.mxu0 %v7724_v15 }
  0xce   :  { %2606 = vmatmul.f32.vlgmr.msrb.gmra.mxu2 %v7785_v45  ;;  %v8798_v56 = vpop.f32.mrf.mxu1  ;;  %2647 = vmatmul.f32.vlgmr.msrb.gmra.mxu3 %v7724_v15 }
  0xcf   :  { %2573 = vmatpush.msrb.mxu1 %v8620_v37  ;;  %2665 = vmatpush.msra.mxu0 %v8670_v61  ;;  %v8813_v17 = vpop.f32.mrf.mxu2  ;;  %v8815_v20 = vpop.f32.mrf.mxu3  ;;  %v8819_v37 = vand.u32 4294901760, %v7551_v29  ;;  %v12133_v61 = vand.u32 4294901760, %v8792_v33 }
  0xd0   :  { %2723 = vmatpush.msra.mxu2 %v2624_v60  ;;  %12208 = vst [vmem:[#allocation17_spill] sm:$0xff] %v8813_v17  ;;  %2754 = vmatpush.msra.mxu3 %v8639_v48  ;;  %v7558_v60 = vld [vmem:[%s12119_s0 + $0x1c8] sm:$0xff] }
  0xd1   :  { %12209 = vst [vmem:[#allocation18_spill] sm:$0xff] %v8815_v20  ;;  %2575 = vmatpush.msrb.mxu1 %v8637_v27  ;;  %2668 = vmatpush.msra.mxu0 %v8684_v54  ;;  %v8833_v27 = vsub.f32 %v7557_v24, %v8802_v2  ;;  %v12131_v54 = vand.u32 4294901760, %v8808_v19  ;;  %v8849_v34 = vsub.f32 %v7551_v29, %v8819_v37  ;;  %v8854_v9 = vand.u32 4294901760, %v7558_v60 }
  0xd2   :  { %2727 = vmatpush.msra.mxu2 %v2630_v7  ;;  %2756 = vmatpush.msra.mxu3 %v8653_v53  ;;  %v8837_v57 = vpop.f32.mrf.mxu0  ;;  %v7552_v7 = vld [vmem:[%s12119_s0 + $0x198] sm:$0xff] }
  0xd3   :  { %2577 = vmatmul.f32.vlgmr.msrb.gmra.mxu1 %v7724_v15  ;;  %12210 = vst [vmem:[#allocation19_spill] sm:$0xff] %v8837_v57  ;;  %2671 = vmatpush.msra.mxu0 %v8700_v3  ;;  %v12130_v3 = vand.u32 4294901760, %v8833_v27  ;;  %v8868_v25 = vand.u32 4294901760, %v7552_v7  ;;  %v8882_v41 = vsub.f32 %v7558_v60, %v8854_v9 }
  0xd4   :  { %2694 = vmatpush.msra.mxu1 %v8639_v48  ;;  %2731 = vmatpush.msra.mxu2 %v2636_v14  ;;  %v2810_v48 = vsub.f32 %v8792_v33, %v12133_v61  ;;  %v8866_v14 = vsub.f32 %v7564_v22, %v8835_v42 }
  0xd5   :  { %2758 = vmatpush.msra.mxu3 %v8672_v62  ;;  %2674 = vmatpush.msra.mxu0 %v8715_v8  ;;  %v12132_v8 = vand.u32 4294901760, %v8852_v47  ;;  %v8897_v60 = vsub.f32 %v7552_v7, %v8868_v25  ;;  %v12136_v7 = vand.u32 4294901760, %v8882_v41 }
  0xd6   :  { %2696 = vmatpush.msra.mxu1 %v8653_v53  ;;  %2735 = vmatpush.msra.mxu2 %v2642_v26  ;;  %v2816_v53 = vsub.f32 %v8808_v19, %v12131_v54  ;;  %v12134_v26 = vand.u32 4294901760, %v8849_v34  ;;  %v2811_v24 = vand.u32 4294901760, %v2810_v48  ;;  %v12135_v22 = vand.u32 4294901760, %v8866_v14 }
  0xd7   :  { %2760 = vmatpush.msra.mxu3 %v8686_v63  ;;  %2677 = vmatmul.f32.vlgmr.msra.gmra.mxu0 %v7742_v23  ;;  %v12137_v61 = vand.u32 4294901760, %v8897_v60  ;;  %v3007_v13 = vsub.f32 %v8882_v41, %v12136_v7 }
  0xd8   :  { %2737 = vmatmul.f32.vlgmr.msra.gmra.mxu2 %v7724_v15  ;;  %v8875_v46 = vpop.f32.mrf.mxu1  ;;  %2762 = vmatmul.f32.vlgmr.msra.gmra.mxu3 %v7724_v15  ;;  %v2817_v48 = vand.u32 4294901760, %v2816_v53 }
  0xd9   :  { %12211 = vst [vmem:[#allocation20_spill] sm:$0xff] %v8875_v46  ;;  %2698 = vmatpush.msra.mxu1 %v8672_v62  ;;  %2779 = vmatpush.msrb.mxu0 %v8774_v11  ;;  %v8886_v29 = vpop.f32.mrf.mxu2  ;;  %v8888_v50 = vpop.f32.mrf.mxu3  ;;  %v2822_v62 = vsub.f32 %v8833_v27, %v12130_v3  ;;  %v2828_v3 = vsub.f32 %v8849_v34, %v12134_v26  ;;  %v3008_v10 = vand.u32 4294901760, %v3007_v13 }
  0xda   :  { %2850 = vmatpush.msrb.mxu2 %v8792_v33  ;;  %12212 = vst [vmem:[#allocation21_spill] sm:$0xff] %v8886_v29  ;;  %2879 = vmatpush.msrb.mxu3 %v8774_v11 }
  0xdb   :  { %12213 = vst [vmem:[#allocation22_spill] sm:$0xff] %v8888_v50  ;;  %2700 = vmatpush.msra.mxu1 %v8686_v63  ;;  %2781 = vmatpush.msrb.mxu0 %v8783_v49  ;;  %v2995_v63 = vsub.f32 %v8852_v47, %v12132_v8  ;;  %v2823_v53 = vand.u32 4294901760, %v2822_v62  ;;  %v3001_v8 = vsub.f32 %v8866_v14, %v12135_v22  ;;  %v7571_v62 = vld [vmem:[%s12119_s0 + $0x230] sm:$0x1] }
  0xdc   :  { %2853 = vmatpush.msrb.mxu2 %v8808_v19  ;;  %2881 = vmatpush.msrb.mxu3 %v8783_v49  ;;  %v8910_v54 = vpop.f32.mrf.mxu0  ;;  %v2391_v1 = vsel %vm65_vm0, %v7571_v62, 0 }
  0xdd   :  { %2704 = vmatmul.f32.vlgmr.msra.gmra.mxu1 %v7758_v31  ;;  %12214 = vst [vmem:[#allocation23_spill] sm:$0xff] %v8910_v54  ;;  %2783 = vmatpush.msrb.mxu0 %v8802_v2  ;;  %v2996_v26 = vand.u32 4294901760, %v2995_v63  ;;  %v12216_v63 = vand.u32 4294901760, %v8792_v33  ;;  %v8956_v13 = vand.u32 4294901760, %v2391_v1 }
  0xde   :  { %2812 = vmatpush.msrb.mxu1 %v2811_v24  ;;  %2856 = vmatpush.msrb.mxu2 %v8833_v27  ;;  %v2829_v24 = vand.u32 4294901760, %v2828_v3  ;;  %v3013_v3 = vsub.f32 %v8897_v60, %v12137_v61 }
  0xdf   :  { %2883 = vmatpush.msrb.mxu3 %v8802_v2  ;;  %2785 = vmatpush.msrb.mxu0 %v8819_v37 }
  0xe0   :  { %2818 = vmatpush.msrb.mxu1 %v2817_v48  ;;  %2859 = vmatpush.msrb.mxu2 %v8849_v34  ;;  %v3002_v48 = vand.u32 4294901760, %v3001_v8  ;;  %v12219_v8 = vand.u32 4294901760, %v8808_v19  ;;  %v3014_v33 = vand.u32 4294901760, %v3013_v3  ;;  %v7572_v19 = vld [vmem:[%s12119_s0 + $0x238] sm:$0x1]  ;;  %v12224_v3 = vand.u32 4294901760, %v8852_v47 }
  0xe1   :  { %2885 = vmatpush.msrb.mxu3 %v8819_v37  ;;  %2791 = vmatmul.f32.vlgmr.msrb.gmra.mxu0 %v7785_v45 }
  0xe2   :  { %2862 = vmatmul.f32.vlgmr.msrb.gmra.mxu2 %v7742_v23  ;;  %v8930_v22 = vpop.f32.mrf.mxu1  ;;  %2889 = vmatmul.f32.vlgmr.msrb.gmra.mxu3 %v7758_v31 }
  0xe3   :  { %12215 = vst [vmem:[#allocation24_spill] sm:$0xff] %v8930_v22  ;;  %2824 = vmatpush.msrb.mxu1 %v2823_v53  ;;  %2908 = vmatpush.msra.mxu0 %v12216_v63  ;;  %v8939_v7 = vpop.f32.mrf.mxu2  ;;  %v8941_v12 = vpop.f32.mrf.mxu3  ;;  %v7565_v53 = vld [vmem:[%s12119_s0 + $0x200] sm:$0xff] }
  0xe4   :  { %2964 = vmatpush.msra.mxu2 %v8821_v35  ;;  %12217 = vst [vmem:[#allocation25_spill] sm:$0xff] %v8939_v7  ;;  %2997 = vmatpush.msra.mxu3 %v2996_v26  ;;  %v12221_v26 = vand.u32 4294901760, %v8833_v27  ;;  %v8965_v62 = vand.u32 4294901760, %v7565_v53  ;;  %v2394_v27 = vsel %vm65_vm0, %v7572_v19, 0 }
  0xe5   :  { %12218 = vst [vmem:[#allocation26_spill] sm:$0xff] %v8941_v12  ;;  %2830 = vmatpush.msrb.mxu1 %v2829_v24  ;;  %2912 = vmatpush.msra.mxu0 %v12219_v8  ;;  %v12222_v24 = vand.u32 4294901760, %v8849_v34  ;;  %v7566_v8 = vld [vmem:[%s12119_s0 + $0x208] sm:$0xff]  ;;  %v9003_v19 = vand.u32 4294901760, %v2394_v27 }
  0xe6   :  { %2966 = vmatpush.msra.mxu2 %v8835_v42  ;;  %3003 = vmatpush.msra.mxu3 %v3002_v48  ;;  %v8951_v63 = vpop.f32.mrf.mxu0 }
  0xe7   :  { %2832 = vmatmul.f32.vlgmr.msrb.gmra.mxu1 %v7724_v15  ;;  %12220 = vst [vmem:[#allocation27_spill] sm:$0xff] %v8951_v63  ;;  %2916 = vmatpush.msra.mxu0 %v12221_v26  ;;  %v9034_v59 = vsub.f32 %v2394_v27, %v9003_v19 }
  0xe8   :  { %2939 = vmatpush.msra.mxu1 %v8774_v11  ;;  %2968 = vmatpush.msra.mxu2 %v8854_v9  ;;  %v7559_v11 = vld [vmem:[%s12119_s0 + $0x1d0] sm:$0xff] }
  0xe9   :  { %3009 = vmatpush.msra.mxu3 %v3008_v10  ;;  %2920 = vmatpush.msra.mxu0 %v12222_v24  ;;  %v8974_v10 = vsub.f32 %v2391_v1, %v8956_v13  ;;  %v8984_v48 = vand.u32 4294901760, %v7559_v11  ;;  %v8990_v1 = vsub.f32 %v7565_v53, %v8965_v62  ;;  %v7560_v24 = vld [vmem:[%s12119_s0 + $0x1d8] sm:$0xff]  ;;  %v12229_v53 = vand.u32 4294901760, %v8882_v41 }
  0xea   :  { %2941 = vmatpush.msra.mxu1 %v8783_v49  ;;  %2970 = vmatpush.msra.mxu2 %v8868_v25  ;;  %v7553_v49 = vld [vmem:[%s12119_s0 + $0x1a0] sm:$0xff]  ;;  %v9036_v58 = vand.u32 4294901760, %v7560_v24 }
  0xeb   :  { %3015 = vmatpush.msra.mxu3 %v3014_v33  ;;  %2922 = vmatmul.f32.vlgmr.msra.gmra.mxu0 %v7724_v15 }
  0xec   :  { %2976 = vmatmul.f32.vlgmr.msra.gmra.mxu2 %v7785_v45  ;;  %v8980_v34 = vpop.f32.mrf.mxu1  ;;  %3017 = vmatmul.f32.vlgmr.msra.gmra.mxu3 %v7724_v15 }
  0xed   :  { %12223 = vst [vmem:[#allocation28_spill] sm:$0xff] %v8980_v34  ;;  %2943 = vmatpush.msra.mxu1 %v8802_v2  ;;  %3035 = vmatpush.msrb.mxu0 %v8852_v47  ;;  %v8995_v33 = vpop.f32.mrf.mxu2  ;;  %v8997_v26 = vpop.f32.mrf.mxu3  ;;  %v9001_v2 = vand.u32 4294901760, %v7553_v49  ;;  %v12227_v47 = vand.u32 4294901760, %v8866_v14 }
  0xee   :  { %3093 = vmatpush.msrb.mxu2 %v12224_v3  ;;  %12225 = vst [vmem:[#allocation29_spill] sm:$0xff] %v8995_v33  ;;  %3124 = vmatpush.msrb.mxu3 %v8821_v35  ;;  %v9017_v3 = vand.u32 4294901760, %v7566_v8 }
  0xef   :  { %12226 = vst [vmem:[#allocation30_spill] sm:$0xff] %v8997_v26  ;;  %2945 = vmatpush.msra.mxu1 %v8819_v37  ;;  %3038 = vmatpush.msrb.mxu0 %v8866_v14  ;;  %v9015_v37 = vsub.f32 %v7559_v11, %v8984_v48  ;;  %v9031_v11 = vsub.f32 %v7553_v49, %v9001_v2 }
  0xf0   :  { %3097 = vmatpush.msrb.mxu2 %v12227_v47  ;;  %3126 = vmatpush.msrb.mxu3 %v8835_v42  ;;  %v9019_v61 = vpop.f32.mrf.mxu0  ;;  %v7554_v47 = vld [vmem:[%s12119_s0 + $0x1a8] sm:$0xff]  ;;  %v9048_v27 = vsub.f32 %v7566_v8, %v9017_v3 }
  0xf1   :  { %2947 = vmatmul.f32.vlgmr.msra.gmra.mxu1 %v7724_v15  ;;  %12228 = vst [vmem:[#allocation31_spill] sm:$0xff] %v9019_v61  ;;  %3041 = vmatpush.msrb.mxu0 %v8882_v41  ;;  %v12231_v41 = vand.u32 4294901760, %v8897_v60 }
  0xf2   :  { %3064 = vmatpush.msrb.mxu1 %v8821_v35  ;;  %3101 = vmatpush.msrb.mxu2 %v12229_v53  ;;  %v12230_v35 = vand.u32 4294901760, %v8974_v10  ;;  %v9050_v53 = vand.u32 4294901760, %v7554_v47 }
  0xf3   :  { %3128 = vmatpush.msrb.mxu3 %v8854_v9  ;;  %3044 = vmatpush.msrb.mxu0 %v8897_v60 }
  0xf4   :  { %3066 = vmatpush.msrb.mxu1 %v8835_v42  ;;  %v3180_v14 = vsub.f32 %v8974_v10, %v12230_v35  ;;  %3105 = vmatpush.msrb.mxu2 %v12231_v41  ;;  %v12232_v42 = vand.u32 4294901760, %v8990_v1  ;;  %v9064_v41 = vsub.f32 %v7560_v24, %v9036_v58  ;;  %v9079_v60 = vsub.f32 %v7554_v47, %v9050_v53 }
  0xf5   :  { %3130 = vmatpush.msrb.mxu3 %v8868_v25  ;;  %3047 = vmatmul.f32.vlgmr.msrb.gmra.mxu0 %v7742_v23 }
  0xf6   :  { %3107 = vmatmul.f32.vlgmr.msrb.gmra.mxu2 %v7724_v15  ;;  %v3186_v35 = vsub.f32 %v8990_v1, %v12232_v42  ;;  %v9057_v52 = vpop.f32.mrf.mxu1  ;;  %3132 = vmatmul.f32.vlgmr.msrb.gmra.mxu3 %v7724_v15  ;;  %v3181_v49 = vand.u32 4294901760, %v3180_v14  ;;  %v12138_v47 = vand.u32 4294901760, %v9064_v41  ;;  %v12139_v61 = vand.u32 4294901760, %v9079_v60 }
  0xf7   :  { %12233 = vst [vmem:[#allocation32_spill] sm:$0xff] %v9057_v52  ;;  %3068 = vmatpush.msrb.mxu1 %v8854_v9  ;;  %3149 = vmatpush.msra.mxu0 %v8956_v13  ;;  %v9068_v39 = vpop.f32.mrf.mxu2  ;;  %v9070_v42 = vpop.f32.mrf.mxu3  ;;  %v12236_v9 = vand.u32 4294901760, %v9015_v37  ;;  %v12240_v52 = vand.u32 4294901760, %v9048_v27 }
  0xf8   :  { %3220 = vmatpush.msra.mxu2 %v8974_v10  ;;  %12234 = vst [vmem:[#allocation33_spill] sm:$0xff] %v9068_v39  ;;  %3249 = vmatpush.msra.mxu3 %v8956_v13  ;;  %v3187_v14 = vand.u32 4294901760, %v3186_v35 }
  0xf9   :  { %12235 = vst [vmem:[#allocation34_spill] sm:$0xff] %v9070_v42  ;;  %3070 = vmatpush.msrb.mxu1 %v8868_v25  ;;  %v3192_v8 = vsub.f32 %v9015_v37, %v12236_v9  ;;  %3151 = vmatpush.msra.mxu0 %v8965_v62  ;;  %v12237_v25 = vand.u32 4294901760, %v9034_v59  ;;  %v12238_v9 = vand.u32 4294901760, %v9031_v11 }
  0xfa   :  { %3223 = vmatpush.msra.mxu2 %v8990_v1  ;;  %3251 = vmatpush.msra.mxu3 %v8965_v62  ;;  %v9092_v39 = vpop.f32.mrf.mxu0 }
  0xfb   :  { %3074 = vmatmul.f32.vlgmr.msrb.gmra.mxu1 %v7758_v31  ;;  %v3365_v42 = vsub.f32 %v9034_v59, %v12237_v25  ;;  %v3198_v24 = vsub.f32 %v9031_v11, %v12238_v9  ;;  %12239 = vst [vmem:[#allocation35_spill] sm:$0xff] %v9092_v39  ;;  %3153 = vmatpush.msra.mxu0 %v8984_v48  ;;  %v3193_v35 = vand.u32 4294901760, %v3192_v8 }
  0xfc   :  { %3182 = vmatpush.msra.mxu1 %v3181_v49  ;;  %3226 = vmatpush.msra.mxu2 %v9015_v37  ;;  %v3371_v25 = vsub.f32 %v9048_v27, %v12240_v52  ;;  %v3377_v39 = vsub.f32 %v9064_v41, %v12138_v47  ;;  %v7591_v52 = vld [vmem:[%s12119_s0 + $0x2d0] sm:$0x1] }
  0xfd   :  { %3253 = vmatpush.msra.mxu3 %v8984_v48  ;;  %3155 = vmatpush.msra.mxu0 %v9001_v2  ;;  %v3366_v9 = vand.u32 4294901760, %v3365_v42  ;;  %v3199_v49 = vand.u32 4294901760, %v3198_v24  ;;  %v3383_v42 = vsub.f32 %v9079_v60, %v12139_v61  ;;  %v12242_v24 = vand.u32 4294901760, %v8974_v10 }
  0xfe   :  { %3188 = vmatpush.msra.mxu1 %v3187_v14  ;;  %3229 = vmatpush.msra.mxu2 %v9031_v11  ;;  %v3372_v14 = vand.u32 4294901760, %v3371_v25  ;;  %v3538_v26 = vsel %vm65_vm0, %v7591_v52, 0  ;;  %v7585_v25 = vld [vmem:[%s12119_s0 + $0x2a0] sm:$0xff] }
  0xff   :  { %3255 = vmatpush.msra.mxu3 %v9001_v2  ;;  %3161 = vmatmul.f32.vlgmr.msra.gmra.mxu0 %v7785_v45  ;;  %v3384_v10 = vand.u32 4294901760, %v3383_v42  ;;  %v9147_v52 = vand.u32 4294901760, %v7585_v25  ;;  %v12248_v42 = vand.u32 4294901760, %v9034_v59 }
 0x100   :  { %3232 = vmatmul.f32.vlgmr.msra.gmra.mxu2 %v7742_v23  ;;  %v9112_v8 = vpop.f32.mrf.mxu1  ;;  %3259 = vmatmul.f32.vlgmr.msra.gmra.mxu3 %v7758_v31 }
 0x101   :  { %12241 = vst [vmem:[#allocation36_spill] sm:$0xff] %v9112_v8  ;;  %3194 = vmatpush.msra.mxu1 %v3193_v35  ;;  %3278 = vmatpush.msrb.mxu0 %v12242_v24  ;;  %v9121_v47 = vpop.f32.mrf.mxu2  ;;  %v9123_v32 = vpop.f32.mrf.mxu3  ;;  %v3378_v8 = vand.u32 4294901760, %v3377_v39  ;;  %v12245_v35 = vand.u32 4294901760, %v8990_v1  ;;  %v9138_v39 = vand.u32 4294901760, %v3538_v26  ;;  %v7592_v1 = vld [vmem:[%s12119_s0 + $0x2d8] sm:$0x1] }
 0x102   :  { %3334 = vmatpush.msrb.mxu2 %v9003_v19  ;;  %12243 = vst [vmem:[#allocation37_spill] sm:$0xff] %v9121_v47  ;;  %3367 = vmatpush.msrb.mxu3 %v3366_v9  ;;  %v12246_v9 = vand.u32 4294901760, %v9015_v37 }
 0x103   :  { %12244 = vst [vmem:[#allocation38_spill] sm:$0xff] %v9123_v32  ;;  %3200 = vmatpush.msra.mxu1 %v3199_v49  ;;  %3282 = vmatpush.msrb.mxu0 %v12245_v35  ;;  %v12247_v49 = vand.u32 4294901760, %v9031_v11  ;;  %v9156_v37 = vsub.f32 %v3538_v26, %v9138_v39  ;;  %v3541_v11 = vsel %vm65_vm0, %v7592_v1, 0  ;;  %v9172_v26 = vsub.f32 %v7585_v25, %v9147_v52  ;;  %v7586_v35 = vld [vmem:[%s12119_s0 + $0x2a8] sm:$0xff] }
 0x104   :  { %3336 = vmatpush.msrb.mxu2 %v9017_v3  ;;  %3373 = vmatpush.msrb.mxu3 %v3372_v14  ;;  %v9133_v24 = vpop.f32.mrf.mxu0  ;;  %v9185_v1 = vand.u32 4294901760, %v3541_v11  ;;  %v12250_v25 = vand.u32 4294901760, %v9064_v41 }
 0x105   :  { %3202 = vmatmul.f32.vlgmr.msra.gmra.mxu1 %v7724_v15  ;;  %3286 = vmatpush.msrb.mxu0 %v12246_v9 }
 0x106   :  { %3309 = vmatpush.msrb.mxu1 %v8956_v13  ;;  %3338 = vmatpush.msrb.mxu2 %v9036_v58  ;;  %v7579_v13 = vld [vmem:[%s12119_s0 + $0x270] sm:$0xff]  ;;  %v9216_v32 = vsub.f32 %v3541_v11, %v9185_v1 }
 0x107   :  { %3379 = vmatpush.msrb.mxu3 %v3378_v8  ;;  %3290 = vmatpush.msrb.mxu0 %v12247_v49  ;;  %v9166_v14 = vand.u32 4294901760, %v7579_v13  ;;  %v7580_v49 = vld [vmem:[%s12119_s0 + $0x278] sm:$0xff] }
 0x108   :  { %3311 = vmatpush.msrb.mxu1 %v8965_v62  ;;  %3340 = vmatpush.msrb.mxu2 %v9050_v53  ;;  %v7573_v62 = vld [vmem:[%s12119_s0 + $0x240] sm:$0xff]  ;;  %v9218_v47 = vand.u32 4294901760, %v7580_v49 }
 0x109   :  { %3385 = vmatpush.msrb.mxu3 %v3384_v10  ;;  %3292 = vmatmul.f32.vlgmr.msrb.gmra.mxu0 %v7724_v15 }
 0x10a   :  { %3346 = vmatmul.f32.vlgmr.msrb.gmra.mxu2 %v7785_v45  ;;  %v9162_v8 = vpop.f32.mrf.mxu1  ;;  %3387 = vmatmul.f32.vlgmr.msrb.gmra.mxu3 %v7724_v15 }
 0x10b   :  { %3313 = vmatpush.msrb.mxu1 %v8984_v48  ;;  %3405 = vmatpush.msra.mxu0 %v9034_v59  ;;  %v9177_v10 = vpop.f32.mrf.mxu2  ;;  %v9179_v9 = vpop.f32.mrf.mxu3  ;;  %v9183_v48 = vand.u32 4294901760, %v7573_v62  ;;  %v12249_v59 = vand.u32 4294901760, %v9048_v27 }
 0x10c   :  { %3463 = vmatpush.msra.mxu2 %v12248_v42  ;;  %3494 = vmatpush.msra.mxu3 %v9003_v19  ;;  %v9199_v42 = vand.u32 4294901760, %v7586_v35 }
 0x10d   :  { %3315 = vmatpush.msrb.mxu1 %v9001_v2  ;;  %3408 = vmatpush.msra.mxu0 %v9048_v27  ;;  %v9197_v2 = vsub.f32 %v7579_v13, %v9166_v14  ;;  %v9213_v13 = vsub.f32 %v7573_v62, %v9183_v48 }
 0x10e   :  { %3467 = vmatpush.msra.mxu2 %v12249_v59  ;;  %3496 = vmatpush.msra.mxu3 %v9017_v3  ;;  %v9201_v61 = vpop.f32.mrf.mxu0  ;;  %v7574_v59 = vld [vmem:[%s12119_s0 + $0x248] sm:$0xff]  ;;  %v9230_v11 = vsub.f32 %v7586_v35, %v9199_v42 }
 0x10f   :  { %3317 = vmatmul.f32.vlgmr.msrb.gmra.mxu1 %v7724_v15  ;;  %3411 = vmatpush.msra.mxu0 %v9064_v41  ;;  %v12252_v41 = vand.u32 4294901760, %v9079_v60 }
 0x110   :  { %3434 = vmatpush.msra.mxu1 %v9003_v19  ;;  %3471 = vmatpush.msra.mxu2 %v12250_v25  ;;  %v12251_v19 = vand.u32 4294901760, %v9156_v37  ;;  %v9232_v25 = vand.u32 4294901760, %v7574_v59  ;;  %v12257_v34 = vand.u32 4294901760, %v9230_v11 }
 0x111   :  { %3498 = vmatpush.msra.mxu3 %v9036_v58  ;;  %3414 = vmatpush.msra.mxu0 %v9079_v60 }
 0x112   :  { %3436 = vmatpush.msra.mxu1 %v9017_v3  ;;  %v3599_v27 = vsub.f32 %v9156_v37, %v12251_v19  ;;  %3475 = vmatpush.msra.mxu2 %v12252_v41  ;;  %v12253_v3 = vand.u32 4294901760, %v9172_v26  ;;  %v9246_v41 = vsub.f32 %v7580_v49, %v9218_v47  ;;  %v9261_v60 = vsub.f32 %v7574_v59, %v9232_v25 }
 0x113   :  { %3500 = vmatpush.msra.mxu3 %v9050_v53  ;;  %3417 = vmatmul.f32.vlgmr.msra.gmra.mxu0 %v7742_v23 }
 0x114   :  { %3477 = vmatmul.f32.vlgmr.msra.gmra.mxu2 %v7724_v15  ;;  %v3605_v19 = vsub.f32 %v9172_v26, %v12253_v3  ;;  %v9239_v30 = vpop.f32.mrf.mxu1  ;;  %3502 = vmatmul.f32.vlgmr.msra.gmra.mxu3 %v7724_v15  ;;  %v3600_v62 = vand.u32 4294901760, %v3599_v27  ;;  %v12140_v59 = vand.u32 4294901760, %v9246_v41  ;;  %v12141_v63 = vand.u32 4294901760, %v9261_v60 }
 0x115   :  { %3438 = vmatpush.msra.mxu1 %v9036_v58  ;;  %3568 = vmatpush.msrb.mxu0 %v9138_v39  ;;  %v9250_v33 = vpop.f32.mrf.mxu2  ;;  %v9252_v3 = vpop.f32.mrf.mxu3  ;;  %v12254_v58 = vand.u32 4294901760, %v9197_v2 }
 0x116   :  { %3639 = vmatpush.msrb.mxu2 %v9156_v37  ;;  %3668 = vmatpush.msrb.mxu3 %v9138_v39  ;;  %v3606_v27 = vand.u32 4294901760, %v3605_v19  ;;  %v3796_v12 = vsub.f32 %v9246_v41, %v12140_v59 }
 0x117   :  { %3440 = vmatpush.msra.mxu1 %v9050_v53  ;;  %v3611_v35 = vsub.f32 %v9197_v2, %v12254_v58  ;;  %3570 = vmatpush.msrb.mxu0 %v9147_v52  ;;  %v12255_v53 = vand.u32 4294901760, %v9216_v32  ;;  %v12256_v58 = vand.u32 4294901760, %v9213_v13 }
 0x118   :  { %3642 = vmatpush.msrb.mxu2 %v9172_v26  ;;  %3670 = vmatpush.msrb.mxu3 %v9147_v52  ;;  %v9274_v18 = vpop.f32.mrf.mxu0  ;;  %v3797_v22 = vand.u32 4294901760, %v3796_v12 }
 0x119   :  { %3444 = vmatmul.f32.vlgmr.msra.gmra.mxu1 %v7758_v31  ;;  %v3784_v28 = vsub.f32 %v9216_v32, %v12255_v53  ;;  %v3617_v49 = vsub.f32 %v9213_v13, %v12256_v58  ;;  %3572 = vmatpush.msrb.mxu0 %v9166_v14  ;;  %v3612_v19 = vand.u32 4294901760, %v3611_v35  ;;  %v3790_v53 = vsub.f32 %v9230_v11, %v12257_v34  ;;  %v7593_v34 = vld [vmem:[%s12119_s0 + $0x2e0] sm:$0x1] }
 0x11a   :  { %3601 = vmatpush.msrb.mxu1 %v3600_v62  ;;  %3645 = vmatpush.msrb.mxu2 %v9197_v2  ;;  %v3544_v46 = vsel %vm65_vm0, %v7593_v34, 0 }
 0x11b   :  { %3672 = vmatpush.msrb.mxu3 %v9166_v14  ;;  %3574 = vmatpush.msrb.mxu0 %v9183_v48  ;;  %v3785_v58 = vand.u32 4294901760, %v3784_v28  ;;  %v3618_v62 = vand.u32 4294901760, %v3617_v49  ;;  %v3802_v28 = vsub.f32 %v9261_v60, %v12141_v63  ;;  %v12258_v49 = vand.u32 4294901760, %v9156_v37 }
 0x11c   :  { %3607 = vmatpush.msrb.mxu1 %v3606_v27  ;;  %3648 = vmatpush.msrb.mxu2 %v9213_v13  ;;  %v3791_v27 = vand.u32 4294901760, %v3790_v53  ;;  %v7587_v53 = vld [vmem:[%s12119_s0 + $0x2b0] sm:$0xff]  ;;  %v9320_v12 = vand.u32 4294901760, %v3544_v46  ;;  %v12266_v63 = vand.u32 4294901760, %v9246_v41 }
 0x11d   :  { %3674 = vmatpush.msrb.mxu3 %v9183_v48  ;;  %3580 = vmatmul.f32.vlgmr.msrb.gmra.mxu0 %v7785_v45  ;;  %v3803_v37 = vand.u32 4294901760, %v3802_v28  ;;  %v9329_v34 = vand.u32 4294901760, %v7587_v53 }
 0x11e   :  { %3651 = vmatmul.f32.vlgmr.msrb.gmra.mxu2 %v7742_v23  ;;  %v9294_v35 = vpop.f32.mrf.mxu1  ;;  %3678 = vmatmul.f32.vlgmr.msrb.gmra.mxu3 %v7758_v31 }
 0x11f   :  { %3613 = vmatpush.msrb.mxu1 %v3612_v19  ;;  %3697 = vmatpush.msra.mxu0 %v12258_v49  ;;  %v9303_v59 = vpop.f32.mrf.mxu2  ;;  %v9305_v7 = vpop.f32.mrf.mxu3  ;;  %v12259_v19 = vand.u32 4294901760, %v9172_v26  ;;  %v7594_v26 = vld [vmem:[%s12119_s0 + $0x2e8] sm:$0x1] }
 0x120   :  { %3753 = vmatpush.msra.mxu2 %v9185_v1  ;;  %3786 = vmatpush.msra.mxu3 %v3785_v58  ;;  %v12260_v58 = vand.u32 4294901760, %v9197_v2  ;;  %v3547_v2 = vsel %vm65_vm0, %v7594_v26, 0 }
 0x121   :  { %3619 = vmatpush.msrb.mxu1 %v3618_v62  ;;  %3701 = vmatpush.msra.mxu0 %v12259_v19  ;;  %v12261_v62 = vand.u32 4294901760, %v9213_v13  ;;  %v9356_v19 = vsub.f32 %v7587_v53, %v9329_v34  ;;  %v7576_v53 = vld [vmem:[%s12119_s0 + $0x258] sm:$0xff] }
 0x122   :  { %3755 = vmatpush.msra.mxu2 %v9199_v42  ;;  %3792 = vmatpush.msra.mxu3 %v3791_v27  ;;  %v9315_v49 = vpop.f32.mrf.mxu0  ;;  %v7575_v27 = vld [vmem:[%s12119_s0 + $0x250] sm:$0xff]  ;;  %v9419_v57 = vand.u32 4294901760, %v7576_v53 }
 0x123   :  { %3621 = vmatmul.f32.vlgmr.msrb.gmra.mxu1 %v7724_v15  ;;  %3705 = vmatpush.msra.mxu0 %v12260_v58  ;;  %v7588_v58 = vld [vmem:[%s12119_s0 + $0x2b8] sm:$0xff]  ;;  %v9371_v26 = vand.u32 4294901760, %v7575_v27 }
 0x124   :  { %3728 = vmatpush.msra.mxu1 %v9138_v39  ;;  %3757 = vmatpush.msra.mxu2 %v9218_v47  ;;  %v7581_v39 = vld [vmem:[%s12119_s0 + $0x280] sm:$0xff] }
 0x125   :  { %3798 = vmatpush.msra.mxu3 %v3797_v22  ;;  %3709 = vmatpush.msra.mxu0 %v12261_v62  ;;  %v9338_v22 = vsub.f32 %v3544_v46, %v9320_v12  ;;  %v12262_v46 = vand.u32 4294901760, %v9216_v32  ;;  %v7582_v62 = vld [vmem:[%s12119_s0 + $0x288] sm:$0xff] }
 0x126   :  { %3730 = vmatpush.msra.mxu1 %v9147_v52  ;;  %3759 = vmatpush.msra.mxu2 %v9232_v25  ;;  %v9345_v52 = vand.u32 4294901760, %v7581_v39 }
 0x127   :  { %3804 = vmatpush.msra.mxu3 %v3803_v37  ;;  %3711 = vmatmul.f32.vlgmr.msra.gmra.mxu0 %v7724_v15 }
 0x128   :  { %3765 = vmatmul.f32.vlgmr.msra.gmra.mxu2 %v7785_v45  ;;  %v9341_v13 = vpop.f32.mrf.mxu1  ;;  %3806 = vmatmul.f32.vlgmr.msra.gmra.mxu3 %v7724_v15 }
 0x129   :  { %3732 = vmatpush.msra.mxu1 %v9166_v14  ;;  %v9350_v28 = vpop.f32.mrf.mxu2  ;;  %3824 = vmatpush.msrb.mxu0 %v9216_v32  ;;  %v9358_v37 = vpop.f32.mrf.mxu3  ;;  %v9362_v14 = vand.u32 4294901760, %v3547_v2  ;;  %v12264_v32 = vand.u32 4294901760, %v9230_v11 }
 0x12a   :  { %3882 = vmatpush.msrb.mxu2 %v12262_v46  ;;  %12263 = vst [vmem:[#allocation39_spill] sm:$0xff] %v9358_v37  ;;  %3913 = vmatpush.msrb.mxu3 %v9185_v1 }
 0x12b   :  { %3734 = vmatpush.msra.mxu1 %v9183_v48  ;;  %3827 = vmatpush.msrb.mxu0 %v9230_v11  ;;  %v9376_v48 = vsub.f32 %v7581_v39, %v9345_v52  ;;  %v9392_v39 = vsub.f32 %v3547_v2, %v9362_v14  ;;  %v12268_v2 = vand.u32 4294901760, %v9261_v60 }
 0x12c   :  { %3886 = vmatpush.msrb.mxu2 %v12264_v32  ;;  %3915 = vmatpush.msrb.mxu3 %v9199_v42  ;;  %v9381_v46 = vpop.f32.mrf.mxu0  ;;  %v9386_v32 = vand.u32 4294901760, %v7588_v58 }
 0x12d   :  { %3736 = vmatmul.f32.vlgmr.msra.gmra.mxu1 %v7724_v15  ;;  %12265 = vst [vmem:[#allocation40_spill] sm:$0xff] %v9381_v46  ;;  %3830 = vmatpush.msrb.mxu0 %v9246_v41  ;;  %v9403_v41 = vsub.f32 %v7575_v27, %v9371_v26 }
 0x12e   :  { %3853 = vmatpush.msrb.mxu1 %v9185_v1  ;;  %3890 = vmatpush.msrb.mxu2 %v12266_v63  ;;  %v12267_v1 = vand.u32 4294901760, %v9338_v22  ;;  %v9405_v63 = vand.u32 4294901760, %v7582_v62  ;;  %v9417_v27 = vsub.f32 %v7588_v58, %v9386_v32 }
 0x12f   :  { %3917 = vmatpush.msrb.mxu3 %v9218_v47  ;;  %3833 = vmatpush.msrb.mxu0 %v9261_v60 }
 0x130   :  { %3855 = vmatpush.msrb.mxu1 %v9199_v42  ;;  %v3969_v11 = vsub.f32 %v9338_v22, %v12267_v1  ;;  %3894 = vmatpush.msrb.mxu2 %v12268_v2  ;;  %v12269_v42 = vand.u32 4294901760, %v9356_v19  ;;  %v9432_v54 = vsub.f32 %v7582_v62, %v9405_v63  ;;  %v9445_v62 = vsub.f32 %v7576_v53, %v9419_v57 }
 0x131   :  { %3919 = vmatpush.msrb.mxu3 %v9232_v25  ;;  %3836 = vmatmul.f32.vlgmr.msrb.gmra.mxu0 %v7742_v23 }
 0x132   :  { %3896 = vmatmul.f32.vlgmr.msrb.gmra.mxu2 %v7724_v15  ;;  %v3975_v1 = vsub.f32 %v9356_v19, %v12269_v42  ;;  %v9421_v50 = vpop.f32.mrf.mxu1  ;;  %3921 = vmatmul.f32.vlgmr.msrb.gmra.mxu3 %v7724_v15  ;;  %v3970_v42 = vand.u32 4294901760, %v3969_v11 }
 0x133   :  { %12270 = vst [vmem:[#allocation41_spill] sm:$0xff] %v9421_v50  ;;  %3857 = vmatpush.msrb.mxu1 %v9218_v47  ;;  %v9426_v2 = vpop.f32.mrf.mxu2  ;;  %3938 = vmatpush.msra.mxu0 %v9320_v12  ;;  %v9434_v29 = vpop.f32.mrf.mxu3  ;;  %v12273_v47 = vand.u32 4294901760, %v9376_v48 }
 0x134   :  { %12271 = vst [vmem:[#allocation42_spill] sm:$0xff] %v9426_v2  ;;  %4009 = vmatpush.msra.mxu2 %v9338_v22  ;;  %4038 = vmatpush.msra.mxu3 %v9320_v12  ;;  %v3976_v11 = vand.u32 4294901760, %v3975_v1  ;;  %v12276_v1 = vand.u32 4294901760, %v9403_v41  ;;  %v12282_v2 = vand.u32 4294901760, %v9445_v62 }
 0x135   :  { %12272 = vst [vmem:[#allocation43_spill] sm:$0xff] %v9434_v29  ;;  %3859 = vmatpush.msrb.mxu1 %v9232_v25  ;;  %v3981_v60 = vsub.f32 %v9376_v48, %v12273_v47  ;;  %3940 = vmatpush.msra.mxu0 %v9329_v34  ;;  %v12274_v25 = vand.u32 4294901760, %v9392_v39 }
 0x136   :  { %4012 = vmatpush.msra.mxu2 %v9356_v19  ;;  %4040 = vmatpush.msra.mxu3 %v9329_v34  ;;  %v9452_v46 = vpop.f32.mrf.mxu0  ;;  %v3987_v47 = vsub.f32 %v9403_v41, %v12276_v1  ;;  %v4172_v20 = vsub.f32 %v9445_v62, %v12282_v2 }
 0x137   :  { %3863 = vmatmul.f32.vlgmr.msrb.gmra.mxu1 %v7758_v31  ;;  %v4154_v50 = vsub.f32 %v9392_v39, %v12274_v25  ;;  %12275 = vst [vmem:[#allocation44_spill] sm:$0xff] %v9452_v46  ;;  %3942 = vmatpush.msra.mxu0 %v9345_v52  ;;  %v3982_v58 = vand.u32 4294901760, %v3981_v60  ;;  %v12277_v25 = vand.u32 4294901760, %v9417_v27  ;;  %v12278_v60 = vand.u32 4294901760, %v9432_v54 }
 0x138   :  { %3971 = vmatpush.msra.mxu1 %v3970_v42  ;;  %4015 = vmatpush.msra.mxu2 %v9376_v48  ;;  %v3988_v53 = vand.u32 4294901760, %v3987_v47  ;;  %v12281_v47 = vand.u32 4294901760, %v9338_v22  ;;  %v12284_v22 = vand.u32 4294901760, %v9356_v19 }
 0x139   :  { %4042 = vmatpush.msra.mxu3 %v9345_v52  ;;  %3944 = vmatpush.msra.mxu0 %v9371_v26  ;;  %v4160_v46 = vsub.f32 %v9417_v27, %v12277_v25  ;;  %v4155_v1 = vand.u32 4294901760, %v4154_v50  ;;  %v7595_v25 = vld [vmem:[%s12119_s0 + $0x2f0] sm:$0x1]  ;;  %v4671_v50 = vld [vmem:[%s12121_s2] sm:$0x3f] }
 0x13a   :  { %3977 = vmatpush.msra.mxu1 %v3976_v11  ;;  %4018 = vmatpush.msra.mxu2 %v9403_v41  ;;  %v4166_v11 = vsub.f32 %v9432_v54, %v12278_v60  ;;  %v3550_v37 = vsel %vm65_vm0, %v7595_v25, 0  ;;  %v12287_v25 = vand.u32 4294901760, %v9403_v41 }
 0x13b   :  { %4044 = vmatpush.msra.mxu3 %v9371_v26  ;;  %3950 = vmatmul.f32.vlgmr.msra.gmra.mxu0 %v7785_v45  ;;  %v4161_v60 = vand.u32 4294901760, %v4160_v46  ;;  %v7589_v46 = vld [vmem:[%s12119_s0 + $0x2c0] sm:$0xff] }
 0x13c   :  { %4021 = vmatmul.f32.vlgmr.msra.gmra.mxu2 %v7742_v23  ;;  %v9476_v29 = vpop.f32.mrf.mxu1  ;;  %4048 = vmatmul.f32.vlgmr.msra.gmra.mxu3 %v7758_v31  ;;  %v9508_v19 = vand.u32 4294901760, %v7589_v46 }
 0x13d   :  { %12279 = vst [vmem:[#allocation45_spill] sm:$0xff] %v9476_v29  ;;  %3983 = vmatpush.msra.mxu1 %v3982_v58  ;;  %v9482_v42 = vpop.f32.mrf.mxu2  ;;  %4067 = vmatpush.msrb.mxu0 %v12281_v47  ;;  %v9490_v29 = vpop.f32.mrf.mxu3  ;;  %v7630_v58 = vmov 0   ;;  %v9502_v47 = vand.u32 4294901760, %v3550_v37 }
 0x13e   :  { %12280 = vst [vmem:[#allocation46_spill] sm:$0xff] %v9482_v42  ;;  %4123 = vmatpush.msrb.mxu2 %v9362_v14  ;;  %4156 = vmatpush.msrb.mxu3 %v4155_v1  ;;  %v4167_v42 = vand.u32 4294901760, %v4166_v11  ;;  %v4173_v1 = vand.u32 4294901760, %v4172_v20  ;;  %v7583_v11 = vld [vmem:[%s12119_s0 + $0x290] sm:$0xff]  ;;  %v7596_v20 = vld [vmem:[%s12119_s0 + $0x2f8] sm:$0x1] }
 0x13f   :  { %12283 = vst [vmem:[#allocation47_spill] sm:$0xff] %v9490_v29  ;;  %7600 = vset.pattern.permute.xlu0 %v7630_v58  ;;  %3989 = vmatpush.msra.mxu1 %v3988_v53  ;;  %v12286_v53 = vand.u32 4294901760, %v9376_v48  ;;  %v7577_v48 = vld [vmem:[%s12119_s0 + $0x260] sm:$0xff]  ;;  %v12291_v58 = vand.u32 4294901760, %v9392_v39 }
 0x140   :  { %4674 = vperm.xlu0 %7600, %v4671_v50   ;;  %4071 = vmatpush.msrb.mxu0 %v12284_v22  ;;  %v9499_v2 = vpop.f32.mrf.mxu0  ;;  %v3553_v50 = vsel %vm65_vm0, %v7596_v20, 0  ;;  %v9545_v22 = vand.u32 4294901760, %v7577_v48  ;;  %v7584_v20 = vld [vmem:[%s12119_s0 + $0x298] sm:$0xff] }
 0x141   :  { %4125 = vmatpush.msrb.mxu2 %v9386_v32  ;;  %12285 = vst [vmem:[#allocation48_spill] sm:$0xff] %v9499_v2  ;;  %4162 = vmatpush.msrb.mxu3 %v4161_v60 }
 0x142   :  { %3991 = vmatmul.f32.vlgmr.msra.gmra.mxu1 %v7724_v15  ;;  %4075 = vmatpush.msrb.mxu0 %v12286_v53  ;;  %v9559_v53 = vand.u32 4294901760, %v3553_v50 }
 0x143   :  { %4098 = vmatpush.msrb.mxu1 %v9320_v12  ;;  %4127 = vmatpush.msrb.mxu2 %v9405_v63  ;;  %v9521_v12 = vsub.f32 %v3550_v37, %v9502_v47  ;;  %v9537_v37 = vsub.f32 %v7589_v46, %v9508_v19  ;;  %v7590_v46 = vld [vmem:[%s12119_s0 + $0x2c8] sm:$0xff] }
 0x144   :  { %4168 = vmatpush.msrb.mxu3 %v4167_v42  ;;  %4079 = vmatpush.msrb.mxu0 %v12287_v25 }
 0x145   :  { %4100 = vmatpush.msrb.mxu1 %v9329_v34  ;;  %4129 = vmatpush.msrb.mxu2 %v9419_v57  ;;  %v9530_v34 = vand.u32 4294901760, %v7583_v11  ;;  %v12306_v17 = vand.u32 4294901760, %v9537_v37 }
 0x146   :  { %4174 = vmatpush.msrb.mxu3 %v4173_v1  ;;  %v9526_v42 = vpop.f32.mrf.mxu1  ;;  %4081 = vmatmul.f32.vlgmr.msrb.gmra.mxu0 %v7724_v15  ;;  %v12292_v1 = vand.u32 4294901760, %v9417_v27 }
 0x147   :  { %12288 = vst [vmem:[#allocation49_spill] sm:$0xff] %v9526_v42  ;;  %4135 = vmatmul.f32.vlgmr.msrb.gmra.mxu2 %v7785_v45  ;;  %v9532_v41 = vpop.f32.mrf.mxu2  ;;  %4176 = vmatmul.f32.vlgmr.msrb.gmra.mxu3 %v7724_v15  ;;  %v9540_v60 = vpop.f32.mrf.mxu3 }
 0x148   :  { %12289 = vst [vmem:[#allocation50_spill] sm:$0xff] %v9532_v41  ;;  %4102 = vmatpush.msrb.mxu1 %v9345_v52  ;;  %4194 = vmatpush.msra.mxu0 %v9392_v39  ;;  %v12142_v52 = vand.u32 4294901760, %v9521_v12  ;;  %v9557_v39 = vsub.f32 %v7583_v11, %v9530_v34  ;;  %v9574_v11 = vand.u32 4294901760, %v7590_v46 }
 0x149   :  { %12290 = vst [vmem:[#allocation51_spill] sm:$0xff] %v9540_v60  ;;  %4252 = vmatpush.msra.mxu2 %v12291_v58  ;;  %4283 = vmatpush.msra.mxu3 %v9362_v14  ;;  %v12294_v58 = vand.u32 4294901760, %v9432_v54 }
 0x14a   :  { %4104 = vmatpush.msrb.mxu1 %v9371_v26  ;;  %4197 = vmatpush.msra.mxu0 %v9417_v27  ;;  %v9561_v25 = vpop.f32.mrf.mxu0  ;;  %v9572_v27 = vsub.f32 %v7577_v48, %v9545_v22  ;;  %v7578_v26 = vld [vmem:[%s12119_s0 + $0x268] sm:$0xff]  ;;  %v9589_v48 = vsub.f32 %v3553_v50, %v9559_v53  ;;  %v9605_v50 = vsub.f32 %v7590_v46, %v9574_v11  ;;  %s7631_s0 = smov 32  }
 0x14b   :  { %4256 = vmatpush.msra.mxu2 %v12292_v1  ;;  %12293 = vst [vmem:[#allocation52_spill] sm:$0xff] %v9561_v25  ;;  %4106 = vmatmul.f32.vlgmr.msrb.gmra.mxu1 %v7724_v15  ;;  %v4339_v1 = vsub.f32 %v9521_v12, %v12142_v52  ;;  %v12296_v52 = vand.u32 4294901760, %v9537_v37 }
 0x14c   :  { %4285 = vmatpush.msra.mxu3 %v9386_v32  ;;  %4200 = vmatpush.msra.mxu0 %v9432_v54  ;;  %v9591_v54 = vand.u32 4294901760, %v7584_v20 }
 0x14d   :  { %4223 = vmatpush.msra.mxu1 %v9362_v14  ;;  %4260 = vmatpush.msra.mxu2 %v12294_v58  ;;  %v12295_v58 = vand.u32 4294901760, %v9445_v62  ;;  %v4345_v25 = vsub.f32 %v9537_v37, %v12296_v52  ;;  %v9607_v14 = vand.u32 4294901760, %v7578_v26  ;;  %v4340_v52 = vand.u32 4294901760, %v4339_v1 }
 0x14e   :  { %4287 = vmatpush.msra.mxu3 %v9405_v63  ;;  %4203 = vmatpush.msra.mxu0 %v9445_v62 }
 0x14f   :  { %4225 = vmatpush.msra.mxu1 %v9386_v32  ;;  %4264 = vmatpush.msra.mxu2 %v12295_v58  ;;  %v4523_v32 = vand.u32 4294901760, %v9589_v48  ;;  %v4346_v1 = vand.u32 4294901760, %v4345_v25 }
 0x150   :  { %4206 = vmatmul.f32.vlgmr.msra.gmra.mxu0 %v7742_v23  ;;  %v9599_v60 = vpop.f32.mrf.mxu1  ;;  %4266 = vmatmul.f32.vlgmr.msra.gmra.mxu2 %v7724_v15 }
 0x151   :  { %12297 = vst [vmem:[#allocation53_spill] sm:$0xff] %v9599_v60  ;;  %4227 = vmatpush.msra.mxu1 %v9405_v63  ;;  %v9609_v62 = vpop.f32.mrf.mxu2  ;;  %4289 = vmatpush.msra.mxu3 %v9419_v57  ;;  %v9613_v58 = vpop.f32.mrf.mxu3  ;;  %v12300_v63 = vand.u32 4294901760, %v9557_v39  ;;  %v9622_v60 = vsub.f32 %v7584_v20, %v9591_v54  ;;  %v4524_v41 = vsub.f32 %v9589_v48, %v4523_v32 }
 0x152   :  { %12298 = vst [vmem:[#allocation54_spill] sm:$0xff] %v9609_v62  ;;  %4379 = vmatpush.msrb.mxu2 %v9521_v12  ;;  %4291 = vmatmul.f32.vlgmr.msra.gmra.mxu3 %v7724_v15  ;;  %v9633_v62 = vsub.f32 %v7578_v26, %v9607_v14 }
 0x153   :  { %12299 = vst [vmem:[#allocation55_spill] sm:$0xff] %v9613_v58  ;;  %4229 = vmatpush.msra.mxu1 %v9419_v57  ;;  %v4351_v46 = vsub.f32 %v9557_v39, %v12300_v63  ;;  %4308 = vmatpush.msrb.mxu0 %v9502_v47  ;;  %v12301_v57 = vand.u32 4294901760, %v9572_v27  ;;  %v4529_v63 = vand.u32 4294901760, %v9605_v50  ;;  %v4535_v42 = vand.u32 4294901760, %v9622_v60 }
 0x154   :  { %4382 = vmatpush.msrb.mxu2 %v9537_v37  ;;  %4408 = vmatpush.msrb.mxu3 %v9502_v47  ;;  %v9635_v20 = vpop.f32.mrf.mxu0 }
 0x155   :  { %4233 = vmatmul.f32.vlgmr.msra.gmra.mxu1 %v7758_v31  ;;  %v4357_v58 = vsub.f32 %v9572_v27, %v12301_v57  ;;  %12302 = vst [vmem:[#allocation56_spill] sm:$0xff] %v9635_v20  ;;  %4310 = vmatpush.msrb.mxu0 %v9508_v19  ;;  %v4352_v25 = vand.u32 4294901760, %v4351_v46  ;;  %v4530_v57 = vsub.f32 %v9605_v50, %v4529_v63  ;;  %v4525_v20 = vand.u32 4294901760, %v4524_v41 }
 0x156   :  { %4341 = vmatpush.msrb.mxu1 %v4340_v52  ;;  %4385 = vmatpush.msrb.mxu2 %v9557_v39  ;;  %v4541_v52 = vand.u32 4294901760, %v9633_v62 }
 0x157   :  { %4410 = vmatpush.msrb.mxu3 %v9508_v19  ;;  %4312 = vmatpush.msrb.mxu0 %v9530_v34  ;;  %v4358_v26 = vand.u32 4294901760, %v4357_v58  ;;  %v4531_v29 = vand.u32 4294901760, %v4530_v57 }
 0x158   :  { %4347 = vmatpush.msrb.mxu1 %v4346_v1  ;;  %4388 = vmatpush.msrb.mxu2 %v9572_v27  ;;  %v4536_v1 = vsub.f32 %v9622_v60, %v4535_v42 }
 0x159   :  { %4412 = vmatpush.msrb.mxu3 %v9530_v34  ;;  %4391 = vmatmul.f32.vlgmr.msrb.gmra.mxu2 %v7742_v23 }
 0x15a   :  { %4314 = vmatpush.msrb.mxu0 %v9545_v22  ;;  %v9649_v46 = vpop.f32.mrf.mxu1  ;;  %4353 = vmatpush.msrb.mxu1 %v4352_v25  ;;  %v12305_v25 = vand.u32 4294901760, %v9521_v12  ;;  %v4537_v41 = vand.u32 4294901760, %v4536_v1  ;;  %v12307_v12 = vand.u32 4294901760, %v9557_v39 }
 0x15b   :  { %12303 = vst [vmem:[#allocation57_spill] sm:$0xff] %v9649_v46  ;;  %4414 = vmatpush.msrb.mxu3 %v9545_v22  ;;  %v9653_v2 = vpop.f32.mrf.mxu2  ;;  %4493 = vmatpush.msra.mxu2 %v9559_v53  ;;  %v9657_v58 = vpop.f32.mrf.mxu3  ;;  %v4542_v46 = vsub.f32 %v9633_v62, %v4541_v52 }
 0x15c   :  { %12304 = vst [vmem:[#allocation58_spill] sm:$0xff] %v9653_v2  ;;  %4320 = vmatmul.f32.vlgmr.msrb.gmra.mxu0 %v7785_v45  ;;  %4418 = vmatmul.f32.vlgmr.msrb.gmra.mxu3 %v7758_v31 }
 0x15d   :  { %4359 = vmatpush.msrb.mxu1 %v4358_v26  ;;  %4437 = vmatpush.msra.mxu0 %v12305_v25  ;;  %v4543_v26 = vand.u32 4294901760, %v4542_v46 }
 0x15e   :  { %4495 = vmatpush.msra.mxu2 %v9574_v11  ;;  %4526 = vmatpush.msra.mxu3 %v4525_v20  ;;  %v9665_v2 = vpop.f32.mrf.mxu0  ;;  %v12308_v20 = vand.u32 4294901760, %v9572_v27 }
 0x15f   :  { %4361 = vmatmul.f32.vlgmr.msrb.gmra.mxu1 %v7724_v15  ;;  %4441 = vmatpush.msra.mxu0 %v12306_v17 }
 0x160   :  { %4468 = vmatpush.msra.mxu1 %v9502_v47  ;;  %4497 = vmatpush.msra.mxu2 %v9591_v54 }
 0x161   :  { %4532 = vmatpush.msra.mxu3 %v4531_v29  ;;  %4445 = vmatpush.msra.mxu0 %v12307_v12 }
 0x162   :  { %4470 = vmatpush.msra.mxu1 %v9508_v19  ;;  %4499 = vmatpush.msra.mxu2 %v9607_v14 }
 0x163   :  { %4538 = vmatpush.msra.mxu3 %v4537_v41  ;;  %4505 = vmatmul.f32.vlgmr.msra.gmra.mxu2 %v7785_v45 }
 0x164   :  { %4449 = vmatpush.msra.mxu0 %v12308_v20  ;;  %v9678_v17 = vpop.f32.mrf.mxu1  ;;  %4472 = vmatpush.msra.mxu1 %v9530_v34 }
 0x165   :  { %4544 = vmatpush.msra.mxu3 %v4543_v26  ;;  %v9681_v29 = vpop.f32.mrf.mxu2  ;;  %4622 = vmatpush.msrb.mxu2 %v4523_v32  ;;  %v9684_v47 = vpop.f32.mrf.mxu3 }
 0x166   :  { %4451 = vmatmul.f32.vlgmr.msra.gmra.mxu0 %v7724_v15  ;;  %4546 = vmatmul.f32.vlgmr.msra.gmra.mxu3 %v7724_v15 }
 0x167   :  { %4474 = vmatpush.msra.mxu1 %v9545_v22  ;;  %4564 = vmatpush.msrb.mxu0 %v9589_v48 }
 0x168   :  { %4626 = vmatpush.msrb.mxu2 %v4529_v63  ;;  %4653 = vmatpush.msrb.mxu3 %v9559_v53  ;;  %v9691_v45 = vpop.f32.mrf.mxu0 }
 0x169   :  { %4476 = vmatmul.f32.vlgmr.msra.gmra.mxu1 %v7724_v15  ;;  %4567 = vmatpush.msrb.mxu0 %v9605_v50 }
 0x16a   :  { %4593 = vmatpush.msrb.mxu1 %v9559_v53  ;;  %4630 = vmatpush.msrb.mxu2 %v4535_v42 }
 0x16b   :  { %4655 = vmatpush.msrb.mxu3 %v9574_v11  ;;  %4570 = vmatpush.msrb.mxu0 %v9622_v60 }
 0x16c   :  { %4595 = vmatpush.msrb.mxu1 %v9574_v11  ;;  %4634 = vmatpush.msrb.mxu2 %v4541_v52 }
 0x16d   :  { %4657 = vmatpush.msrb.mxu3 %v9591_v54  ;;  %4636 = vmatmul.f32.vlgmr.msrb.gmra.mxu2 %v7724_v15 }
 0x16e   :  { %4573 = vmatpush.msrb.mxu0 %v9633_v62  ;;  %v9701_v19 = vpop.f32.mrf.mxu1  ;;  %4597 = vmatpush.msrb.mxu1 %v9591_v54 }
 0x16f   :  { %4659 = vmatpush.msrb.mxu3 %v9607_v14  ;;  %v9705_v42 = vpop.f32.mrf.mxu2  ;;  %4576 = vmatmul.f32.vlgmr.msrb.gmra.mxu0 %v7742_v23  ;;  %v9709_v34 = vpop.f32.mrf.mxu3 }
 0x170   :  { %4661 = vmatmul.f32.vlgmr.msrb.gmra.mxu3 %v7724_v15  ;;  %4599 = vmatpush.msrb.mxu1 %v9607_v14 }
 0x171   :  { %4603 = vmatmul.f32.vlgmr.msrb.gmra.mxu1 %v7758_v31 }
 0x172   :  { %v9713_v37 = vpop.f32.mrf.mxu0 }
 0x178   :  { %v9715_v60 = vpop.f32.mrf.mxu1 }
 0x179   :  { %v9717_v22 = vpop.f32.mrf.mxu2  ;;  %v9719_v39 = vpop.f32.mrf.mxu3 }
 0x17c   :  { %v3162_v53 = vpop.f32.mrf.mxu0 }
 0x182   :  { %v3203_v27 = vpop.f32.mrf.mxu1 }
 0x183   :  { %v3204_v11 = vadd.f32 %v3203_v27, %v3162_v53  ;;  %v3233_v23 = vpop.f32.mrf.mxu2  ;;  %v3260_v48 = vpop.f32.mrf.mxu3 }
 0x185   :  { %v3234_v15 = vadd.f32 %v3233_v23, %v3204_v11 }
 0x186   :  { %v3293_v32 = vpop.f32.mrf.mxu0 }
 0x187   :  { %v3261_v54 = vadd.f32 %v3260_v48, %v3234_v15 }
 0x189   :  { %v3294_v50 = vadd.f32 %v3293_v32, %v3261_v54 }
 0x18c   :  { %v3318_v14 = vpop.f32.mrf.mxu1 }
 0x18d   :  { %v9721_v62 = vadd.f32 %v3318_v14, %v3294_v50  ;;  %v3347_v31 = vpop.f32.mrf.mxu2  ;;  %v3388_v63 = vpop.f32.mrf.mxu3 }
 0x18e   :  { %v3389_v57 = vadd.f32 %v3388_v63, %v3347_v31 }
 0x190   :  { %v3418_v52 = vpop.f32.mrf.mxu0 }
 0x191   :  { %v3419_v46 = vadd.f32 %v3418_v52, %v3389_v57 }
 0x196   :  { %v3445_v1 = vpop.f32.mrf.mxu1 }
 0x197   :  { %v3446_v25 = vadd.f32 %v3445_v1, %v3419_v46  ;;  %v3478_v41 = vpop.f32.mrf.mxu2  ;;  %v3503_v26 = vpop.f32.mrf.mxu3 }
 0x199   :  { %v3479_v12 = vadd.f32 %v3478_v41, %v3446_v25  ;;  %v1675_v25 = vadd.f32 %v9162_v8, %v9133_v24 }
 0x19a   :  { %v3581_v53 = vpop.f32.mrf.mxu0 }
 0x19b   :  { %v9723_v20 = vadd.f32 %v3503_v26, %v3479_v12 }
 0x1a0   :  { %v3622_v27 = vpop.f32.mrf.mxu1 }
 0x1a1   :  { %v3623_v11 = vadd.f32 %v3622_v27, %v3581_v53  ;;  %v3652_v23 = vpop.f32.mrf.mxu2  ;;  %v3679_v48 = vpop.f32.mrf.mxu3  ;;  %v522_v53 = vadd.f32 %v8616_v36, %v8587_v21  ;;  %v2834_v27 = vadd.f32 %v9678_v17, %v9665_v2 }
 0x1a3   :  { %v3653_v15 = vadd.f32 %v3652_v23, %v3623_v11 }
 0x1a4   :  { %v3712_v32 = vpop.f32.mrf.mxu0 }
 0x1a5   :  { %v3680_v54 = vadd.f32 %v3679_v48, %v3653_v15  ;;  %v1705_v48 = vadd.f32 %v9177_v10, %v1675_v25 }
 0x1a7   :  { %v3713_v50 = vadd.f32 %v3712_v32, %v3680_v54  ;;  %v552_v54 = vadd.f32 %v8631_v43, %v522_v53  ;;  %v2864_v32 = vadd.f32 %v9681_v29, %v2834_v27  ;;  %v1732_v8 = vadd.f32 %v9179_v9, %v1705_v48 }
 0x1a8   :  { %v1860_v29 = vadd.f32 %v9252_v3, %v9250_v33 }
 0x1a9   :  { %v2891_v21 = vadd.f32 %v9684_v47, %v2864_v32  ;;  %v1765_v2 = vadd.f32 %v9201_v61, %v1732_v8  ;;  %v707_v47 = vadd.f32 %v8706_v5, %v8704_v6  ;;  %v3019_v61 = vadd.f32 %v9709_v34, %v9705_v42 }
 0x1aa   :  { %v3737_v14 = vpop.f32.mrf.mxu1 }
 0x1ab   :  { %v9725_v31 = vadd.f32 %v3737_v14, %v3713_v50  ;;  %v3766_v63 = vpop.f32.mrf.mxu2  ;;  %v3807_v57 = vpop.f32.mrf.mxu3  ;;  %v579_v50 = vadd.f32 %v8633_v40, %v552_v54  ;;  %v1790_v9 = vadd.f32 %v9239_v30, %v1765_v2  ;;  %v737_v33 = vadd.f32 %v8728_v16, %v707_v47  ;;  %v12315_v47 = vld [vmem:[#allocation21_spill] sm:$0xff] }
 0x1ac   :  { %v3808_v52 = vadd.f32 %v3807_v57, %v3766_v63  ;;  %v2924_v57 = vadd.f32 %v9691_v45, %v2891_v21  ;;  %v1890_v45 = vadd.f32 %v9274_v18, %v1860_v29  ;;  %v3049_v3 = vadd.f32 %v9713_v37, %v3019_v61  ;;  %v12314_v29 = vld [vmem:[#allocation40_spill] sm:$0xff]  ;;  %v12316_v61 = vld [vmem:[#allocation22_spill] sm:$0xff] }
 0x1ad   :  { %v612_v10 = vadd.f32 %v8655_v55, %v579_v50  ;;  %v764_v42 = vadd.f32 %v8748_v44, %v737_v33  ;;  %v12318_v33 = vld [vmem:[#allocation44_spill] sm:$0xff] }
 0x1ae   :  { %v3837_v46 = vpop.f32.mrf.mxu0  ;;  %v2949_v55 = vadd.f32 %v9701_v19, %v2924_v57  ;;  %v1917_v30 = vadd.f32 %v9294_v35, %v1890_v45 }
 0x1af   :  { %v3838_v1 = vadd.f32 %v3837_v46, %v3808_v52  ;;  %v637_v46 = vadd.f32 %v8693_v0, %v612_v10  ;;  %v3076_v0 = vadd.f32 %v9715_v60, %v3049_v3  ;;  %v797_v37 = vadd.f32 %v8757_v38, %v764_v42 }
 0x1b0   :  { %v2045_v60 = vadd.f32 %v9341_v13, %v9315_v49  ;;  %v892_v38 = vadd.f32 %v8798_v56, %v8769_v51  ;;  %v12309_v13 = vld [vmem:[#allocation17_spill] sm:$0xff]  ;;  %v12312_v56 = vld [vmem:[#allocation42_spill] sm:$0xff] }
 0x1b1   :  { %v2349_v25 = vmax.f32 %v637_v46, %v1790_v9  ;;  %v3109_v27 = vadd.f32 %v9717_v22, %v3076_v0  ;;  %v1077_v46 = vadd.f32 %v12316_v61, %v12315_v47  ;;  %v12321_v0 = vld [vmem:[#allocation45_spill] sm:$0xff] }
 0x1b2   :  { %v9760_v18 = vpop.permute.xlu0 %4674  ;;  %v922_v50 = vadd.f32 %v12309_v13, %v892_v38 }
 0x1b3   :  { %v3134_v22 = vadd.f32 %v9719_v39, %v3109_v27  ;;  %v12313_v39 = vld [vmem:[#allocation43_spill] sm:$0xff] }
 0x1b4   :  { %v3864_v41 = vpop.f32.mrf.mxu1  ;;  %v2230_v57 = vadd.f32 %v12313_v39, %v12312_v56  ;;  %v4796_v56 = vld [vmem:[%s12123_s4 + $0x58] sm:$0xff] }
 0x1b5   :  { %v3865_v26 = vadd.f32 %v3864_v41, %v3838_v1  ;;  %v3897_v12 = vpop.f32.mrf.mxu2  ;;  %v3922_v23 = vpop.f32.mrf.mxu3 }
 0x1b7   :  { %v3898_v11 = vadd.f32 %v3897_v12, %v3865_v26  ;;  %v3508_v26 = vmax.f32 %v2349_v25, %v2949_v55  ;;  %v1950_v12 = vadd.f32 %v9303_v59, %v1917_v30  ;;  %v822_v59 = vadd.f32 %v8759_v4, %v797_v37  ;;  %v12317_v55 = vld [vmem:[#allocation19_spill] sm:$0xff] }
 0x1b8   :  { %v3951_v24 = vpop.f32.mrf.mxu0  ;;  %v2260_v30 = vadd.f32 %v12318_v33, %v2230_v57 }
 0x1b9   :  { %v9734_v15 = vadd.f32 %v3922_v23, %v3898_v11  ;;  %v1975_v44 = vadd.f32 %v9305_v7, %v1950_v12  ;;  %v2075_v7 = vadd.f32 %v9350_v28, %v2045_v60 }
 0x1bf   :  { %v3992_v36 = vpop.f32.mrf.mxu1  ;;  %v4022_v14 = vpop.f32.mrf.mxu2 }
 0x1c0   :  { %v3993_v17 = vadd.f32 %v3992_v36, %v3951_v24  ;;  %v4049_v63 = vpop.f32.mrf.mxu3  ;;  %v2350_v24 = vmax.f32 %v822_v59, %v1975_v44  ;;  %v12324_v44 = vld [vmem:[#allocation46_spill] sm:$0xff] }
 0x1c2   :  { %v4023_v43 = vadd.f32 %v4022_v14, %v3993_v17  ;;  %v3509_v21 = vmax.f32 %v2350_v24, %v3134_v22  ;;  %v12310_v14 = vld [vmem:[#allocation39_spill] sm:$0xff]  ;;  %v12325_v22 = vld [vmem:[#allocation25_spill] sm:$0xff] }
 0x1c3   :  { %v4082_v40 = vpop.f32.mrf.mxu0  ;;  %v2102_v2 = vadd.f32 %v12310_v14, %v2075_v7  ;;  %v12326_v24 = vld [vmem:[#allocation47_spill] sm:$0xff]  ;;  %v4798_v14 = vld [vmem:[%s12123_s4 + $0x68] sm:$0xff] }
 0x1c4   :  { %v4050_v52 = vadd.f32 %v4049_v63, %v4023_v43  ;;  %v12311_v63 = vld [vmem:[#allocation18_spill] sm:$0xff] }
 0x1c5   :  { %v949_v10 = vadd.f32 %v12311_v63, %v922_v50  ;;  %v2135_v28 = vadd.f32 %v12314_v29, %v2102_v2  ;;  %v12327_v50 = vld [vmem:[#allocation26_spill] sm:$0xff]  ;;  %v9824_v29 = vand.u32 4294901760, %v4796_v56 }
 0x1c6   :  { %v4083_v1 = vadd.f32 %v4082_v40, %v4050_v52 }
 0x1c8   :  { %v4107_v41 = vpop.f32.mrf.mxu1 }
 0x1c9   :  { %v4108_v6 = vadd.f32 %v4107_v41, %v4083_v1  ;;  %v982_v1 = vadd.f32 %v12317_v55, %v949_v10  ;;  %v12319_v41 = vld [vmem:[#allocation41_spill] sm:$0xff]  ;;  %v9814_v10 = vand.u32 4294901760, %v4798_v14 }
 0x1ca   :  { %v4136_v5 = vpop.f32.mrf.mxu2  ;;  %v4177_v34 = vpop.f32.mrf.mxu3 }
 0x1cb   :  { %v4667_v19 = vmax.f32 %v3508_v26, %v4108_v6  ;;  %v4178_v53 = vadd.f32 %v4177_v34, %v4136_v5  ;;  %v2160_v26 = vadd.f32 %v12319_v41, %v2135_v28  ;;  %v12320_v5 = vld [vmem:[#allocation23_spill] sm:$0xff]  ;;  %v2287_v34 = vadd.f32 %v12321_v0, %v2260_v30  ;;  %v4795_v28 = vld [vmem:[%s12123_s4 + $0x50] sm:$0xff] }
 0x1cc   :  { %v1107_v42 = vadd.f32 %v12320_v5, %v1077_v46  ;;  %v9840_v61 = vsub.f32 %v4798_v14, %v9814_v10 }
 0x1cd   :  { %v4679_v16 = vadd.f32 %v9760_v18, %v4667_v19  ;;  %v4207_v35 = vpop.f32.mrf.mxu0  ;;  %v12322_v19 = vld [vmem:[#allocation20_spill] sm:$0xff]  ;;  %v2320_v60 = vadd.f32 %v12324_v44, %v2287_v34 }
 0x1ce   :  { %v4208_v23 = vadd.f32 %v4207_v35, %v4178_v53  ;;  %v1007_v12 = vadd.f32 %v12322_v19, %v982_v1  ;;  %v9848_v1 = vsub.f32 %v4796_v56, %v9824_v29  ;;  %v12153_v41 = vand.u32 4294901760, %v9840_v61 }
 0x1cf   :  { %v9765_v11 = vmax.f32 %v4679_v16, 0.0  ;;  %v12323_v16 = vld [vmem:[#allocation24_spill] sm:$0xff]  ;;  %v2345_v7 = vadd.f32 %v12326_v24, %v2320_v60  ;;  %v4792_v60 = vld [vmem:[%s12123_s4 + $0x38] sm:$0xff] }
 0x1d0   :  { %v1134_v35 = vadd.f32 %v12323_v16, %v1107_v42  ;;  %v2351_v27 = vmax.f32 %v1007_v12, %v2160_v26  ;;  %v12149_v42 = vand.u32 4294901760, %v9848_v1 }
 0x1d1   :  { %4724 = vrot.lane.b32.xlu0 %v9765_v11, %s7631_s0 }
 0x1d2   :  { %v4234_v48 = vpop.f32.mrf.mxu1 }
 0x1d3   :  { %v4235_v54 = vadd.f32 %v4234_v48, %v4208_v23  ;;  %v4267_v32 = vpop.f32.mrf.mxu2  ;;  %v3510_v48 = vmax.f32 %v2351_v27, %v9721_v62  ;;  %v4799_v62 = vld [vmem:[%s12123_s4 + $0x70] sm:$0xff] }
 0x1d4   :  { %v9812_v63 = vand.u32 4294901760, %v4799_v62 }
 0x1d5   :  { %v4268_v8 = vadd.f32 %v4267_v32, %v4235_v54  ;;  %v4292_v49 = vpop.f32.mrf.mxu3  ;;  %v1167_v54 = vadd.f32 %v12325_v22, %v1134_v35  ;;  %v4790_v22 = vld [vmem:[%s12123_s4 + $0x28] sm:$0xff] }
 0x1d6   :  { %v9837_v47 = vsub.f32 %v4799_v62, %v9812_v63  ;;  %v9925_v14 = vand.u32 4294901760, %v4790_v22 }
 0x1d7   :  { %v4293_v36 = vadd.f32 %v4292_v49, %v4268_v8 }
 0x1d9   :  { %v4668_v17 = vmax.f32 %v3509_v21, %v4293_v36  ;;  %v4321_v4 = vpop.f32.mrf.mxu0  ;;  %v1192_v21 = vadd.f32 %v12327_v50, %v1167_v54  ;;  %v4800_v36 = vld [vmem:[%s12123_s4 + $0x78] sm:$0xff]  ;;  %v4789_v54 = vld [vmem:[%s12123_s4 + $0x20] sm:$0xff] }
 0x1db   :  { %v4680_v51 = vadd.f32 %v9760_v18, %v4668_v17  ;;  %v2352_v39 = vmax.f32 %v1192_v21, %v2345_v7  ;;  %v4901_v7 = vsub.f32 %v9848_v1, %v12149_v42  ;;  %v4788_v21 = vld [vmem:[%s12123_s4 + $0x18] sm:$0xff] }
 0x1dc   :  { %v4362_v43 = vpop.f32.mrf.mxu1  ;;  %v4392_v52 = vpop.f32.mrf.mxu2 }
 0x1dd   :  { %v4363_v9 = vadd.f32 %v4362_v43, %v4321_v4  ;;  %v4686_v40 = vmax.f32 %v4680_v51, 0.0  ;;  %v9810_v4 = vand.u32 4294901760, %v4800_v36  ;;  %v4797_v51 = vld [vmem:[%s12123_s4 + $0x60] sm:$0xff]  ;;  %v3511_v35 = vmax.f32 %v2352_v39, %v9723_v20 }
 0x1de   :  { %v9822_v43 = vand.u32 4294901760, %v4797_v51 }
 0x1df   :  { %v4393_v45 = vadd.f32 %v4392_v52, %v4363_v9  ;;  %4726 = vrot.lane.b32.xlu1 %v4686_v40, %s7631_s0  ;;  %v4694_v25 = vrot.slane %v4686_v40, 5  ;;  %v4419_v3 = vpop.f32.mrf.mxu3  ;;  %v4794_v9 = vld [vmem:[%s12123_s4 + $0x48] sm:$0xff]  ;;  %v9834_v40 = vsub.f32 %v4800_v36, %v9810_v4  ;;  %5030 = vmatpush.msra.mxu3 %v9810_v4 }
 0x1e0   :  { %v9844_v55 = vsub.f32 %v4797_v51, %v9822_v43  ;;  %4834 = vmatpush.msra.mxu0 %v9810_v4  ;;  %v9860_v26 = vand.u32 4294901760, %v4794_v9 }
 0x1e1   :  { %v4420_v6 = vadd.f32 %v4419_v3, %v4393_v45  ;;  %4699 = vrot.lane.b32.xlu0 %v4694_v25, %s7631_s0  ;;  %v9850_v45 = vand.u32 4294901760, %v4795_v28  ;;  %v4793_v25 = vld [vmem:[%s12123_s4 + $0x40] sm:$0xff]  ;;  %v12156_v30 = vand.u32 4294901760, %v9834_v40  ;;  %v12154_v3 = vand.u32 4294901760, %v9837_v47  ;;  %4977 = vmatpush.msra.mxu2 %v9834_v40 }
 0x1e2   :  { %5032 = vmatpush.msra.mxu3 %v9812_v63  ;;  %v12151_v5 = vand.u32 4294901760, %v9844_v55  ;;  %4836 = vmatpush.msra.mxu0 %v9812_v63  ;;  %v9879_v16 = vand.u32 4294901760, %v4793_v25 }
 0x1e3   :  { %v4452_v53 = vpop.f32.mrf.mxu0  ;;  %v9866_v0 = vsub.f32 %v4795_v28, %v9850_v45  ;;  %v4877_v19 = vsub.f32 %v9834_v40, %v12156_v30  ;;  %v4883_v12 = vsub.f32 %v9837_v47, %v12154_v3  ;;  %4980 = vmatpush.msra.mxu2 %v9837_v47  ;;  %v9944_v28 = vsub.f32 %v4790_v22, %v9925_v14 }
 0x1e4   :  { %v4453_v37 = vadd.f32 %v4452_v53, %v4420_v6  ;;  %v4889_v53 = vsub.f32 %v9840_v61, %v12153_v41  ;;  %5034 = vmatpush.msra.mxu3 %v9814_v10  ;;  %v4895_v44 = vsub.f32 %v9844_v55, %v12151_v5  ;;  %4838 = vmatpush.msra.mxu0 %v9814_v10 }
 0x1e5   :  { %4983 = vmatpush.msra.mxu2 %v9840_v61  ;;  %v12148_v20 = vand.u32 4294901760, %v9866_v0 }
 0x1e6   :  { %v4477_v23 = vpop.f32.mrf.mxu1  ;;  %v4506_v38 = vpop.f32.mrf.mxu2  ;;  %5036 = vmatpush.msra.mxu3 %v9822_v43  ;;  %v4890_v24 = vand.u32 4294901760, %v4889_v53  ;;  %4840 = vmatpush.msra.mxu0 %v9822_v43  ;;  %v4896_v62 = vand.u32 4294901760, %v4895_v44  ;;  %v4785_v44 = vld [vmem:[%s12123_s4] sm:$0xff] }
 0x1e7   :  { %v4478_v59 = vadd.f32 %v4477_v23, %v4453_v37  ;;  %v4791_v23 = vld [vmem:[%s12123_s4 + $0x30] sm:$0xff]  ;;  %4986 = vmatpush.msra.mxu2 %v9844_v55 }
 0x1e8   :  { %v9915_v50 = vand.u32 4294901760, %v4791_v23  ;;  %5038 = vmatpush.msra.mxu3 %v9824_v29  ;;  %4842 = vmatpush.msra.mxu0 %v9824_v29 }
 0x1e9   :  { %v4669_v32 = vmax.f32 %v3510_v48, %v4478_v59  ;;  %v4547_v8 = vpop.f32.mrf.mxu3  ;;  %v4878_v48 = vand.u32 4294901760, %v4877_v19  ;;  %v4884_v59 = vand.u32 4294901760, %v4883_v12  ;;  %4989 = vmatpush.msra.mxu2 %v9848_v1  ;;  %v4786_v12 = vld [vmem:[%s12123_s4 + $0x8] sm:$0xff] }
 0x1ea   :  { %v4548_v49 = vadd.f32 %v4547_v8, %v4506_v38  ;;  %v9896_v38 = vsub.f32 %v4794_v9, %v9860_v26  ;;  %v9938_v39 = vsub.f32 %v4791_v23, %v9915_v50  ;;  %5040 = vmatpush.msra.mxu3 %v9850_v45  ;;  %v9946_v9 = vand.u32 4294901760, %v4788_v21  ;;  %4844 = vmatpush.msra.mxu0 %v9850_v45  ;;  %v4815_v23 = vld [vmem:[%s12123_s4 + $0xf0] sm:$0xff] }
 0x1eb   :  { %v4681_v13 = vadd.f32 %v9760_v18, %v4669_v32  ;;  %4879 = vmatpush.msra.mxu1 %v4878_v48  ;;  %4992 = vmatpush.msra.mxu2 %v9866_v0  ;;  %v9992_v22 = vand.u32 4294901760, %v4786_v12 }
 0x1ec   :  { %v4577_v2 = vpop.f32.mrf.mxu0  ;;  %v12146_v8 = vand.u32 4294901760, %v9896_v38  ;;  %5042 = vmatpush.msra.mxu3 %v9860_v26  ;;  %4846 = vmatpush.msra.mxu0 %v9860_v26 }
 0x1ed   :  { %v4687_v17 = vmax.f32 %v4681_v13, 0.0  ;;  %v4578_v57 = vadd.f32 %v4577_v2, %v4548_v49  ;;  %v9911_v49 = vsub.f32 %v4793_v25, %v9879_v16  ;;  %v9913_v13 = vand.u32 4294901760, %v4792_v60  ;;  %4885 = vmatpush.msra.mxu1 %v4884_v59  ;;  %4995 = vmatpush.msra.mxu2 %v9896_v38 }
 0x1ee   :  { %v4604_v52 = vpop.f32.mrf.mxu1  ;;  %v9927_v2 = vand.u32 4294901760, %v4789_v54  ;;  %v4913_v25 = vsub.f32 %v9896_v38, %v12146_v8  ;;  %5044 = vmatpush.msra.mxu3 %v9879_v16  ;;  %4848 = vmatpush.msra.mxu0 %v9879_v16 }
 0x1ef   :  { %4728 = vrot.lane.b32.xlu1 %v4687_v17, %s7631_s0  ;;  %v4605_v46 = vadd.f32 %v4604_v52, %v4578_v57  ;;  %v4695_v27 = vrot.slane %v4687_v17, 5  ;;  %v4907_v17 = vsub.f32 %v9866_v0, %v12148_v20  ;;  %v12145_v51 = vand.u32 4294901760, %v9911_v49  ;;  %v4787_v52 = vld [vmem:[%s12123_s4 + $0x10] sm:$0xff]  ;;  %4891 = vmatpush.msra.mxu1 %v4890_v24 }
 0x1f0   :  { %v4637_v33 = vpop.f32.mrf.mxu2  ;;  %v9935_v56 = vsub.f32 %v4792_v60, %v9913_v13  ;;  %v9965_v19 = vsub.f32 %v4789_v54, %v9927_v2  ;;  %v4816_v60 = vld [vmem:[%s12123_s4 + $0xf8] sm:$0xff]  ;;  %v4914_v48 = vand.u32 4294901760, %v4913_v25  ;;  %4998 = vmatpush.msra.mxu2 %v9911_v49  ;;  %5046 = vmatpush.msra.mxu3 %v9913_v13  ;;  %v4693_v25 = vrot.slane %v9765_v11, 5 }
 0x1f1   :  { %v4638_v6 = vadd.f32 %v4637_v33, %v4605_v46  ;;  %v4902_v46 = vand.u32 4294901760, %v4901_v7  ;;  %4897 = vmatpush.msra.mxu1 %v4896_v62  ;;  %v4908_v53 = vand.u32 4294901760, %v4907_v17  ;;  %v4814_v7 = vld [vmem:[%s12123_s4 + $0xe8] sm:$0xff]  ;;  %v10007_v62 = vand.u32 4294901760, %v4785_v44  ;;  %4850 = vmatpush.msra.mxu0 %v9913_v13 }
 0x1f2   :  { %v12144_v33 = vand.u32 4294901760, %v9935_v56  ;;  %v12150_v24 = vand.u32 4294901760, %v9965_v19  ;;  %v10009_v17 = vand.u32 4294901760, %v4816_v60  ;;  %5001 = vmatpush.msra.mxu2 %v9935_v56  ;;  %5048 = vmatpush.msra.mxu3 %v9915_v50  ;;  %v10030_v8 = vand.u32 4294901760, %v4814_v7 }
 0x1f3   :  { %v4662_v34 = vpop.f32.mrf.mxu3  ;;  %4903 = vmatpush.msra.mxu1 %v4902_v46  ;;  %v10011_v46 = vand.u32 4294901760, %v4815_v23  ;;  %4852 = vmatpush.msra.mxu0 %v9915_v50 }
 0x1f4   :  { %v4663_v37 = vadd.f32 %v4662_v34, %v4638_v6  ;;  %v4919_v6 = vsub.f32 %v9911_v49, %v12145_v51  ;;  %v12143_v34 = vand.u32 4294901760, %v9938_v39  ;;  %v4925_v59 = vsub.f32 %v9935_v56, %v12144_v33  ;;  %5004 = vmatpush.msra.mxu2 %v9938_v39  ;;  %5050 = vmatpush.msra.mxu3 %v9925_v14 }
 0x1f5   :  { %4909 = vmatpush.msra.mxu1 %v4908_v53  ;;  %v10025_v33 = vsub.f32 %v4786_v12, %v9992_v22  ;;  %v10028_v51 = vsub.f32 %v4816_v60, %v10009_v17  ;;  %v4812_v12 = vld [vmem:[%s12123_s4 + $0xd8] sm:$0xff]  ;;  %4854 = vmatpush.msra.mxu0 %v9925_v14 }
 0x1f6   :  { %v4670_v32 = vmax.f32 %v3511_v35, %v4663_v37  ;;  %v9971_v35 = vand.u32 4294901760, %v4787_v52  ;;  %v12147_v37 = vand.u32 4294901760, %v9944_v28  ;;  %v4920_v54 = vand.u32 4294901760, %v4919_v6  ;;  %5007 = vmatpush.msra.mxu2 %v9944_v28  ;;  %5052 = vmatpush.msra.mxu3 %v9927_v2 }
 0x1f7   :  { %4701 = vrot.lane.b32.xlu1 %v4695_v27, %s7631_s0  ;;  %v9977_v27 = vsub.f32 %v4788_v21, %v9946_v9  ;;  %4915 = vmatpush.msra.mxu1 %v4914_v48  ;;  %v10038_v48 = vsub.f32 %v4815_v23, %v10011_v46  ;;  %v12157_v23 = vand.u32 4294901760, %v10028_v51 }
 0x1f8   :  { %v9921_v36 = vadd.f32 %v9760_v18, %v4670_v32  ;;  %v4931_v32 = vsub.f32 %v9938_v39, %v12143_v34  ;;  %v10005_v21 = vsub.f32 %v4787_v52, %v9971_v35  ;;  %v4937_v6 = vsub.f32 %v9944_v28, %v12147_v37  ;;  %v4813_v52 = vld [vmem:[%s12123_s4 + $0xe0] sm:$0xff]  ;;  %5010 = vmatpush.msra.mxu2 %v9965_v19 }
 0x1f9   :  { %v12152_v53 = vand.u32 4294901760, %v9977_v27  ;;  %v4926_v34 = vand.u32 4294901760, %v4925_v59  ;;  %v4943_v37 = vsub.f32 %v9965_v19, %v12150_v24  ;;  %4921 = vmatpush.msra.mxu1 %v4920_v54  ;;  %v10048_v20 = vand.u32 4294901760, %v4813_v52  ;;  %v4811_v54 = vld [vmem:[%s12123_s4 + $0xd0] sm:$0xff]  ;;  %5054 = vmatpush.msra.mxu3 %v9946_v9 }
 0x1fa   :  { %v4688_v57 = vmax.f32 %v9921_v36, 0.0  ;;  %v4932_v60 = vand.u32 4294901760, %v4931_v32  ;;  %v12155_v59 = vand.u32 4294901760, %v10005_v21  ;;  %v4938_v42 = vand.u32 4294901760, %v4937_v6  ;;  %5013 = vmatpush.msra.mxu2 %v9977_v27  ;;  %4856 = vmatpush.msra.mxu0 %v9927_v2 }
 0x1fb   :  { %4927 = vmatpush.msra.mxu1 %v4926_v34  ;;  %v4949_v32 = vsub.f32 %v9977_v27, %v12152_v53  ;;  %v10062_v6 = vsub.f32 %v4814_v7, %v10030_v8  ;;  %v10064_v24 = vand.u32 4294901760, %v4812_v12  ;;  %v4944_v5 = vand.u32 4294901760, %v4943_v37  ;;  %5056 = vmatpush.msra.mxu3 %v9971_v35 }
 0x1fc   :  { %4730 = vrot.lane.b32.xlu2 %v4688_v57, %s7631_s0  ;;  %v12158_v34 = vand.u32 4294901760, %v10038_v48  ;;  %v4955_v53 = vsub.f32 %v10005_v21, %v12155_v59  ;;  %v10075_v7 = vsub.f32 %v4813_v52, %v10048_v20  ;;  %v10077_v3 = vand.u32 4294901760, %v4811_v54  ;;  %5016 = vmatpush.msra.mxu2 %v10005_v21 }
 0x1fd   :  { %4933 = vmatpush.msra.mxu1 %v4932_v60  ;;  %v4696_v37 = vrot.slane %v4688_v57, 5  ;;  %v5218_v60 = vsub.f32 %v10028_v51, %v12157_v23  ;;  %v4950_v59 = vand.u32 4294901760, %v4949_v32  ;;  %v5229_v30 = vand.u32 4294901760, %v10062_v6  ;;  %4858 = vmatpush.msra.mxu0 %v9946_v9 }
 0x1fe   :  { %v10092_v36 = vsub.f32 %v4812_v12, %v10064_v24  ;;  %v4956_v57 = vand.u32 4294901760, %v4955_v53  ;;  %v5235_v23 = vand.u32 4294901760, %v10075_v7  ;;  %v10105_v12 = vsub.f32 %v4811_v54, %v10077_v3  ;;  %5019 = vmatpush.msra.mxu2 %v10025_v33  ;;  %5058 = vmatpush.msra.mxu3 %v9992_v22 }
 0x1ff   :  { %4939 = vmatpush.msra.mxu1 %v4938_v42  ;;  %v5224_v42 = vsub.f32 %v10038_v48, %v12158_v34  ;;  %4860 = vmatpush.msra.mxu0 %v9971_v35 }
 0x200   :  { %v12171_v53 = vand.u32 4294901760, %v10092_v36  ;;  %5060 = vmatpush.msra.mxu3 %v10007_v62 }
 0x201   :  { %4945 = vmatpush.msra.mxu1 %v4944_v5  ;;  %v5230_v5 = vsub.f32 %v10062_v6, %v5229_v30  ;;  %v5225_v54 = vand.u32 4294901760, %v5224_v42  ;;  %4862 = vmatpush.msra.mxu0 %v9992_v22 }
 0x202   :  { %v5242_v42 = vsub.f32 %v10092_v36, %v12171_v53 }
 0x203   :  { %4951 = vmatpush.msra.mxu1 %v4950_v59  ;;  %v5236_v59 = vsub.f32 %v10075_v7, %v5235_v23  ;;  %4864 = vmatpush.msra.mxu0 %v10007_v62 }
 0x204   :  { %4697 = vrot.lane.b32.xlu2 %v4693_v25, %s7631_s0  ;;  %v10046_v25 = vsub.f32 %v4785_v44, %v10007_v62  ;;  %v4960_v44 = vand.u32 4294901760, %v10025_v33 }
 0x205   :  { %4957 = vmatpush.msra.mxu1 %v4956_v57  ;;  %v5237_v57 = vand.u32 4294901760, %v5236_v59 }
 0x206   :  { %v12159_v41 = vand.u32 4294901760, %v10046_v25  ;;  %v4961_v52 = vsub.f32 %v10025_v33, %v4960_v44  ;;  %5022 = vmatpush.msra.mxu2 %v10046_v25  ;;  %v12352_v33 = vand.u32 4294901760, %v10046_v25 }
 0x208   :  { %v4967_v32 = vsub.f32 %v10046_v25, %v12159_v41  ;;  %v4962_v34 = vand.u32 4294901760, %v4961_v52  ;;  %5175 = vmatpush.msrb.mxu2 %v10009_v17  ;;  %v5231_v52 = vand.u32 4294901760, %v5230_v5  ;;  %v4810_v5 = vld [vmem:[%s12123_s4 + $0xc8] sm:$0xff] }
 0x20a   :  { %v4968_v41 = vand.u32 4294901760, %v4967_v32  ;;  %4963 = vmatpush.msra.mxu1 %v4962_v34  ;;  %5177 = vmatpush.msrb.mxu2 %v10011_v46  ;;  %v12328_v34 = vand.u32 4294901760, %v9834_v40  ;;  %v12330_v40 = vand.u32 4294901760, %v9840_v61  ;;  %v12333_v61 = vand.u32 4294901760, %v9866_v0 }
 0x20b   :  { %v12335_v0 = vand.u32 4294901760, %v9911_v49 }
 0x20c   :  { %4703 = vrot.lane.b32.xlu2 %v4696_v37, %s7631_s0  ;;  %v5219_v37 = vand.u32 4294901760, %v5218_v60  ;;  %v12170_v60 = vand.u32 4294901760, %v10105_v12  ;;  %4969 = vmatpush.msra.mxu1 %v4968_v41  ;;  %v12329_v41 = vand.u32 4294901760, %v9837_v47  ;;  %v12331_v47 = vand.u32 4294901760, %v9844_v55  ;;  %v4809_v55 = vld [vmem:[%s12123_s4 + $0xc0] sm:$0xff] }
 0x20d   :  { %5179 = vmatpush.msrb.mxu2 %v10030_v8  ;;  %5071 = vmatpush.msrb.mxu0 %v12328_v34 }
 0x20e   :  { %5220 = vmatpush.msrb.mxu3 %v5219_v37  ;;  %v5248_v32 = vsub.f32 %v10105_v12, %v12170_v60  ;;  %5138 = vmatpush.msrb.mxu1 %v9810_v4  ;;  %v5243_v37 = vand.u32 4294901760, %v5242_v42 }
 0x20f   :  { %5181 = vmatpush.msrb.mxu2 %v10048_v20  ;;  %5075 = vmatpush.msrb.mxu0 %v12329_v41 }
 0x210   :  { %5226 = vmatpush.msrb.mxu3 %v5225_v54  ;;  %5140 = vmatpush.msrb.mxu1 %v9812_v63  ;;  %v5249_v4 = vand.u32 4294901760, %v5248_v32  ;;  %v10146_v63 = vand.u32 4294901760, %v4810_v5 }
 0x211   :  { %5183 = vmatpush.msrb.mxu2 %v10064_v24  ;;  %5079 = vmatpush.msrb.mxu0 %v12330_v40 }
 0x212   :  { %5232 = vmatpush.msrb.mxu3 %v5231_v52  ;;  %5142 = vmatpush.msrb.mxu1 %v9814_v10  ;;  %v12332_v10 = vand.u32 4294901760, %v9848_v1  ;;  %v10168_v1 = vsub.f32 %v4810_v5, %v10146_v63  ;;  %v4805_v52 = vld [vmem:[%s12123_s4 + $0xa0] sm:$0xff] }
 0x213   :  { %5185 = vmatpush.msrb.mxu2 %v10077_v3  ;;  %5083 = vmatpush.msrb.mxu0 %v12331_v47 }
 0x214   :  { %5238 = vmatpush.msrb.mxu3 %v5237_v57  ;;  %5144 = vmatpush.msrb.mxu1 %v9822_v43  ;;  %v12334_v43 = vand.u32 4294901760, %v9896_v38  ;;  %v12168_v49 = vand.u32 4294901760, %v10168_v1  ;;  %v10196_v57 = vand.u32 4294901760, %v4805_v52 }
 0x215   :  { %5187 = vmatpush.msrb.mxu2 %v10146_v63  ;;  %5087 = vmatpush.msrb.mxu0 %v12332_v10  ;;  %v12337_v10 = vand.u32 4294901760, %v9938_v39 }
 0x216   :  { %5244 = vmatpush.msrb.mxu3 %v5243_v37  ;;  %5146 = vmatpush.msrb.mxu1 %v9824_v29  ;;  %v10165_v29 = vand.u32 4294901760, %v4809_v55  ;;  %v12336_v37 = vand.u32 4294901760, %v9935_v56  ;;  %v5254_v41 = vsub.f32 %v10168_v1, %v12168_v49 }
 0x217   :  { %5091 = vmatpush.msrb.mxu0 %v12333_v61 }
 0x218   :  { %5250 = vmatpush.msrb.mxu3 %v5249_v4  ;;  %5148 = vmatpush.msrb.mxu1 %v9850_v45  ;;  %v4808_v45 = vld [vmem:[%s12123_s4 + $0xb8] sm:$0xff]  ;;  %v10194_v42 = vsub.f32 %v4809_v55, %v10165_v29  ;;  %v10216_v4 = vsub.f32 %v4805_v52, %v10196_v57  ;;  %v5255_v61 = vand.u32 4294901760, %v5254_v41 }
 0x219   :  { %5095 = vmatpush.msrb.mxu0 %v12334_v43  ;;  %v10181_v38 = vand.u32 4294901760, %v4808_v45  ;;  %5189 = vmatpush.msrb.mxu2 %v10165_v29  ;;  %v12339_v52 = vld [vmem:[#allocation27_spill] sm:$0xff] }
 0x21a   :  { %5150 = vmatpush.msrb.mxu1 %v9860_v26  ;;  %v4807_v26 = vld [vmem:[%s12123_s4 + $0xb0] sm:$0xff]  ;;  %v12167_v5 = vand.u32 4294901760, %v10194_v42  ;;  %v12166_v55 = vand.u32 4294901760, %v10216_v4  ;;  %5256 = vmatpush.msrb.mxu3 %v5255_v61  ;;  %v12342_v61 = vld [vmem:[#allocation5_spill] sm:$0xff] }
 0x21b   :  { %5099 = vmatpush.msrb.mxu0 %v12335_v0  ;;  %v10183_v54 = vand.u32 4294901760, %v4807_v26  ;;  %v10199_v32 = vsub.f32 %v4808_v45, %v10181_v38  ;;  %5191 = vmatpush.msrb.mxu2 %v10181_v38 }
 0x21c   :  { %5152 = vmatpush.msrb.mxu1 %v9879_v16  ;;  %v4806_v16 = vld [vmem:[%s12123_s4 + $0xa8] sm:$0xff]  ;;  %v5260_v43 = vsub.f32 %v10194_v42, %v12167_v5  ;;  %v12366_v5 = vld [vmem:[#allocation55_spill] sm:$0xff] }
 0x21d   :  { %v10185_v59 = vand.u32 4294901760, %v4806_v16  ;;  %v10202_v34 = vsub.f32 %v4807_v26, %v10183_v54  ;;  %5103 = vmatpush.msrb.mxu0 %v12336_v37  ;;  %v12162_v40 = vand.u32 4294901760, %v10199_v32  ;;  %5193 = vmatpush.msrb.mxu2 %v10183_v54  ;;  %v12338_v26 = vand.u32 4294901760, %v9944_v28  ;;  %v12340_v37 = vld [vmem:[#allocation28_spill] sm:$0xff] }
 0x21e   :  { %5154 = vmatpush.msrb.mxu1 %v9913_v13  ;;  %v5261_v0 = vand.u32 4294901760, %v5260_v43  ;;  %v1305_v41 = vadd.f32 %v12340_v37, %v12339_v52  ;;  %v12343_v43 = vld [vmem:[#allocation6_spill] sm:$0xff] }
 0x21f   :  { %v10207_v13 = vsub.f32 %v4806_v16, %v10185_v59  ;;  %v12160_v56 = vand.u32 4294901760, %v10202_v34  ;;  %5107 = vmatpush.msrb.mxu0 %v12337_v10  ;;  %v5266_v39 = vsub.f32 %v10199_v32, %v12162_v40  ;;  %5195 = vmatpush.msrb.mxu2 %v10185_v59  ;;  %v12345_v40 = vld [vmem:[#allocation49_spill] sm:$0xff] }
 0x220   :  { %5156 = vmatpush.msrb.mxu1 %v9915_v50  ;;  %v4804_v50 = vld [vmem:[%s12123_s4 + $0x98] sm:$0xff]  ;;  %5262 = vmatpush.msrb.mxu3 %v5261_v0  ;;  %v12347_v0 = vld [vmem:[#allocation29_spill] sm:$0xff] }
 0x221   :  { %v12161_v47 = vand.u32 4294901760, %v10207_v13  ;;  %v5272_v45 = vsub.f32 %v10202_v34, %v12160_v56  ;;  %5111 = vmatpush.msrb.mxu0 %v12338_v26  ;;  %v10244_v16 = vand.u32 4294901760, %v4804_v50  ;;  %v5267_v10 = vand.u32 4294901760, %v5266_v39  ;;  %5197 = vmatpush.msrb.mxu2 %v10196_v57 }
 0x222   :  { %5158 = vmatpush.msrb.mxu1 %v9925_v14  ;;  %v12341_v56 = vand.u32 4294901760, %v9965_v19  ;;  %v152_v26 = vadd.f32 %v12343_v43, %v12342_v61  ;;  %v4803_v19 = vld [vmem:[%s12123_s4 + $0x90] sm:$0xff] }
 0x223   :  { %v5278_v14 = vsub.f32 %v10207_v13, %v12161_v47  ;;  %v5273_v28 = vand.u32 4294901760, %v5272_v45  ;;  %v12344_v47 = vld [vmem:[#allocation48_spill] sm:$0xff]  ;;  %5268 = vmatpush.msrb.mxu3 %v5267_v10  ;;  %v10266_v39 = vand.u32 4294901760, %v4803_v19  ;;  %v10269_v45 = vsub.f32 %v4804_v50, %v10244_v16  ;;  %5199 = vmatpush.msrb.mxu2 %v10244_v16  ;;  %v12350_v61 = vld [vmem:[#allocation50_spill] sm:$0xff] }
 0x224   :  { %5160 = vmatpush.msrb.mxu1 %v9927_v2  ;;  %5115 = vmatpush.msrb.mxu0 %v12341_v56  ;;  %v5284_v2 = vsub.f32 %v10216_v4, %v12166_v55  ;;  %v2464_v52 = vadd.f32 %v12345_v40, %v12344_v47  ;;  %v12346_v56 = vand.u32 4294901760, %v9977_v27  ;;  %v1335_v40 = vadd.f32 %v12347_v0, %v1305_v41  ;;  %v4802_v47 = vld [vmem:[%s12123_s4 + $0x88] sm:$0xff]  ;;  %v12349_v41 = vld [vmem:[#allocation7_spill] sm:$0xff] }
 0x225   :  { %v12348_v27 = vand.u32 4294901760, %v10005_v21  ;;  %5274 = vmatpush.msrb.mxu3 %v5273_v28  ;;  %v10280_v37 = vand.u32 4294901760, %v4802_v47  ;;  %v10283_v50 = vsub.f32 %v4803_v19, %v10266_v39  ;;  %v182_v10 = vadd.f32 %v12349_v41, %v152_v26  ;;  %5201 = vmatpush.msrb.mxu2 %v10266_v39  ;;  %v4801_v21 = vld [vmem:[%s12123_s4 + $0x80] sm:$0xff]  ;;  %v12354_v0 = vld [vmem:[#allocation51_spill] sm:$0xff]  ;;  %v12362_v55 = vld [vmem:[#allocation53_spill] sm:$0xff] }
 0x226   :  { %5162 = vmatpush.msrb.mxu1 %v9946_v9  ;;  %5119 = vmatpush.msrb.mxu0 %v12346_v56  ;;  %v5279_v9 = vand.u32 4294901760, %v5278_v14  ;;  %v5285_v14 = vand.u32 4294901760, %v5284_v2  ;;  %v2494_v43 = vadd.f32 %v12350_v61, %v2464_v52  ;;  %v10298_v2 = vand.u32 4294901760, %v4801_v21  ;;  %v12351_v52 = vld [vmem:[#allocation30_spill] sm:$0xff]  ;;  %v12353_v56 = vld [vmem:[#allocation8_spill] sm:$0xff]  ;;  %v12355_v41 = vld [vmem:[#allocation31_spill] sm:$0xff] }
 0x227   :  { %v12163_v28 = vand.u32 4294901760, %v10283_v50  ;;  %v10301_v26 = vsub.f32 %v4802_v47, %v10280_v37  ;;  %v1362_v19 = vadd.f32 %v12351_v52, %v1335_v40  ;;  %5203 = vmatpush.msrb.mxu2 %v10280_v37  ;;  %v12357_v52 = vld [vmem:[#allocation52_spill] sm:$0xff] }
 0x228   :  { %5164 = vmatpush.msrb.mxu1 %v9971_v35  ;;  %5123 = vmatpush.msrb.mxu0 %v12348_v27  ;;  %v12165_v35 = vand.u32 4294901760, %v10269_v45  ;;  %v2521_v27 = vadd.f32 %v12354_v0, %v2494_v43  ;;  %v10315_v40 = vsub.f32 %v4801_v21, %v10298_v2  ;;  %v12359_v0 = vld [vmem:[#allocation10_spill] sm:$0xff] }
 0x229   :  { %5280 = vmatpush.msrb.mxu3 %v5279_v9  ;;  %v209_v9 = vadd.f32 %v12353_v56, %v182_v10  ;;  %5205 = vmatpush.msrb.mxu2 %v10298_v2  ;;  %v12164_v47 = vand.u32 4294901760, %v10301_v26  ;;  %v12356_v10 = vld [vmem:[#allocation9_spill] sm:$0xff] }
 0x22a   :  { %5166 = vmatpush.msrb.mxu1 %v9992_v22  ;;  %5127 = vmatpush.msrb.mxu0 %v4960_v44  ;;  %v5290_v22 = vsub.f32 %v10269_v45, %v12165_v35 }
 0x22b   :  { %5286 = vmatpush.msrb.mxu3 %v5285_v14  ;;  %v1395_v14 = vadd.f32 %v12355_v41, %v1362_v19  ;;  %v5302_v61 = vsub.f32 %v10301_v26, %v12164_v47  ;;  %v242_v43 = vadd.f32 %v12356_v10, %v209_v9  ;;  %v12361_v47 = vld [vmem:[#allocation34_spill] sm:$0xff]  ;;  %v12363_v9 = vld [vmem:[#allocation11_spill] sm:$0xff]  ;;  %v12364_v10 = vld [vmem:[#allocation12_spill] sm:$0xff] }
 0x22c   :  { %5168 = vmatpush.msrb.mxu1 %v10007_v62  ;;  %5131 = vmatpush.msrb.mxu0 %v12352_v33  ;;  %v5291_v44 = vand.u32 4294901760, %v5290_v22  ;;  %v5296_v62 = vsub.f32 %v10283_v50, %v12163_v28  ;;  %v12169_v22 = vand.u32 4294901760, %v10315_v40  ;;  %v2554_v33 = vadd.f32 %v12357_v52, %v2521_v27  ;;  %v12360_v28 = vld [vmem:[#allocation33_spill] sm:$0xff]  ;;  %v12365_v52 = vld [vmem:[#allocation54_spill] sm:$0xff] }
 0x22d   :  { %v5303_v56 = vand.u32 4294901760, %v5302_v61  ;;  %v267_v41 = vadd.f32 %v12359_v0, %v242_v43  ;;  %v1490_v35 = vadd.f32 %v12361_v47, %v12360_v28  ;;  %v337_v27 = vadd.f32 %v12364_v10, %v12363_v9  ;;  %v12370_v0 = vld [vmem:[#allocation56_spill] sm:$0xff]  ;;  %v12373_v9 = vld [vmem:[#allocation37_spill] sm:$0xff] }
 0x22e   :  { %5292 = vmatpush.msrb.mxu3 %v5291_v44  ;;  %v5297_v25 = vand.u32 4294901760, %v5296_v62  ;;  %v5308_v21 = vsub.f32 %v10315_v40, %v12169_v22  ;;  %v12358_v44 = vld [vmem:[#allocation32_spill] sm:$0xff]  ;;  %v2649_v49 = vadd.f32 %v12366_v5, %v12365_v52  ;;  %v12367_v22 = vld [vmem:[#allocation35_spill] sm:$0xff] }
 0x22f   :  { %v1420_v62 = vadd.f32 %v12358_v44, %v1395_v14  ;;  %v1520_v60 = vadd.f32 %v12367_v22, %v1490_v35  ;;  %v12369_v44 = vld [vmem:[#allocation36_spill] sm:$0xff]  ;;  %v12374_v5 = vld [vmem:[#allocation15_spill] sm:$0xff]  ;;  %v12375_v35 = vld [vmem:[#allocation58_spill] sm:$0xff] }
 0x230   :  { %5298 = vmatpush.msrb.mxu3 %v5297_v25  ;;  %v5309_v19 = vand.u32 4294901760, %v5308_v21  ;;  %v2579_v25 = vadd.f32 %v12362_v55, %v2554_v33  ;;  %v2679_v53 = vadd.f32 %v12370_v0, %v2649_v49  ;;  %v12371_v55 = vld [vmem:[#allocation14_spill] sm:$0xff]  ;;  %v12372_v33 = vld [vmem:[#allocation57_spill] sm:$0xff] }
 0x231   :  { %v2347_v61 = vmax.f32 %v267_v41, %v1420_v62  ;;  %v1547_v43 = vadd.f32 %v12369_v44, %v1520_v60  ;;  %v12377_v60 = vld [vmem:[#allocation16_spill] sm:$0xff] }
 0x232   :  { %5304 = vmatpush.msrb.mxu3 %v5303_v56  ;;  %v12368_v56 = vld [vmem:[#allocation13_spill] sm:$0xff] }
 0x233   :  { %v3506_v14 = vmax.f32 %v2347_v61, %v2579_v25  ;;  %v367_v21 = vadd.f32 %v12368_v56, %v337_v27  ;;  %v1580_v62 = vadd.f32 %v12373_v9, %v1547_v43  ;;  %v12376_v25 = vld [vmem:[#allocation38_spill] sm:$0xff] }
 0x234   :  { %5310 = vmatpush.msrb.mxu3 %v5309_v19  ;;  %v2706_v19 = vadd.f32 %v12372_v33, %v2679_v53 }
 0x235   :  { %v4665_v28 = vmax.f32 %v3506_v14, %v9725_v31  ;;  %v394_v47 = vadd.f32 %v12371_v55, %v367_v21  ;;  %v1605_v27 = vadd.f32 %v12376_v25, %v1580_v62 }
 0x236   :  { %v2739_v22 = vadd.f32 %v12375_v35, %v2706_v19  ;;  %v12378_v19 = vand.u32 4294901760, %v10028_v51 }
 0x237   :  { %v4677_v41 = vadd.f32 %v9760_v18, %v4665_v28  ;;  %v427_v10 = vadd.f32 %v12374_v5, %v394_v47 }
 0x238   :  { %v2764_v49 = vadd.f32 %v9657_v58, %v2739_v22  ;;  %v4828_v22 = vld [vmem:[%s12123_s4 + $0x158] sm:$0xff] }
 0x239   :  { %v4683_v61 = vmax.f32 %v4677_v41, 0.0  ;;  %v452_v52 = vadd.f32 %v12377_v60, %v427_v10  ;;  %v10401_v25 = vand.u32 4294901760, %v4828_v22 }
 0x23b   :  { %v2348_v31 = vmax.f32 %v452_v52, %v1605_v27  ;;  %v4718_v56 = vrot.slane %v4683_v61, 3  ;;  %v4827_v27 = vld [vmem:[%s12123_s4 + $0x150] sm:$0xff] }
 0x23d   :  { %v3507_v44 = vmax.f32 %v2348_v31, %v2764_v49  ;;  %v12383_v49 = vand.u32 4294901760, %v10194_v42  ;;  %v4825_v31 = vld [vmem:[%s12123_s4 + $0x140] sm:$0xff] }
 0x23f   :  { %v4666_v28 = vmax.f32 %v3507_v44, %v9734_v15  ;;  %v12379_v15 = vand.u32 4294901760, %v10038_v48 }
 0x241   :  { %v10357_v33 = vadd.f32 %v9760_v18, %v4666_v28 }
 0x243   :  { %v4725_v14 = vpop.permute.xlu0 %4724  ;;  %v4684_v41 = vmax.f32 %v10357_v33, 0.0 }
 0x251   :  { %v4727_v53 = vpop.permute.xlu1 %4726 }
 0x252   :  { %v4732_v21 = vsel %vm4705_vm2, %v4725_v14, %v4727_v53 }
 0x253   :  { %v4738_v43 = vsel %vm4712_vm3, %v4718_v56, %v4732_v21  ;;  %v4700_v18 = vpop.permute.xlu0 %4699 }
 0x254   :  { %v4865_v0 = vand.u32 4294901760, %v4738_v43 }
 0x256   :  { %v10353_v55 = vpop.permute.xlu2 %4730  ;;  %v4866_v47 = vsub.f32 %v4738_v43, %v4865_v0  ;;  %4971 = vmatmul.f32.vlgmr.msra.gmra.mxu1 %v4865_v0  ;;  %v12384_v43 = vand.u32 4294901760, %v10199_v32 }
 0x257   :  { %5371 = vmatpush.msra.mxu1 %v10009_v17 }
 0x258   :  { %v4867_v58 = vand.u32 4294901760, %v4866_v47  ;;  %5025 = vmatmul.f32.vlgmr.msra.gmra.mxu2 %v4866_v47 }
 0x259   :  { %5373 = vmatpush.msra.mxu1 %v10011_v46  ;;  %5412 = vmatpush.msra.mxu2 %v12378_v19 }
 0x25a   :  { %v4868_v9 = vsub.f32 %v4866_v47, %v4867_v58  ;;  %5064 = vmatmul.f32.vlgmr.msra.gmra.mxu3 %v4867_v58  ;;  %v10458_v58 = vand.u32 4294901760, %v4825_v31 }
 0x25b   :  { %5375 = vmatpush.msra.mxu1 %v10030_v8  ;;  %5416 = vmatpush.msra.mxu2 %v12379_v15 }
 0x25c   :  { %v4869_v62 = vand.u32 4294901760, %v4868_v9  ;;  %5479 = vmatpush.msra.mxu3 %v10009_v17  ;;  %v4719_v17 = vrot.slane %v4684_v41, 3  ;;  %v4823_v9 = vld [vmem:[%s12123_s4 + $0x130] sm:$0xff]  ;;  %v10480_v15 = vsub.f32 %v4825_v31, %v10458_v58 }
 0x25d   :  { %5377 = vmatpush.msra.mxu1 %v10048_v20  ;;  %5420 = vmatpush.msra.mxu2 %v5229_v30 }
 0x25e   :  { %v4698_v5 = vpop.permute.xlu2 %4697  ;;  %5481 = vmatpush.msra.mxu3 %v10011_v46  ;;  %4870 = vmatmul.f32.vlgmr.msra.gmra.mxu0 %v4869_v62  ;;  %v4822_v62 = vld [vmem:[%s12123_s4 + $0x128] sm:$0xff] }
 0x25f   :  { %v4706_v10 = vsel %vm4705_vm2, %v4698_v5, %v4700_v18  ;;  %5170 = vmatmul.f32.vlgmr.msrb.gmra.mxu1 %v4865_v0  ;;  %5318 = vmatpush.msra.mxu0 %v10028_v51  ;;  %v12380_v51 = vand.u32 4294901760, %v10092_v36 }
 0x260   :  { %v10374_v35 = vsel %vm4712_vm3, %v4683_v61, %v4706_v10  ;;  %5379 = vmatpush.msra.mxu1 %v10064_v24  ;;  %5424 = vmatpush.msra.mxu2 %v5235_v23  ;;  %v10419_v61 = vand.u32 4294901760, %v4827_v27  ;;  %v10504_v10 = vand.u32 4294901760, %v4822_v62 }
 0x261   :  { %v10379_v30 = vpop.permute.xlu1 %4728  ;;  %5483 = vmatpush.msra.mxu3 %v10030_v8  ;;  %5321 = vmatpush.msra.mxu0 %v10038_v48  ;;  %v12381_v48 = vand.u32 4294901760, %v10105_v12 }
 0x262   :  { %v4733_v46 = vsel %vm4705_vm2, %v4727_v53, %v10379_v30  ;;  %5381 = vmatpush.msra.mxu1 %v10077_v3  ;;  %5428 = vmatpush.msra.mxu2 %v12380_v51  ;;  %v10456_v47 = vsub.f32 %v4827_v27, %v10419_v61  ;;  %v4820_v51 = vld [vmem:[%s12123_s4 + $0x118] sm:$0xff] }
 0x263   :  { %v4739_v23 = vsel %vm4712_vm3, %v4719_v17, %v4733_v46  ;;  %5485 = vmatpush.msra.mxu3 %v10048_v20  ;;  %5324 = vmatpush.msra.mxu0 %v10062_v6  ;;  %v12382_v6 = vand.u32 4294901760, %v10168_v1  ;;  %v5576_v46 = vand.u32 4294901760, %v10480_v15 }
 0x264   :  { %v10394_v8 = vand.u32 4294901760, %v4739_v23  ;;  %5383 = vmatpush.msra.mxu1 %v10146_v63  ;;  %5432 = vmatpush.msra.mxu2 %v12381_v48 }
 0x265   :  { %5487 = vmatpush.msra.mxu3 %v10064_v24  ;;  %5327 = vmatpush.msra.mxu0 %v10075_v7  ;;  %v4826_v24 = vld [vmem:[%s12123_s4 + $0x148] sm:$0xff] }
 0x266   :  { %v10407_v20 = vsub.f32 %v4739_v23, %v10394_v8  ;;  %5312 = vmatmul.f32.vlgmr.msrb.gmra.mxu3 %v10394_v8  ;;  %5385 = vmatpush.msra.mxu1 %v10165_v29  ;;  %v4704_v60 = vpop.permute.xlu2 %4703 }
 0x267   :  { %5436 = vmatpush.msra.mxu2 %v12382_v6  ;;  %5489 = vmatpush.msra.mxu3 %v10077_v3  ;;  %v10425_v3 = vsub.f32 %v4828_v22, %v10401_v25  ;;  %v10536_v6 = vsub.f32 %v4822_v62, %v10504_v10 }
 0x268   :  { %v5208_v7 = vand.u32 4294901760, %v10407_v20  ;;  %5133 = vmatmul.f32.vlgmr.msrb.gmra.mxu0 %v4865_v0  ;;  %5387 = vmatpush.msra.mxu1 %v10181_v38 }
 0x269   :  { %v4702_v52 = vpop.permute.xlu1 %4701  ;;  %5330 = vmatpush.msra.mxu0 %v10092_v36  ;;  %5440 = vmatpush.msra.mxu2 %v12383_v49  ;;  %v10437_v36 = vand.u32 4294901760, %v4826_v24  ;;  %v5558_v33 = vand.u32 4294901760, %v10425_v3 }
 0x26a   :  { %v5209_v14 = vsub.f32 %v10407_v20, %v5208_v7  ;;  %v4707_v53 = vsel %vm4705_vm2, %v4700_v18, %v4702_v52  ;;  %v4708_v56 = vsel %vm4705_vm2, %v4702_v52, %v4704_v60  ;;  %5491 = vmatpush.msra.mxu3 %v10146_v63  ;;  %5389 = vmatpush.msra.mxu1 %v10183_v54  ;;  %v4824_v63 = vld [vmem:[%s12123_s4 + $0x138] sm:$0xff] }
 0x26b   :  { %v10440_v21 = vsel %vm4712_vm3, %v4684_v41, %v4707_v53  ;;  %v4715_v44 = vsel %vm4712_vm3, %v9765_v11, %v4708_v56  ;;  %5333 = vmatpush.msra.mxu0 %v10105_v12  ;;  %5444 = vmatpush.msra.mxu2 %v12384_v43  ;;  %v12385_v12 = vand.u32 4294901760, %v10202_v34  ;;  %v10466_v19 = vsub.f32 %v4826_v24, %v10437_v36 }
 0x26c   :  { %v5210_v0 = vand.u32 4294901760, %v5209_v14  ;;  %v10451_v28 = vsel %vm4829_vm4, %v4715_v44, 0  ;;  %5493 = vmatpush.msra.mxu3 %v10165_v29  ;;  %5391 = vmatpush.msra.mxu1 %v10185_v59  ;;  %v10468_v29 = vand.u32 4294901760, %v4824_v63  ;;  %v12387_v41 = vand.u32 4294901760, %v10216_v4 }
 0x26d   :  { %5336 = vmatpush.msra.mxu0 %v10168_v1  ;;  %5448 = vmatpush.msra.mxu2 %v12385_v12  ;;  %v12386_v1 = vand.u32 4294901760, %v10207_v13  ;;  %v5570_v18 = vand.u32 4294901760, %v10466_v19  ;;  %v10538_v24 = vand.u32 4294901760, %v4820_v51  ;;  %v5577_v52 = vsub.f32 %v10480_v15, %v5576_v46 }
 0x26e   :  { %5211 = vmatmul.f32.vlgmr.msrb.gmra.mxu2 %v5210_v0  ;;  %5495 = vmatpush.msra.mxu3 %v10181_v38  ;;  %v5564_v38 = vand.u32 4294901760, %v10456_v47  ;;  %v10497_v5 = vsub.f32 %v4824_v63, %v10468_v29  ;;  %v12391_v14 = vand.u32 4294901760, %v10315_v40 }
 0x26f   :  { %5339 = vmatpush.msra.mxu0 %v10194_v42  ;;  %5393 = vmatpush.msra.mxu1 %v10196_v57  ;;  %v10487_v42 = vand.u32 4294901760, %v4823_v9  ;;  %v5571_v48 = vsub.f32 %v10466_v19, %v5570_v18  ;;  %v10570_v44 = vsub.f32 %v4820_v51, %v10538_v24  ;;  %v5578_v63 = vand.u32 4294901760, %v5577_v52  ;;  %v4754_v52 = vld [vmem:[%s12122_s3 + $0x68] sm:$0xff] }
 0x270   :  { %5452 = vmatpush.msra.mxu2 %v12386_v1  ;;  %5497 = vmatpush.msra.mxu3 %v10183_v54  ;;  %v5559_v54 = vsub.f32 %v10425_v3, %v5558_v33  ;;  %v5565_v17 = vsub.f32 %v10456_v47, %v5564_v38  ;;  %v5582_v27 = vand.u32 4294901760, %v10497_v5 }
 0x271   :  { %5342 = vmatpush.msra.mxu0 %v10199_v32  ;;  %5395 = vmatpush.msra.mxu1 %v10244_v16  ;;  %v4821_v32 = vld [vmem:[%s12123_s4 + $0x120] sm:$0xff]  ;;  %v5572_v53 = vand.u32 4294901760, %v5571_v48 }
 0x272   :  { %5456 = vmatpush.msra.mxu2 %v12387_v41  ;;  %5499 = vmatpush.msra.mxu3 %v10185_v59  ;;  %v12388_v59 = vand.u32 4294901760, %v10269_v45  ;;  %v10521_v22 = vand.u32 4294901760, %v4821_v32  ;;  %v5560_v23 = vand.u32 4294901760, %v5559_v54  ;;  %v5566_v60 = vand.u32 4294901760, %v5565_v17 }
 0x273   :  { %5345 = vmatpush.msra.mxu0 %v10202_v34  ;;  %5397 = vmatpush.msra.mxu1 %v10266_v39  ;;  %v10519_v34 = vsub.f32 %v4823_v9, %v10487_v42  ;;  %v5583_v56 = vsub.f32 %v10497_v5, %v5582_v27  ;;  %v4734_v41 = vsel %vm4705_vm2, %v10379_v30, %v10353_v55  ;;  %v4720_v17 = vrot.slane %v9765_v11, 3 }
 0x274   :  { %5460 = vmatpush.msra.mxu2 %v12388_v59  ;;  %5501 = vmatpush.msra.mxu3 %v10196_v57  ;;  %v12389_v57 = vand.u32 4294901760, %v10283_v50  ;;  %v10554_v31 = vsub.f32 %v4821_v32, %v10521_v22 }
 0x275   :  { %5348 = vmatpush.msra.mxu0 %v10207_v13  ;;  %5399 = vmatpush.msra.mxu1 %v10280_v37  ;;  %v4819_v13 = vld [vmem:[%s12123_s4 + $0x110] sm:$0xff]  ;;  %v12182_v49 = vand.u32 4294901760, %v10519_v34  ;;  %v5584_v1 = vand.u32 4294901760, %v5583_v56  ;;  %v4740_v11 = vsel %vm4712_vm3, %v4720_v17, %v4734_v41  ;;  %v4752_v41 = vld [vmem:[%s12122_s3 + $0x58] sm:$0xff] }
 0x276   :  { %5464 = vmatpush.msra.mxu2 %v12389_v57  ;;  %5503 = vmatpush.msra.mxu3 %v10244_v16  ;;  %v12390_v16 = vand.u32 4294901760, %v10301_v26  ;;  %v12178_v0 = vand.u32 4294901760, %v10554_v31 }
 0x277   :  { %5351 = vmatpush.msra.mxu0 %v10216_v4  ;;  %5401 = vmatpush.msra.mxu1 %v10298_v2  ;;  %v4818_v4 = vld [vmem:[%s12123_s4 + $0x108] sm:$0xff] }
 0x278   :  { %5468 = vmatpush.msra.mxu2 %v12390_v16  ;;  %5505 = vmatpush.msra.mxu3 %v10266_v39  ;;  %v10556_v39 = vand.u32 4294901760, %v4819_v13  ;;  %v10572_v43 = vand.u32 4294901760, %v4818_v4  ;;  %v5601_v54 = vsub.f32 %v10554_v31, %v12178_v0 }
 0x279   :  { %5405 = vmatmul.f32.vlgmr.msra.gmra.mxu1 %v5208_v7  ;;  %5354 = vmatpush.msra.mxu0 %v10269_v45  ;;  %v4817_v45 = vld [vmem:[%s12123_s4 + $0x100] sm:$0xff]  ;;  %v12180_v7 = vand.u32 4294901760, %v10536_v6 }
 0x27a   :  { %5561 = vmatpush.msrb.mxu1 %v5560_v23  ;;  %5472 = vmatpush.msra.mxu2 %v12391_v14  ;;  %v10582_v12 = vsub.f32 %v4819_v13, %v10556_v39  ;;  %v10584_v9 = vand.u32 4294901760, %v4817_v45  ;;  %v10594_v62 = vsub.f32 %v4818_v4, %v10572_v43  ;;  %v4831_v4 = vsel %vm4829_vm4, %v4740_v11, 0 }
 0x27b   :  { %5507 = vmatpush.msra.mxu3 %v10280_v37  ;;  %5474 = vmatmul.f32.vlgmr.msra.gmra.mxu2 %v10394_v8  ;;  %v5589_v37 = vsub.f32 %v10519_v34, %v12182_v49 }
 0x27c   :  { %5567 = vmatpush.msrb.mxu1 %v5566_v60  ;;  %5639 = vmatpush.msrb.mxu2 %v10425_v3  ;;  %v12176_v32 = vand.u32 4294901760, %v10582_v12  ;;  %v10607_v59 = vsub.f32 %v4817_v45, %v10584_v9  ;;  %v12174_v51 = vand.u32 4294901760, %v10594_v62  ;;  %v4753_v45 = vld [vmem:[%s12122_s3 + $0x60] sm:$0xff] }
 0x27d   :  { %5357 = vmatpush.msra.mxu0 %v10283_v50  ;;  %5509 = vmatpush.msra.mxu3 %v10298_v2  ;;  %v5595_v50 = vsub.f32 %v10536_v6, %v12180_v7  ;;  %v12177_v2 = vand.u32 4294901760, %v10570_v44 }
 0x27e   :  { %5511 = vmatmul.f32.vlgmr.msra.gmra.mxu3 %v10394_v8  ;;  %5573 = vmatpush.msrb.mxu1 %v5572_v53  ;;  %v5590_v8 = vand.u32 4294901760, %v5589_v37  ;;  %v5613_v57 = vsub.f32 %v10582_v12, %v12176_v32  ;;  %v12173_v23 = vand.u32 4294901760, %v10607_v59  ;;  %v5619_v16 = vsub.f32 %v10594_v62, %v12174_v51 }
 0x27f   :  { %5642 = vmatpush.msrb.mxu2 %v10456_v47  ;;  %5684 = vmatpush.msrb.mxu3 %v10401_v25  ;;  %v5596_v55 = vand.u32 4294901760, %v5595_v50  ;;  %v5607_v30 = vsub.f32 %v10570_v44, %v12177_v2  ;;  %v10661_v37 = vand.u32 4294901760, %v4831_v4 }
 0x280   :  { %5360 = vmatpush.msra.mxu0 %v10301_v26  ;;  %5579 = vmatpush.msrb.mxu1 %v5578_v63  ;;  %v4756_v26 = vld [vmem:[%s12122_s3 + $0x78] sm:$0xff]  ;;  %v5614_v14 = vand.u32 4294901760, %v5613_v57  ;;  %v5625_v53 = vsub.f32 %v10607_v59, %v12173_v23  ;;  %v10659_v63 = vand.u32 4294901760, %v4754_v52 }
 0x281   :  { %5645 = vmatpush.msrb.mxu2 %v10466_v19  ;;  %5686 = vmatpush.msrb.mxu3 %v10419_v61  ;;  %v10631_v48 = vand.u32 4294901760, %v4756_v26  ;;  %v5608_v13 = vand.u32 4294901760, %v5607_v30  ;;  %v10684_v30 = vand.u32 4294901760, %v4752_v41  ;;  %v5544_v11 = vsub.f32 %v4831_v4, %v10661_v37  ;;  %v4741_v19 = vld [vmem:[%s12122_s3] sm:$0xff] }
 0x282   :  { %5363 = vmatpush.msra.mxu0 %v10315_v40  ;;  %5585 = vmatpush.msrb.mxu1 %v5584_v1  ;;  %v4755_v40 = vld [vmem:[%s12122_s3 + $0x70] sm:$0xff]  ;;  %v5620_v1 = vand.u32 4294901760, %v5619_v16 }
 0x283   :  { %5366 = vmatmul.f32.vlgmr.msra.gmra.mxu0 %v10407_v20  ;;  %5648 = vmatpush.msrb.mxu2 %v10480_v15  ;;  %v5602_v20 = vand.u32 4294901760, %v5601_v54  ;;  %v10639_v60 = vand.u32 4294901760, %v4755_v40  ;;  %v10652_v56 = vsub.f32 %v4756_v26, %v10631_v48  ;;  %v5626_v54 = vand.u32 4294901760, %v5625_v53  ;;  %v4751_v26 = vld [vmem:[%s12122_s3 + $0x50] sm:$0xff] }
 0x284   :  { %5520 = vmatpush.msrb.mxu0 %v10401_v25  ;;  %5688 = vmatpush.msrb.mxu3 %v10437_v36 }
 0x285   :  { %5591 = vmatpush.msrb.mxu1 %v5590_v8  ;;  %5651 = vmatpush.msrb.mxu2 %v10497_v5  ;;  %v10665_v50 = vsub.f32 %v4755_v40, %v10639_v60  ;;  %v10672_v8 = vand.u32 4294901760, %v4753_v45  ;;  %v12172_v17 = vand.u32 4294901760, %v10652_v56  ;;  %v12392_v5 = vand.u32 4294901760, %v10519_v34 }
 0x286   :  { %5522 = vmatpush.msrb.mxu0 %v10419_v61  ;;  %5690 = vmatpush.msrb.mxu3 %v10458_v58 }
 0x287   :  { %5597 = vmatpush.msrb.mxu1 %v5596_v55  ;;  %5654 = vmatpush.msrb.mxu2 %v10519_v34  ;;  %v10682_v55 = vsub.f32 %v4754_v52, %v10659_v63  ;;  %v12175_v40 = vand.u32 4294901760, %v10665_v50  ;;  %v10695_v57 = vsub.f32 %v4753_v45, %v10672_v8  ;;  %v5851_v16 = vsub.f32 %v10652_v56, %v12172_v17  ;;  %v4749_v52 = vld [vmem:[%s12122_s3 + $0x40] sm:$0xff] }
 0x288   :  { %5524 = vmatpush.msrb.mxu0 %v10437_v36  ;;  %5692 = vmatpush.msrb.mxu3 %v10468_v29  ;;  %v5545_v45 = vand.u32 4294901760, %v5544_v11  ;;  %v10728_v23 = vand.u32 4294901760, %v4749_v52 }
 0x289   :  { %5603 = vmatpush.msrb.mxu1 %v5602_v20  ;;  %5657 = vmatpush.msrb.mxu2 %v10536_v6  ;;  %v4750_v20 = vld [vmem:[%s12122_s3 + $0x48] sm:$0xff]  ;;  %v12179_v4 = vand.u32 4294901760, %v10682_v55  ;;  %v5852_v51 = vand.u32 4294901760, %v5851_v16 }
 0x28a   :  { %5526 = vmatpush.msrb.mxu0 %v10458_v58  ;;  %5694 = vmatpush.msrb.mxu3 %v10487_v42  ;;  %v10712_v53 = vand.u32 4294901760, %v4750_v20  ;;  %v5546_v16 = vsub.f32 %v5544_v11, %v5545_v45 }
 0x28b   :  { %5609 = vmatpush.msrb.mxu1 %v5608_v13  ;;  %5660 = vmatpush.msrb.mxu2 %v10554_v31  ;;  %v10697_v13 = vand.u32 4294901760, %v4751_v26 }
 0x28c   :  { %5528 = vmatpush.msrb.mxu0 %v10468_v29  ;;  %5696 = vmatpush.msrb.mxu3 %v10504_v10  ;;  %v10741_v32 = vsub.f32 %v4750_v20, %v10712_v53  ;;  %v10753_v20 = vsub.f32 %v4749_v52, %v10728_v23  ;;  %v5547_v49 = vand.u32 4294901760, %v5546_v16 }
 0x28d   :  { %5615 = vmatpush.msrb.mxu1 %v5614_v14  ;;  %5663 = vmatpush.msrb.mxu2 %v10570_v44  ;;  %v10710_v14 = vsub.f32 %v4752_v41, %v10684_v30  ;;  %v12181_v41 = vand.u32 4294901760, %v10695_v57  ;;  %v10726_v17 = vsub.f32 %v4751_v26, %v10697_v13 }
 0x28e   :  { %5530 = vmatpush.msrb.mxu0 %v10487_v42  ;;  %5698 = vmatpush.msrb.mxu3 %v10521_v22  ;;  %v5886_v52 = vand.u32 4294901760, %v10741_v32 }
 0x28f   :  { %5621 = vmatpush.msrb.mxu1 %v5620_v1  ;;  %5666 = vmatpush.msrb.mxu2 %v10582_v12  ;;  %v5857_v1 = vsub.f32 %v10665_v50, %v12175_v40  ;;  %v4747_v40 = vld [vmem:[%s12122_s3 + $0x30] sm:$0xff]  ;;  %v12183_v26 = vand.u32 4294901760, %v10710_v14 }
 0x290   :  { %5532 = vmatpush.msrb.mxu0 %v10504_v10  ;;  %5700 = vmatpush.msrb.mxu3 %v10538_v24  ;;  %v10755_v7 = vand.u32 4294901760, %v4747_v40 }
 0x291   :  { %5627 = vmatpush.msrb.mxu1 %v5626_v54  ;;  %5669 = vmatpush.msrb.mxu2 %v10594_v62  ;;  %v4748_v54 = vld [vmem:[%s12122_s3 + $0x38] sm:$0xff]  ;;  %v5858_v0 = vand.u32 4294901760, %v5857_v1 }
 0x292   :  { %5534 = vmatpush.msrb.mxu0 %v10521_v22  ;;  %5702 = vmatpush.msrb.mxu3 %v10556_v39  ;;  %v10743_v2 = vand.u32 4294901760, %v4748_v54 }
 0x293   :  { %5629 = vmatmul.f32.vlgmr.msrb.gmra.mxu1 %v10661_v37  ;;  %5672 = vmatpush.msrb.mxu2 %v10607_v59 }
 0x294   :  { %5776 = vmatpush.msra.mxu1 %v10401_v25  ;;  %5536 = vmatpush.msrb.mxu0 %v10538_v24  ;;  %v5863_v25 = vsub.f32 %v10682_v55, %v12179_v4  ;;  %v12184_v4 = vand.u32 4294901760, %v10726_v17  ;;  %v10768_v1 = vsub.f32 %v4748_v54, %v10743_v2 }
 0x295   :  { %5704 = vmatpush.msrb.mxu3 %v10572_v43  ;;  %5675 = vmatmul.f32.vlgmr.msrb.gmra.mxu2 %v5544_v11  ;;  %v4746_v11 = vld [vmem:[%s12122_s3 + $0x28] sm:$0xff] }
 0x296   :  { %5778 = vmatpush.msra.mxu1 %v10419_v61  ;;  %5808 = vmatpush.msra.mxu2 %v10631_v48  ;;  %v5869_v61 = vsub.f32 %v10695_v57, %v12181_v41  ;;  %v4745_v41 = vld [vmem:[%s12122_s3 + $0x20] sm:$0xff]  ;;  %v5881_v54 = vsub.f32 %v10726_v17, %v12184_v4  ;;  %v4743_v4 = vld [vmem:[%s12122_s3 + $0x10] sm:$0xff] }
 0x297   :  { %5538 = vmatpush.msrb.mxu0 %v10556_v39  ;;  %5706 = vmatpush.msrb.mxu3 %v10584_v9  ;;  %v10789_v16 = vand.u32 4294901760, %v4745_v41  ;;  %v10821_v47 = vand.u32 4294901760, %v4743_v4 }
 0x298   :  { %5710 = vmatmul.f32.vlgmr.msrb.gmra.mxu3 %v5545_v45  ;;  %5780 = vmatpush.msra.mxu1 %v10437_v36  ;;  %v5864_v36 = vand.u32 4294901760, %v5863_v25  ;;  %v5875_v45 = vsub.f32 %v10710_v14, %v12183_v26  ;;  %v5892_v25 = vand.u32 4294901760, %v10753_v20  ;;  %v10783_v26 = vsub.f32 %v4747_v40, %v10755_v7 }
 0x299   :  { %5810 = vmatpush.msra.mxu2 %v10639_v60  ;;  %5853 = vmatpush.msra.mxu3 %v5852_v51  ;;  %v10774_v51 = vand.u32 4294901760, %v4746_v11  ;;  %v5898_v40 = vand.u32 4294901760, %v10768_v1 }
 0x29a   :  { %5540 = vmatpush.msrb.mxu0 %v10572_v43  ;;  %5782 = vmatpush.msra.mxu1 %v10458_v58  ;;  %v5870_v58 = vand.u32 4294901760, %v5869_v61  ;;  %v5887_v61 = vsub.f32 %v10741_v32, %v5886_v52 }
 0x29b   :  { %5812 = vmatpush.msra.mxu2 %v10659_v63  ;;  %5859 = vmatpush.msra.mxu3 %v5858_v0  ;;  %v4744_v0 = vld [vmem:[%s12122_s3 + $0x18] sm:$0xff] }
 0x29c   :  { %5542 = vmatpush.msrb.mxu0 %v10584_v9  ;;  %5784 = vmatpush.msra.mxu1 %v10468_v29  ;;  %v5876_v29 = vand.u32 4294901760, %v5875_v45  ;;  %v10805_v3 = vand.u32 4294901760, %v4744_v0  ;;  %v5904_v45 = vand.u32 4294901760, %v10783_v26 }
 0x29d   :  { %5548 = vmatmul.f32.vlgmr.msrb.gmra.mxu0 %v5547_v49  ;;  %5814 = vmatpush.msra.mxu2 %v10672_v8  ;;  %v10803_v49 = vsub.f32 %v4746_v11, %v10774_v51  ;;  %v10819_v11 = vsub.f32 %v4745_v41, %v10789_v16 }
 0x29e   :  { %5721 = vmatpush.msra.mxu0 %v5558_v33  ;;  %5865 = vmatpush.msra.mxu3 %v5864_v36  ;;  %v5882_v33 = vand.u32 4294901760, %v5881_v54  ;;  %v5893_v36 = vsub.f32 %v10753_v20, %v5892_v25  ;;  %v10832_v41 = vsub.f32 %v4744_v0, %v10805_v3 }
 0x29f   :  { %5786 = vmatpush.msra.mxu1 %v10487_v42  ;;  %5816 = vmatpush.msra.mxu2 %v10684_v30  ;;  %v4742_v42 = vld [vmem:[%s12122_s3 + $0x8] sm:$0xff]  ;;  %v5916_v0 = vand.u32 4294901760, %v10819_v11 }
 0x2a0   :  { %5725 = vmatpush.msra.mxu0 %v5564_v38  ;;  %5871 = vmatpush.msra.mxu3 %v5870_v58  ;;  %v5888_v38 = vand.u32 4294901760, %v5887_v61  ;;  %v5899_v58 = vsub.f32 %v10768_v1, %v5898_v40  ;;  %v10834_v54 = vand.u32 4294901760, %v4742_v42  ;;  %v10851_v61 = vand.u32 4294901760, %v10374_v35 }
 0x2a1   :  { %5788 = vmatpush.msra.mxu1 %v10504_v10  ;;  %5818 = vmatpush.msra.mxu2 %v10697_v13  ;;  %v5910_v10 = vand.u32 4294901760, %v10803_v49 }
 0x2a2   :  { %5729 = vmatpush.msra.mxu0 %v5570_v18  ;;  %5877 = vmatpush.msra.mxu3 %v5876_v29  ;;  %v5894_v18 = vand.u32 4294901760, %v5893_v36  ;;  %v10848_v29 = vsub.f32 %v4743_v4, %v10821_v47  ;;  %v5900_v15 = vand.u32 4294901760, %v5899_v58  ;;  %v5922_v4 = vand.u32 4294901760, %v10832_v41 }
 0x2a3   :  { %5790 = vmatpush.msra.mxu1 %v10521_v22  ;;  %5820 = vmatpush.msra.mxu2 %v10712_v53  ;;  %v5905_v22 = vsub.f32 %v10783_v26, %v5904_v45 }
 0x2a4   :  { %5733 = vmatpush.msra.mxu0 %v5576_v46  ;;  %5883 = vmatpush.msra.mxu3 %v5882_v33  ;;  %v10855_v46 = vand.u32 4294901760, %v4741_v19  ;;  %v10864_v33 = vsub.f32 %v4742_v42, %v10834_v54  ;;  %v5928_v36 = vand.u32 4294901760, %v10848_v29  ;;  %v12393_v42 = vand.u32 4294901760, %v10536_v6 }
 0x2a5   :  { %5792 = vmatpush.msra.mxu1 %v10538_v24  ;;  %5822 = vmatpush.msra.mxu2 %v10728_v23  ;;  %v5911_v24 = vsub.f32 %v10803_v49, %v5910_v10  ;;  %v5923_v58 = vsub.f32 %v10832_v41, %v5922_v4 }
 0x2a6   :  { %5737 = vmatpush.msra.mxu0 %v5582_v27  ;;  %5889 = vmatpush.msra.mxu3 %v5888_v38  ;;  %v5906_v27 = vand.u32 4294901760, %v5905_v22  ;;  %v10876_v38 = vsub.f32 %v10374_v35, %v10851_v61  ;;  %v10881_v34 = vsub.f32 %v4741_v19, %v10855_v46  ;;  %v12394_v35 = vand.u32 4294901760, %v10554_v31 }
 0x2a7   :  { %5794 = vmatpush.msra.mxu1 %v10556_v39  ;;  %5824 = vmatpush.msra.mxu2 %v10743_v2  ;;  %v5917_v39 = vsub.f32 %v10819_v11, %v5916_v0  ;;  %v12395_v22 = vand.u32 4294901760, %v10570_v44 }
 0x2a8   :  { %5741 = vmatpush.msra.mxu0 %v12392_v5  ;;  %5895 = vmatpush.msra.mxu3 %v5894_v18  ;;  %v5934_v18 = vand.u32 4294901760, %v10864_v33  ;;  %v5841_v19 = vand.u32 4294901760, %v10876_v38  ;;  %v5940_v31 = vand.u32 4294901760, %v10881_v34  ;;  %v12396_v5 = vand.u32 4294901760, %v10582_v12 }
 0x2a9   :  { %5796 = vmatpush.msra.mxu1 %v10572_v43  ;;  %5826 = vmatpush.msra.mxu2 %v10755_v7  ;;  %v5912_v43 = vand.u32 4294901760, %v5911_v24  ;;  %v5918_v6 = vand.u32 4294901760, %v5917_v39  ;;  %v12397_v39 = vand.u32 4294901760, %v10594_v62 }
 0x2aa   :  { %5745 = vmatpush.msra.mxu0 %v12393_v42  ;;  %5901 = vmatpush.msra.mxu3 %v5900_v15  ;;  %v5924_v15 = vand.u32 4294901760, %v5923_v58  ;;  %v5935_v24 = vsub.f32 %v10864_v33, %v5934_v18  ;;  %v5941_v42 = vsub.f32 %v10881_v34, %v5940_v31 }
 0x2ab   :  { %5798 = vmatpush.msra.mxu1 %v10584_v9  ;;  %5828 = vmatpush.msra.mxu2 %v10774_v51  ;;  %v5929_v9 = vsub.f32 %v10848_v29, %v5928_v36 }
 0x2ac   :  { %5749 = vmatpush.msra.mxu0 %v12394_v35  ;;  %5907 = vmatpush.msra.mxu3 %v5906_v27  ;;  %v5842_v27 = vsub.f32 %v10876_v38, %v5841_v19  ;;  %v5936_v12 = vand.u32 4294901760, %v5935_v24  ;;  %v5942_v62 = vand.u32 4294901760, %v5941_v42  ;;  %v4771_v35 = vld [vmem:[%s12122_s3 + $0xf0] sm:$0xff] }
 0x2ad   :  { %5800 = vmatmul.f32.vlgmr.msra.gmra.mxu1 %v10661_v37  ;;  %5830 = vmatpush.msra.mxu2 %v10789_v16  ;;  %v5930_v44 = vand.u32 4294901760, %v5929_v9  ;;  %v4770_v9 = vld [vmem:[%s12122_s3 + $0xe8] sm:$0xff] }
 0x2ae   :  { %6004 = vmatpush.msrb.mxu1 %v10631_v48  ;;  %5753 = vmatpush.msra.mxu0 %v12395_v22  ;;  %v5843_v58 = vand.u32 4294901760, %v5842_v27  ;;  %v12401_v22 = vand.u32 4294901760, %v10682_v55  ;;  %v10965_v24 = vand.u32 4294901760, %v4770_v9 }
 0x2af   :  { %5913 = vmatpush.msra.mxu3 %v5912_v43  ;;  %5832 = vmatpush.msra.mxu2 %v10805_v3  ;;  %v12398_v43 = vand.u32 4294901760, %v10607_v59  ;;  %v12399_v59 = vand.u32 4294901760, %v10652_v56 }
 0x2b0   :  { %6006 = vmatpush.msrb.mxu1 %v10639_v60  ;;  %5757 = vmatpush.msra.mxu0 %v12396_v5  ;;  %v12403_v5 = vand.u32 4294901760, %v10710_v14 }
 0x2b1   :  { %5919 = vmatpush.msra.mxu3 %v5918_v6  ;;  %5834 = vmatpush.msra.mxu2 %v10821_v47  ;;  %v12400_v6 = vand.u32 4294901760, %v10665_v50 }
 0x2b2   :  { %6008 = vmatpush.msrb.mxu1 %v10659_v63  ;;  %5761 = vmatpush.msra.mxu0 %v12397_v39  ;;  %v4767_v39 = vld [vmem:[%s12122_s3 + $0xd0] sm:$0xff] }
 0x2b3   :  { %5925 = vmatpush.msra.mxu3 %v5924_v15  ;;  %5836 = vmatpush.msra.mxu2 %v10834_v54  ;;  %v10952_v15 = vand.u32 4294901760, %v4771_v35 }
 0x2b4   :  { %6010 = vmatpush.msrb.mxu1 %v10672_v8  ;;  %5765 = vmatpush.msra.mxu0 %v12398_v43  ;;  %v4765_v43 = vld [vmem:[%s12122_s3 + $0xc0] sm:$0xff] }
 0x2b5   :  { %5931 = vmatpush.msra.mxu3 %v5930_v44  ;;  %5767 = vmatmul.f32.vlgmr.msra.gmra.mxu0 %v10661_v37  ;;  %v4772_v37 = vld [vmem:[%s12122_s3 + $0xf8] sm:$0xff]  ;;  %v12404_v44 = vand.u32 4294901760, %v10726_v17 }
 0x2b6   :  { %5951 = vmatpush.msrb.mxu0 %v10652_v56  ;;  %6012 = vmatpush.msrb.mxu1 %v10684_v30  ;;  %v10942_v56 = vand.u32 4294901760, %v4772_v37 }
 0x2b7   :  { %5838 = vmatpush.msra.mxu2 %v10855_v46  ;;  %5937 = vmatpush.msra.mxu3 %v5936_v12  ;;  %v11008_v12 = vand.u32 4294901760, %v4767_v39 }
 0x2b8   :  { %5844 = vmatmul.f32.vlgmr.msra.gmra.mxu2 %v5843_v58  ;;  %5954 = vmatpush.msrb.mxu0 %v10665_v50  ;;  %v12402_v50 = vand.u32 4294901760, %v10695_v57 }
 0x2b9   :  { %6014 = vmatpush.msrb.mxu1 %v10697_v13  ;;  %6045 = vmatpush.msrb.mxu2 %v12399_v59 }
 0x2ba   :  { %5943 = vmatpush.msra.mxu3 %v5942_v62  ;;  %5957 = vmatpush.msrb.mxu0 %v10682_v55  ;;  %v10963_v55 = vsub.f32 %v4772_v37, %v10942_v56  ;;  %v4764_v62 = vld [vmem:[%s12122_s3 + $0xb8] sm:$0xff] }
 0x2bb   :  { %5945 = vmatmul.f32.vlgmr.msra.gmra.mxu3 %v10851_v61  ;;  %6016 = vmatpush.msrb.mxu1 %v10712_v53 }
 0x2bc   :  { %6049 = vmatpush.msrb.mxu2 %v12400_v6  ;;  %6112 = vmatpush.msrb.mxu3 %v10631_v48  ;;  %v4769_v48 = vld [vmem:[%s12122_s3 + $0xe0] sm:$0xff]  ;;  %v6191_v27 = vand.u32 4294901760, %v10963_v55 }
 0x2bd   :  { %5960 = vmatpush.msrb.mxu0 %v10695_v57  ;;  %6018 = vmatpush.msrb.mxu1 %v10728_v23  ;;  %v10978_v57 = vand.u32 4294901760, %v4769_v48 }
 0x2be   :  { %6053 = vmatpush.msrb.mxu2 %v12401_v22  ;;  %6114 = vmatpush.msrb.mxu3 %v10639_v60  ;;  %v4768_v60 = vld [vmem:[%s12122_s3 + $0xd8] sm:$0xff] }
 0x2bf   :  { %5963 = vmatpush.msrb.mxu0 %v10710_v14  ;;  %6020 = vmatpush.msrb.mxu1 %v10743_v2  ;;  %v10987_v14 = vsub.f32 %v4770_v9, %v10965_v24  ;;  %v11004_v42 = vsub.f32 %v4769_v48, %v10978_v57  ;;  %v4762_v9 = vld [vmem:[%s12122_s3 + $0xa8] sm:$0xff] }
 0x2c0   :  { %6057 = vmatpush.msrb.mxu2 %v12402_v50  ;;  %6116 = vmatpush.msrb.mxu3 %v10659_v63  ;;  %v10976_v63 = vsub.f32 %v4771_v35, %v10952_v15  ;;  %v4763_v35 = vld [vmem:[%s12122_s3 + $0xb0] sm:$0xff] }
 0x2c1   :  { %5966 = vmatpush.msrb.mxu0 %v10726_v17  ;;  %6022 = vmatpush.msrb.mxu1 %v10755_v7  ;;  %v4766_v17 = vld [vmem:[%s12122_s3 + $0xc8] sm:$0xff] }
 0x2c2   :  { %6061 = vmatpush.msrb.mxu2 %v12403_v5  ;;  %6118 = vmatpush.msrb.mxu3 %v10672_v8  ;;  %v10989_v8 = vand.u32 4294901760, %v4768_v60  ;;  %v11023_v58 = vand.u32 4294901760, %v4766_v17  ;;  %v4760_v5 = vld [vmem:[%s12122_s3 + $0x98] sm:$0xff] }
 0x2c3   :  { %5969 = vmatpush.msrb.mxu0 %v10741_v32  ;;  %6024 = vmatpush.msrb.mxu1 %v10774_v51  ;;  %v6192_v32 = vsub.f32 %v10963_v55, %v6191_v27 }
 0x2c4   :  { %6065 = vmatpush.msrb.mxu2 %v12404_v44  ;;  %6120 = vmatpush.msrb.mxu3 %v10684_v30  ;;  %v6197_v30 = vand.u32 4294901760, %v10976_v63  ;;  %v11052_v37 = vsub.f32 %v4766_v17, %v11023_v58 }
 0x2c5   :  { %5972 = vmatpush.msrb.mxu0 %v10753_v20  ;;  %6026 = vmatpush.msrb.mxu1 %v10789_v16  ;;  %v6209_v20 = vand.u32 4294901760, %v11004_v42 }
 0x2c6   :  { %6069 = vmatpush.msrb.mxu2 %v5886_v52  ;;  %6122 = vmatpush.msrb.mxu3 %v10697_v13  ;;  %v6203_v13 = vand.u32 4294901760, %v10987_v14  ;;  %v11021_v52 = vsub.f32 %v4768_v60, %v10989_v8  ;;  %v6227_v48 = vand.u32 4294901760, %v11052_v37 }
 0x2c7   :  { %5975 = vmatpush.msrb.mxu0 %v10768_v1  ;;  %6028 = vmatpush.msrb.mxu1 %v10805_v3  ;;  %v11042_v1 = vsub.f32 %v4767_v39, %v11008_v12  ;;  %v4759_v39 = vld [vmem:[%s12122_s3 + $0x90] sm:$0xff] }
 0x2c8   :  { %6073 = vmatpush.msrb.mxu2 %v5892_v25  ;;  %6124 = vmatpush.msrb.mxu3 %v10712_v53  ;;  %v6198_v53 = vsub.f32 %v10976_v63, %v6197_v30  ;;  %v11034_v25 = vand.u32 4294901760, %v4765_v43  ;;  %v6215_v59 = vand.u32 4294901760, %v11021_v52 }
 0x2c9   :  { %5978 = vmatpush.msrb.mxu0 %v10783_v26  ;;  %6030 = vmatpush.msrb.mxu1 %v10821_v47  ;;  %v11059_v26 = vand.u32 4294901760, %v4764_v62 }
 0x2ca   :  { %6077 = vmatpush.msrb.mxu2 %v5898_v40  ;;  %6126 = vmatpush.msrb.mxu3 %v10728_v23  ;;  %v6193_v23 = vand.u32 4294901760, %v6192_v32  ;;  %v6204_v40 = vsub.f32 %v10987_v14, %v6203_v13  ;;  %v11068_v6 = vsub.f32 %v4765_v43, %v11034_v25  ;;  %v6216_v22 = vsub.f32 %v11021_v52, %v6215_v59 }
 0x2cb   :  { %5981 = vmatpush.msrb.mxu0 %v10803_v49  ;;  %6032 = vmatpush.msrb.mxu1 %v10834_v54  ;;  %v6221_v49 = vand.u32 4294901760, %v11042_v1  ;;  %v11091_v50 = vsub.f32 %v4764_v62, %v11059_v26 }
 0x2cc   :  { %6081 = vmatpush.msrb.mxu2 %v5904_v45  ;;  %6128 = vmatpush.msrb.mxu3 %v10743_v2  ;;  %v6199_v2 = vand.u32 4294901760, %v6198_v53  ;;  %v6210_v45 = vsub.f32 %v11004_v42, %v6209_v20  ;;  %v6233_v60 = vand.u32 4294901760, %v11068_v6 }
 0x2cd   :  { %5984 = vmatpush.msrb.mxu0 %v10819_v11  ;;  %6034 = vmatpush.msrb.mxu1 %v10855_v46  ;;  %v11093_v11 = vand.u32 4294901760, %v4762_v9  ;;  %v12193_v17 = vand.u32 4294901760, %v11091_v50 }
 0x2ce   :  { %6085 = vmatpush.msrb.mxu2 %v5910_v10  ;;  %6130 = vmatpush.msrb.mxu3 %v10755_v7  ;;  %v11077_v7 = vand.u32 4294901760, %v4763_v35  ;;  %v6205_v10 = vand.u32 4294901760, %v6204_v40 }
 0x2cf   :  { %6038 = vmatmul.f32.vlgmr.msrb.gmra.mxu1 %v5841_v19  ;;  %5987 = vmatpush.msrb.mxu0 %v10832_v41  ;;  %v4761_v19 = vld [vmem:[%s12122_s3 + $0xa0] sm:$0xff]  ;;  %v11123_v43 = vsub.f32 %v4762_v9, %v11093_v11 }
 0x2d0   :  { %6194 = vmatpush.msra.mxu1 %v6193_v23  ;;  %6089 = vmatpush.msrb.mxu2 %v5916_v0  ;;  %v6211_v0 = vand.u32 4294901760, %v6210_v45  ;;  %v11107_v44 = vsub.f32 %v4763_v35, %v11077_v7  ;;  %v11109_v41 = vand.u32 4294901760, %v4761_v19  ;;  %v4757_v23 = vld [vmem:[%s12122_s3 + $0x80] sm:$0xff] }
 0x2d1   :  { %6132 = vmatpush.msrb.mxu3 %v10774_v51  ;;  %5990 = vmatpush.msrb.mxu0 %v10848_v29  ;;  %v6222_v51 = vsub.f32 %v11042_v1, %v6221_v49  ;;  %v11125_v29 = vand.u32 4294901760, %v4760_v5  ;;  %v11169_v45 = vand.u32 4294901760, %v4757_v23 }
 0x2d2   :  { %6200 = vmatpush.msra.mxu1 %v6199_v2  ;;  %6093 = vmatpush.msrb.mxu2 %v5922_v4  ;;  %v6217_v4 = vand.u32 4294901760, %v6216_v22  ;;  %v12192_v53 = vand.u32 4294901760, %v11107_v44  ;;  %v11139_v62 = vsub.f32 %v4761_v19, %v11109_v41 }
 0x2d3   :  { %6134 = vmatpush.msrb.mxu3 %v10789_v16  ;;  %5993 = vmatpush.msrb.mxu0 %v10864_v33  ;;  %v6228_v16 = vsub.f32 %v11052_v37, %v6227_v48  ;;  %v6223_v32 = vand.u32 4294901760, %v6222_v51  ;;  %v11141_v33 = vand.u32 4294901760, %v4759_v39  ;;  %v11155_v40 = vsub.f32 %v4760_v5, %v11125_v29 }
 0x2d4   :  { %6206 = vmatpush.msra.mxu1 %v6205_v10  ;;  %6097 = vmatpush.msrb.mxu2 %v5928_v36  ;;  %v6234_v36 = vsub.f32 %v11068_v6, %v6233_v60  ;;  %v11189_v5 = vsub.f32 %v4757_v23, %v11169_v45  ;;  %v11214_v23 = vand.u32 4294901760, %v10440_v21 }
 0x2d5   :  { %6136 = vmatpush.msrb.mxu3 %v10805_v3  ;;  %5996 = vmatpush.msrb.mxu0 %v10881_v34  ;;  %v4758_v3 = vld [vmem:[%s12122_s3 + $0x88] sm:$0xff]  ;;  %v12189_v34 = vand.u32 4294901760, %v11139_v62  ;;  %v12188_v22 = vand.u32 4294901760, %v11155_v40 }
 0x2d6   :  { %6212 = vmatpush.msra.mxu1 %v6211_v0  ;;  %6101 = vmatpush.msrb.mxu2 %v5934_v18  ;;  %v6229_v18 = vand.u32 4294901760, %v6228_v16  ;;  %v11157_v35 = vand.u32 4294901760, %v4758_v3  ;;  %v6235_v2 = vand.u32 4294901760, %v6234_v36 }
 0x2d7   :  { %6138 = vmatpush.msrb.mxu3 %v10821_v47  ;;  %5999 = vmatmul.f32.vlgmr.msrb.gmra.mxu0 %v10876_v38  ;;  %v6240_v47 = vsub.f32 %v11091_v50, %v12193_v17  ;;  %v12190_v38 = vand.u32 4294901760, %v11123_v43 }
 0x2d8   :  { %6149 = vmatpush.msra.mxu0 %v10942_v56  ;;  %6218 = vmatpush.msra.mxu1 %v6217_v4  ;;  %v11179_v19 = vsub.f32 %v4758_v3, %v11157_v35  ;;  %v6264_v4 = vsub.f32 %v11155_v40, %v12188_v22  ;;  %v12185_v3 = vand.u32 4294901760, %v11189_v5 }
 0x2d9   :  { %6105 = vmatpush.msrb.mxu2 %v5940_v31  ;;  %6140 = vmatpush.msrb.mxu3 %v10834_v54  ;;  %v6246_v54 = vsub.f32 %v11107_v44, %v12192_v53  ;;  %v11167_v31 = vsub.f32 %v4759_v39, %v11141_v33  ;;  %v6241_v9 = vand.u32 4294901760, %v6240_v47  ;;  %v6252_v10 = vsub.f32 %v11123_v43, %v12190_v38 }
 0x2da   :  { %6107 = vmatmul.f32.vlgmr.msrb.gmra.mxu2 %v10851_v61  ;;  %6151 = vmatpush.msra.mxu0 %v10952_v15  ;;  %v12186_v16 = vand.u32 4294901760, %v11179_v19 }
 0x2db   :  { %6224 = vmatpush.msra.mxu1 %v6223_v32  ;;  %6292 = vmatpush.msra.mxu2 %v10963_v55  ;;  %v12187_v0 = vand.u32 4294901760, %v11167_v31  ;;  %v6253_v51 = vand.u32 4294901760, %v6252_v10  ;;  %v6265_v32 = vand.u32 4294901760, %v6264_v4  ;;  %v4783_v10 = vld [vmem:[%s12122_s3 + $0x150] sm:$0xff] }
 0x2dc   :  { %6142 = vmatpush.msrb.mxu3 %v10855_v46  ;;  %6153 = vmatpush.msra.mxu0 %v10965_v24  ;;  %v6247_v46 = vand.u32 4294901760, %v6246_v54  ;;  %v4784_v54 = vld [vmem:[%s12122_s3 + $0x158] sm:$0xff]  ;;  %v11241_v4 = vand.u32 4294901760, %v4783_v10 }
 0x2dd   :  { %6144 = vmatmul.f32.vlgmr.msrb.gmra.mxu3 %v10851_v61  ;;  %6230 = vmatpush.msra.mxu1 %v6229_v18  ;;  %v6258_v61 = vsub.f32 %v11139_v62, %v12189_v34  ;;  %v6270_v36 = vsub.f32 %v11167_v31, %v12187_v0  ;;  %v6276_v18 = vsub.f32 %v11179_v19, %v12186_v16  ;;  %v4778_v0 = vld [vmem:[%s12122_s3 + $0x128] sm:$0xff] }
 0x2de   :  { %6295 = vmatpush.msra.mxu2 %v10976_v63  ;;  %6345 = vmatpush.msra.mxu3 %v10942_v56  ;;  %v11315_v38 = vand.u32 4294901760, %v4778_v0 }
 0x2df   :  { %6155 = vmatpush.msra.mxu0 %v10978_v57  ;;  %6236 = vmatpush.msra.mxu1 %v6235_v2  ;;  %v6259_v39 = vand.u32 4294901760, %v6258_v61  ;;  %v6271_v47 = vand.u32 4294901760, %v6270_v36  ;;  %v6282_v2 = vsub.f32 %v11189_v5, %v12185_v3 }
 0x2e0   :  { %6298 = vmatpush.msra.mxu2 %v10987_v14  ;;  %6347 = vmatpush.msra.mxu3 %v10952_v15 }
 0x2e1   :  { %6157 = vmatpush.msra.mxu0 %v10989_v8  ;;  %6242 = vmatpush.msra.mxu1 %v6241_v9  ;;  %v6277_v9 = vand.u32 4294901760, %v6276_v18  ;;  %v6283_v61 = vand.u32 4294901760, %v6282_v2  ;;  %v4780_v2 = vld [vmem:[%s12122_s3 + $0x138] sm:$0xff] }
 0x2e2   :  { %6301 = vmatpush.msra.mxu2 %v11004_v42  ;;  %6349 = vmatpush.msra.mxu3 %v10965_v24  ;;  %v11286_v3 = vand.u32 4294901760, %v4780_v2  ;;  %v11395_v42 = vand.u32 4294901760, %v10451_v28 }
 0x2e3   :  { %6159 = vmatpush.msra.mxu0 %v11008_v12  ;;  %6248 = vmatpush.msra.mxu1 %v6247_v46  ;;  %v11233_v46 = vsub.f32 %v10440_v21, %v11214_v23  ;;  %v4782_v21 = vld [vmem:[%s12122_s3 + $0x148] sm:$0xff] }
 0x2e4   :  { %6304 = vmatpush.msra.mxu2 %v11021_v52  ;;  %6351 = vmatpush.msra.mxu3 %v10978_v57  ;;  %v11258_v18 = vand.u32 4294901760, %v4782_v21 }
 0x2e5   :  { %6161 = vmatpush.msra.mxu0 %v11023_v58  ;;  %6254 = vmatpush.msra.mxu1 %v6253_v51  ;;  %v11236_v51 = vand.u32 4294901760, %v4784_v54 }
 0x2e6   :  { %6307 = vmatpush.msra.mxu2 %v11042_v1  ;;  %6353 = vmatpush.msra.mxu3 %v10989_v8 }
 0x2e7   :  { %6163 = vmatpush.msra.mxu0 %v11034_v25  ;;  %6260 = vmatpush.msra.mxu1 %v6259_v39  ;;  %v6182_v39 = vand.u32 4294901760, %v11233_v46  ;;  %v11251_v36 = vsub.f32 %v4784_v54, %v11236_v51 }
 0x2e8   :  { %6310 = vmatpush.msra.mxu2 %v11052_v37  ;;  %6355 = vmatpush.msra.mxu3 %v11008_v12 }
 0x2e9   :  { %6165 = vmatpush.msra.mxu0 %v11059_v26  ;;  %6266 = vmatpush.msra.mxu1 %v6265_v32  ;;  %v4781_v32 = vld [vmem:[%s12122_s3 + $0x140] sm:$0xff] }
 0x2ea   :  { %6313 = vmatpush.msra.mxu2 %v11068_v6  ;;  %6357 = vmatpush.msra.mxu3 %v11023_v58  ;;  %v11270_v54 = vand.u32 4294901760, %v4781_v32 }
 0x2eb   :  { %6167 = vmatpush.msra.mxu0 %v11077_v7  ;;  %6272 = vmatpush.msra.mxu1 %v6271_v47  ;;  %v11263_v47 = vsub.f32 %v4783_v10, %v11241_v4  ;;  %v12191_v10 = vand.u32 4294901760, %v11251_v36 }
 0x2ec   :  { %6316 = vmatpush.msra.mxu2 %v11091_v50  ;;  %6359 = vmatpush.msra.mxu3 %v11034_v25 }
 0x2ed   :  { %6169 = vmatpush.msra.mxu0 %v11093_v11  ;;  %6278 = vmatpush.msra.mxu1 %v6277_v9  ;;  %v6183_v9 = vsub.f32 %v11233_v46, %v6182_v39  ;;  %v12194_v16 = vand.u32 4294901760, %v11263_v47  ;;  %v6533_v34 = vsub.f32 %v11251_v36, %v12191_v10 }
 0x2ee   :  { %6319 = vmatpush.msra.mxu2 %v11107_v44  ;;  %6361 = vmatpush.msra.mxu3 %v11059_v26 }
 0x2ef   :  { %6171 = vmatpush.msra.mxu0 %v11109_v41  ;;  %6284 = vmatpush.msra.mxu1 %v6283_v61  ;;  %v4779_v61 = vld [vmem:[%s12122_s3 + $0x130] sm:$0xff]  ;;  %v6184_v22 = vand.u32 4294901760, %v6183_v9  ;;  %v11313_v9 = vsub.f32 %v4780_v2, %v11286_v3  ;;  %v6539_v10 = vsub.f32 %v11263_v47, %v12194_v16 }
 0x2f0   :  { %6322 = vmatpush.msra.mxu2 %v11123_v43  ;;  %6363 = vmatpush.msra.mxu3 %v11077_v7  ;;  %v4775_v16 = vld [vmem:[%s12122_s3 + $0x110] sm:$0xff] }
 0x2f1   :  { %6286 = vmatmul.f32.vlgmr.msra.gmra.mxu1 %v11214_v23  ;;  %6173 = vmatpush.msra.mxu0 %v11125_v29 }
 0x2f2   :  { %6453 = vmatpush.msrb.mxu1 %v10942_v56  ;;  %6325 = vmatpush.msra.mxu2 %v11139_v62  ;;  %v11284_v56 = vsub.f32 %v4782_v21, %v11258_v18  ;;  %v11299_v21 = vand.u32 4294901760, %v4779_v61 }
 0x2f3   :  { %6365 = vmatpush.msra.mxu3 %v11093_v11  ;;  %6175 = vmatpush.msra.mxu0 %v11141_v33 }
 0x2f4   :  { %6455 = vmatpush.msrb.mxu1 %v10952_v15  ;;  %6328 = vmatpush.msra.mxu2 %v11155_v40  ;;  %v11297_v15 = vsub.f32 %v4781_v32, %v11270_v54  ;;  %v12195_v32 = vand.u32 4294901760, %v11284_v56  ;;  %v11329_v53 = vsub.f32 %v4779_v61, %v11299_v21 }
 0x2f5   :  { %6367 = vmatpush.msra.mxu3 %v11109_v41  ;;  %6177 = vmatpush.msra.mxu0 %v11157_v35 }
 0x2f6   :  { %6457 = vmatpush.msrb.mxu1 %v10965_v24  ;;  %6331 = vmatpush.msra.mxu2 %v11167_v31  ;;  %v4777_v24 = vld [vmem:[%s12122_s3 + $0x120] sm:$0xff]  ;;  %v6550_v2 = vand.u32 4294901760, %v11297_v15  ;;  %v6545_v55 = vsub.f32 %v11284_v56, %v12195_v32  ;;  %v11362_v32 = vand.u32 4294901760, %v4775_v16 }
 0x2f7   :  { %6369 = vmatpush.msra.mxu3 %v11125_v29  ;;  %6179 = vmatpush.msra.mxu0 %v11169_v45  ;;  %v11331_v17 = vand.u32 4294901760, %v4777_v24 }
 0x2f8   :  { %6459 = vmatpush.msrb.mxu1 %v10978_v57  ;;  %6334 = vmatpush.msra.mxu2 %v11179_v19  ;;  %v4776_v57 = vld [vmem:[%s12122_s3 + $0x118] sm:$0xff]  ;;  %v6551_v63 = vsub.f32 %v11297_v15, %v6550_v2  ;;  %v6546_v14 = vand.u32 4294901760, %v6545_v55  ;;  %v11392_v55 = vsub.f32 %v4775_v16, %v11362_v32 }
 0x2f9   :  { %6371 = vmatpush.msra.mxu3 %v11141_v33  ;;  %6185 = vmatmul.f32.vlgmr.msra.gmra.mxu0 %v6184_v22  ;;  %v6534_v22 = vand.u32 4294901760, %v6533_v34  ;;  %v11348_v61 = vand.u32 4294901760, %v4776_v57  ;;  %v6540_v34 = vand.u32 4294901760, %v6539_v10 }
 0x2fa   :  { %6386 = vmatpush.msrb.mxu0 %v6191_v27  ;;  %6461 = vmatpush.msrb.mxu1 %v10989_v8  ;;  %v6556_v27 = vand.u32 4294901760, %v11313_v9  ;;  %v11346_v8 = vsub.f32 %v4778_v0, %v11315_v38  ;;  %v11360_v0 = vsub.f32 %v4777_v24, %v11331_v17 }
 0x2fb   :  { %6337 = vmatpush.msra.mxu2 %v11189_v5  ;;  %6373 = vmatpush.msra.mxu3 %v11157_v35  ;;  %v11376_v24 = vsub.f32 %v4776_v57, %v11348_v61 }
 0x2fc   :  { %6340 = vmatmul.f32.vlgmr.msra.gmra.mxu2 %v11233_v46  ;;  %6390 = vmatpush.msrb.mxu0 %v6197_v30  ;;  %v6562_v30 = vand.u32 4294901760, %v11329_v53  ;;  %v6568_v10 = vand.u32 4294901760, %v11346_v8  ;;  %v4773_v46 = vld [vmem:[%s12122_s3 + $0x100] sm:$0xff] }
 0x2fd   :  { %6463 = vmatpush.msrb.mxu1 %v11008_v12  ;;  %6494 = vmatpush.msrb.mxu2 %v11236_v51  ;;  %v4774_v12 = vld [vmem:[%s12122_s3 + $0x108] sm:$0xff]  ;;  %v6580_v16 = vand.u32 4294901760, %v11376_v24 }
 0x2fe   :  { %6375 = vmatpush.msra.mxu3 %v11169_v45  ;;  %6394 = vmatpush.msrb.mxu0 %v6203_v13  ;;  %v6557_v13 = vsub.f32 %v11313_v9, %v6556_v27  ;;  %v6563_v57 = vsub.f32 %v11329_v53, %v6562_v30 }
 0x2ff   :  { %6379 = vmatmul.f32.vlgmr.msra.gmra.mxu3 %v6182_v39  ;;  %6465 = vmatpush.msrb.mxu1 %v11023_v58  ;;  %v11384_v58 = vand.u32 4294901760, %v4774_v12  ;;  %v6552_v39 = vand.u32 4294901760, %v6551_v63  ;;  %v6586_v63 = vand.u32 4294901760, %v11392_v55 }
 0x300   :  { %6496 = vmatpush.msrb.mxu2 %v11241_v4  ;;  %6535 = vmatpush.msrb.mxu3 %v6534_v22  ;;  %v6574_v22 = vand.u32 4294901760, %v11360_v0 }
 0x301   :  { %6398 = vmatpush.msrb.mxu0 %v6209_v20  ;;  %6467 = vmatpush.msrb.mxu1 %v11034_v25  ;;  %v11400_v20 = vand.u32 4294901760, %v4773_v46  ;;  %v6558_v25 = vand.u32 4294901760, %v6557_v13  ;;  %v11411_v52 = vsub.f32 %v4774_v12, %v11384_v58  ;;  %v12405_v12 = vand.u32 4294901760, %v11091_v50 }
 0x302   :  { %6498 = vmatpush.msrb.mxu2 %v11258_v18  ;;  %6541 = vmatpush.msrb.mxu3 %v6540_v34  ;;  %v6569_v34 = vsub.f32 %v11346_v8, %v6568_v10 }
 0x303   :  { %6402 = vmatpush.msrb.mxu0 %v6215_v59  ;;  %6469 = vmatpush.msrb.mxu1 %v11059_v26  ;;  %v6564_v59 = vand.u32 4294901760, %v6563_v57  ;;  %v6575_v26 = vsub.f32 %v11360_v0, %v6574_v22  ;;  %v11426_v1 = vsub.f32 %v4773_v46, %v11400_v20  ;;  %v12407_v46 = vand.u32 4294901760, %v11123_v43 }
 0x304   :  { %6500 = vmatpush.msrb.mxu2 %v11270_v54  ;;  %6547 = vmatpush.msrb.mxu3 %v6546_v14  ;;  %v11420_v14 = vsub.f32 %v10451_v28, %v11395_v42  ;;  %v6592_v28 = vand.u32 4294901760, %v11411_v52 }
 0x305   :  { %6406 = vmatpush.msrb.mxu0 %v6221_v49  ;;  %6471 = vmatpush.msrb.mxu1 %v11077_v7  ;;  %v6570_v49 = vand.u32 4294901760, %v6569_v34  ;;  %v6581_v7 = vsub.f32 %v11376_v24, %v6580_v16  ;;  %v6576_v37 = vand.u32 4294901760, %v6575_v26  ;;  %v6598_v6 = vand.u32 4294901760, %v11426_v1 }
 0x306   :  { %6502 = vmatpush.msrb.mxu2 %v11286_v3  ;;  %6553 = vmatpush.msrb.mxu3 %v6552_v39  ;;  %v6593_v13 = vsub.f32 %v11411_v52, %v6592_v28  ;;  %v12414_v34 = vand.u32 4294901760, %v11284_v56 }
 0x307   :  { %6410 = vmatpush.msrb.mxu0 %v6227_v48  ;;  %6473 = vmatpush.msrb.mxu1 %v11093_v11  ;;  %v6587_v48 = vsub.f32 %v11392_v55, %v6586_v63  ;;  %v6519_v11 = vand.u32 4294901760, %v11420_v14 }
 0x308   :  { %6504 = vmatpush.msrb.mxu2 %v11299_v21  ;;  %6559 = vmatpush.msrb.mxu3 %v6558_v25  ;;  %v6594_v39 = vand.u32 4294901760, %v6593_v13  ;;  %v12413_v25 = vand.u32 4294901760, %v11179_v19  ;;  %v5026_v19 = vpop.f32.mrf.mxu2 }
 0x309   :  { %6414 = vmatpush.msrb.mxu0 %v6233_v60  ;;  %6475 = vmatpush.msrb.mxu1 %v11109_v41  ;;  %v6582_v60 = vand.u32 4294901760, %v6581_v7  ;;  %v12406_v41 = vand.u32 4294901760, %v11107_v44  ;;  %v6588_v50 = vand.u32 4294901760, %v6587_v48  ;;  %v6599_v44 = vsub.f32 %v11426_v1, %v6598_v6  ;;  %v6794_v48 = vld [vmem:[%s12125_s6 + $0x50] sm:$0xff] }
 0x30a   :  { %6506 = vmatpush.msrb.mxu2 %v11315_v38  ;;  %6565 = vmatpush.msrb.mxu3 %v6564_v59 }
 0x30b   :  { %6418 = vmatpush.msrb.mxu0 %v12405_v12  ;;  %6477 = vmatpush.msrb.mxu1 %v11125_v29  ;;  %v6520_v29 = vsub.f32 %v11420_v14, %v6519_v11  ;;  %v6600_v57 = vand.u32 4294901760, %v6599_v44 }
 0x30c   :  { %6508 = vmatpush.msrb.mxu2 %v11331_v17  ;;  %6571 = vmatpush.msrb.mxu3 %v6570_v49 }
 0x30d   :  { %6422 = vmatpush.msrb.mxu0 %v12406_v41  ;;  %6479 = vmatpush.msrb.mxu1 %v11141_v33  ;;  %v12408_v33 = vand.u32 4294901760, %v11139_v62  ;;  %v6521_v43 = vand.u32 4294901760, %v6520_v29  ;;  %v12410_v62 = vand.u32 4294901760, %v11251_v36 }
 0x30e   :  { %6510 = vmatpush.msrb.mxu2 %v11348_v61  ;;  %6577 = vmatpush.msrb.mxu3 %v6576_v37 }
 0x30f   :  { %6426 = vmatpush.msrb.mxu0 %v12407_v46  ;;  %6481 = vmatpush.msrb.mxu1 %v11157_v35  ;;  %v12409_v35 = vand.u32 4294901760, %v11155_v40  ;;  %v12412_v40 = vand.u32 4294901760, %v11263_v47 }
 0x310   :  { %6512 = vmatpush.msrb.mxu2 %v11362_v32  ;;  %6583 = vmatpush.msrb.mxu3 %v6582_v60  ;;  %v11614_v60 = vand.u32 4294901760, %v6794_v48 }
 0x311   :  { %6430 = vmatpush.msrb.mxu0 %v12408_v33  ;;  %6483 = vmatpush.msrb.mxu1 %v11169_v45  ;;  %v12411_v45 = vand.u32 4294901760, %v11167_v31  ;;  %v12415_v31 = vand.u32 4294901760, %v11189_v5 }
 0x312   :  { %6514 = vmatpush.msrb.mxu2 %v11384_v58  ;;  %6589 = vmatpush.msrb.mxu3 %v6588_v50  ;;  %v6793_v50 = vld [vmem:[%s12125_s6 + $0x48] sm:$0xff]  ;;  %v11624_v44 = vsub.f32 %v6794_v48, %v11614_v60 }
 0x313   :  { %6485 = vmatmul.f32.vlgmr.msrb.gmra.mxu1 %v11214_v23  ;;  %6434 = vmatpush.msrb.mxu0 %v12409_v35  ;;  %v11626_v33 = vand.u32 4294901760, %v6793_v50 }
 0x314   :  { %6658 = vmatpush.msra.mxu1 %v11236_v51  ;;  %6516 = vmatpush.msrb.mxu2 %v11400_v20 }
 0x315   :  { %6595 = vmatpush.msrb.mxu3 %v6594_v39  ;;  %6522 = vmatmul.f32.vlgmr.msrb.gmra.mxu2 %v6521_v43  ;;  %v6792_v39 = vld [vmem:[%s12125_s6 + $0x40] sm:$0xff] }
 0x316   :  { %6660 = vmatpush.msra.mxu1 %v11241_v4  ;;  %6695 = vmatpush.msra.mxu2 %v12410_v62  ;;  %v6877_v62 = vand.u32 4294901760, %v11624_v44 }
 0x317   :  { %6438 = vmatpush.msrb.mxu0 %v12411_v45  ;;  %6601 = vmatpush.msrb.mxu3 %v6600_v57  ;;  %v11639_v45 = vsub.f32 %v6793_v50, %v11626_v33 }
 0x318   :  { %6603 = vmatmul.f32.vlgmr.msrb.gmra.mxu3 %v11395_v42  ;;  %6662 = vmatpush.msra.mxu1 %v11258_v18 }
 0x319   :  { %6699 = vmatpush.msra.mxu2 %v12412_v40  ;;  %6750 = vmatpush.msra.mxu3 %v11236_v51  ;;  %v11641_v40 = vand.u32 4294901760, %v6792_v39 }
 0x31a   :  { %6442 = vmatpush.msrb.mxu0 %v12413_v25  ;;  %6664 = vmatpush.msra.mxu1 %v11270_v54 }
 0x31b   :  { %6703 = vmatpush.msra.mxu2 %v12414_v34  ;;  %6752 = vmatpush.msra.mxu3 %v11241_v4  ;;  %v6791_v34 = vld [vmem:[%s12125_s6 + $0x38] sm:$0xff] }
 0x31c   :  { %6446 = vmatpush.msrb.mxu0 %v12415_v31  ;;  %6666 = vmatpush.msra.mxu1 %v11286_v3 }
 0x31d   :  { %6448 = vmatmul.f32.vlgmr.msrb.gmra.mxu0 %v11214_v23  ;;  %6707 = vmatpush.msra.mxu2 %v6550_v2  ;;  %v6798_v2 = vld [vmem:[%s12125_s6 + $0x70] sm:$0xff] }
 0x31e   :  { %6613 = vmatpush.msra.mxu0 %v11251_v36  ;;  %6754 = vmatpush.msra.mxu3 %v11258_v18  ;;  %v5212_v18 = vpop.f32.mrf.mxu2 }
 0x31f   :  { %6668 = vmatpush.msra.mxu1 %v11299_v21  ;;  %6711 = vmatpush.msra.mxu2 %v6556_v27 }
 0x320   :  { %6616 = vmatpush.msra.mxu0 %v11263_v47  ;;  %6756 = vmatpush.msra.mxu3 %v11270_v54 }
 0x321   :  { %6670 = vmatpush.msra.mxu1 %v11315_v38  ;;  %6715 = vmatpush.msra.mxu2 %v6562_v30  ;;  %v6796_v30 = vld [vmem:[%s12125_s6 + $0x60] sm:$0xff] }
 0x322   :  { %6619 = vmatpush.msra.mxu0 %v11284_v56  ;;  %6758 = vmatpush.msra.mxu3 %v11286_v3  ;;  %v5065_v3 = vpop.f32.mrf.mxu3  ;;  %v6799_v56 = vld [vmem:[%s12125_s6 + $0x78] sm:$0xff] }
 0x323   :  { %6672 = vmatpush.msra.mxu1 %v11331_v17  ;;  %6719 = vmatpush.msra.mxu2 %v6568_v10 }
 0x324   :  { %6622 = vmatpush.msra.mxu0 %v11297_v15  ;;  %6760 = vmatpush.msra.mxu3 %v11299_v21 }
 0x325   :  { %6674 = vmatpush.msra.mxu1 %v11348_v61  ;;  %6723 = vmatpush.msra.mxu2 %v6574_v22 }
 0x326   :  { %6625 = vmatpush.msra.mxu0 %v11313_v9  ;;  %6762 = vmatpush.msra.mxu3 %v11315_v38 }
 0x327   :  { %6676 = vmatpush.msra.mxu1 %v11362_v32  ;;  %6727 = vmatpush.msra.mxu2 %v6580_v16 }
 0x328   :  { %6628 = vmatpush.msra.mxu0 %v11329_v53  ;;  %6764 = vmatpush.msra.mxu3 %v11331_v17  ;;  %v4871_v17 = vpop.f32.mrf.mxu0  ;;  %v4972_v53 = vpop.f32.mrf.mxu1 }
 0x329   :  { %6678 = vmatpush.msra.mxu1 %v11384_v58  ;;  %6731 = vmatpush.msra.mxu2 %v6586_v63  ;;  %v4973_v38 = vadd.f32 %v4972_v53, %v4871_v17  ;;  %v6878_v17 = vsub.f32 %v11624_v44, %v6877_v62  ;;  %v6883_v53 = vand.u32 4294901760, %v11639_v45 }
 0x32a   :  { %6631 = vmatpush.msra.mxu0 %v11346_v8  ;;  %6766 = vmatpush.msra.mxu3 %v11348_v61  ;;  %v5313_v15 = vpop.f32.mrf.mxu3  ;;  %v11555_v8 = vand.u32 4294901760, %v6798_v2  ;;  %v6797_v61 = vld [vmem:[%s12125_s6 + $0x68] sm:$0xff] }
 0x32b   :  { %6680 = vmatpush.msra.mxu1 %v11400_v20  ;;  %6735 = vmatpush.msra.mxu2 %v6592_v28  ;;  %v5027_v5 = vadd.f32 %v5026_v19, %v4973_v38  ;;  %v11565_v10 = vand.u32 4294901760, %v6797_v61  ;;  %v11654_v38 = vsub.f32 %v6792_v39, %v11641_v40 }
 0x32c   :  { %6634 = vmatpush.msra.mxu0 %v11360_v0  ;;  %6768 = vmatpush.msra.mxu3 %v11362_v32  ;;  %v11547_v32 = vand.u32 4294901760, %v6799_v56  ;;  %v11571_v22 = vsub.f32 %v6798_v2, %v11555_v8 }
 0x32d   :  { %6684 = vmatmul.f32.vlgmr.msra.gmra.mxu1 %v6519_v11  ;;  %6739 = vmatpush.msra.mxu2 %v6598_v6  ;;  %v5066_v51 = vadd.f32 %v5065_v3, %v5027_v5  ;;  %v5475_v11 = vpop.f32.mrf.mxu2  ;;  %v11657_v5 = vand.u32 4294901760, %v6791_v34  ;;  %v6790_v3 = vld [vmem:[%s12125_s6 + $0x30] sm:$0xff] }
 0x32e   :  { %6637 = vmatpush.msra.mxu0 %v11376_v24  ;;  %6770 = vmatpush.msra.mxu3 %v11384_v58  ;;  %v11553_v27 = vsub.f32 %v6799_v56, %v11547_v32  ;;  %v11567_v24 = vand.u32 4294901760, %v6796_v30 }
 0x32f   :  { %6741 = vmatmul.f32.vlgmr.msra.gmra.mxu2 %v11395_v42 }
 0x330   :  { %6640 = vmatpush.msra.mxu0 %v11392_v55  ;;  %6772 = vmatpush.msra.mxu3 %v11400_v20  ;;  %v5134_v23 = vpop.f32.mrf.mxu0  ;;  %v5171_v36 = vpop.f32.mrf.mxu1  ;;  %v6847_v58 = vand.u32 4294901760, %v11553_v27  ;;  %v11576_v55 = vsub.f32 %v6797_v61, %v11565_v10 }
 0x331   :  { %6774 = vmatmul.f32.vlgmr.msra.gmra.mxu3 %v11395_v42  ;;  %v5135_v4 = vadd.f32 %v5134_v23, %v5066_v51  ;;  %6948 = vmatpush.msrb.mxu2 %v11553_v27  ;;  %v11579_v42 = vsub.f32 %v6796_v30, %v11567_v24  ;;  %v6879_v23 = vand.u32 4294901760, %v6878_v17  ;;  %v6884_v51 = vsub.f32 %v11639_v45, %v6883_v53  ;;  %v6788_v30 = vld [vmem:[%s12125_s6 + $0x20] sm:$0xff] }
 0x332   :  { %6643 = vmatpush.msra.mxu0 %v11411_v52  ;;  %7001 = vmatpush.msrb.mxu3 %v11547_v32  ;;  %v6848_v16 = vsub.f32 %v11553_v27, %v6847_v58  ;;  %v6853_v52 = vand.u32 4294901760, %v11571_v22  ;;  %v6859_v26 = vand.u32 4294901760, %v11576_v55  ;;  %v5512_v43 = vpop.f32.mrf.mxu3 }
 0x333   :  { %v5172_v47 = vadd.f32 %v5171_v36, %v5135_v4  ;;  %6951 = vmatpush.msrb.mxu2 %v11571_v22  ;;  %v6865_v63 = vand.u32 4294901760, %v11579_v42  ;;  %v6889_v4 = vand.u32 4294901760, %v11654_v38  ;;  %v11668_v36 = vand.u32 4294901760, %v6790_v3 }
 0x334   :  { %6646 = vmatpush.msra.mxu0 %v11426_v1  ;;  %7003 = vmatpush.msrb.mxu3 %v11555_v8  ;;  %v6849_v1 = vand.u32 4294901760, %v6848_v16  ;;  %v6854_v49 = vsub.f32 %v11571_v22, %v6853_v52  ;;  %v6860_v28 = vsub.f32 %v11576_v55, %v6859_v26  ;;  %v6885_v56 = vand.u32 4294901760, %v6884_v51 }
 0x335   :  { %6649 = vmatmul.f32.vlgmr.msra.gmra.mxu0 %v11420_v14  ;;  %v5213_v54 = vadd.f32 %v5212_v18, %v5172_v47  ;;  %v6795_v14 = vld [vmem:[%s12125_s6 + $0x58] sm:$0xff]  ;;  %6954 = vmatpush.msrb.mxu2 %v11576_v55  ;;  %v6866_v37 = vsub.f32 %v11579_v42, %v6865_v63  ;;  %v11671_v18 = vsub.f32 %v6791_v34, %v11657_v5  ;;  %v6789_v47 = vld [vmem:[%s12125_s6 + $0x28] sm:$0xff] }
 0x336   :  { %6805 = vmatpush.msrb.mxu0 %v11547_v32  ;;  %7005 = vmatpush.msrb.mxu3 %v11565_v10  ;;  %v11597_v7 = vand.u32 4294901760, %v6795_v14  ;;  %v6855_v12 = vand.u32 4294901760, %v6854_v49  ;;  %v6861_v13 = vand.u32 4294901760, %v6860_v28  ;;  %v5676_v49 = vpop.f32.mrf.mxu2 }
 0x337   :  { %v5314_v9 = vadd.f32 %v5313_v15, %v5213_v54  ;;  %6850 = vmatpush.msrb.mxu1 %v6849_v1  ;;  %6957 = vmatpush.msrb.mxu2 %v11579_v42  ;;  %v6867_v29 = vand.u32 4294901760, %v6866_v37  ;;  %v6890_v15 = vsub.f32 %v11654_v38, %v6889_v4  ;;  %v6895_v61 = vand.u32 4294901760, %v11671_v18  ;;  %v6787_v1 = vld [vmem:[%s12125_s6 + $0x18] sm:$0xff] }
 0x338   :  { %v5367_v21 = vpop.f32.mrf.mxu0  ;;  %6807 = vmatpush.msrb.mxu0 %v11555_v8  ;;  %v5406_v20 = vpop.f32.mrf.mxu1  ;;  %7007 = vmatpush.msrb.mxu3 %v11567_v24  ;;  %v11612_v6 = vsub.f32 %v6795_v14, %v11597_v7  ;;  %v11701_v14 = vand.u32 4294901760, %v6788_v30  ;;  %v11712_v48 = vand.u32 4294901760, %v6787_v1 }
 0x339   :  { %v5368_v0 = vadd.f32 %v5367_v21, %v5314_v9  ;;  %6856 = vmatpush.msrb.mxu1 %v6855_v12  ;;  %v11682_v21 = vsub.f32 %v6790_v3, %v11668_v36  ;;  %v11684_v9 = vand.u32 4294901760, %v6789_v47 }
 0x33a   :  { %6809 = vmatpush.msrb.mxu0 %v11565_v10  ;;  %7009 = vmatpush.msrb.mxu3 %v11597_v7  ;;  %v6871_v46 = vand.u32 4294901760, %v11612_v6  ;;  %v11727_v39 = vsub.f32 %v6787_v1, %v11712_v48 }
 0x33b   :  { %v5407_v59 = vadd.f32 %v5406_v20, %v5368_v0  ;;  %6960 = vmatpush.msrb.mxu2 %v11612_v6  ;;  %6862 = vmatpush.msrb.mxu1 %v6861_v13  ;;  %v6891_v0 = vand.u32 4294901760, %v6890_v15  ;;  %v6901_v20 = vand.u32 4294901760, %v11682_v21  ;;  %v11695_v16 = vsub.f32 %v6789_v47, %v11684_v9  ;;  %v6786_v13 = vld [vmem:[%s12125_s6 + $0x10] sm:$0xff]  ;;  %v6784_v47 = vld [vmem:[%s12125_s6] sm:$0xff] }
 0x33c   :  { %6811 = vmatpush.msrb.mxu0 %v11567_v24  ;;  %7011 = vmatpush.msrb.mxu3 %v11614_v60  ;;  %v6872_v57 = vsub.f32 %v11612_v6, %v6871_v46  ;;  %v6919_v17 = vand.u32 4294901760, %v11727_v39 }
 0x33d   :  { %v5476_v41 = vadd.f32 %v5475_v11, %v5407_v59  ;;  %6963 = vmatpush.msrb.mxu2 %v11624_v44  ;;  %6868 = vmatpush.msrb.mxu1 %v6867_v29  ;;  %v6896_v59 = vsub.f32 %v11671_v18, %v6895_v61  ;;  %v6902_v28 = vsub.f32 %v11682_v21, %v6901_v20  ;;  %v6907_v37 = vand.u32 4294901760, %v11695_v16 }
 0x33e   :  { %6813 = vmatpush.msrb.mxu0 %v11597_v7  ;;  %7013 = vmatpush.msrb.mxu3 %v11626_v33  ;;  %v6873_v31 = vand.u32 4294901760, %v6872_v57  ;;  %v6785_v57 = vld [vmem:[%s12125_s6 + $0x8] sm:$0xff] }
 0x33f   :  { %v5513_v25 = vadd.f32 %v5512_v43, %v5476_v41  ;;  %6966 = vmatpush.msrb.mxu2 %v11639_v45  ;;  %v6897_v12 = vand.u32 4294901760, %v6896_v59  ;;  %v11716_v41 = vsub.f32 %v6788_v30, %v11701_v14  ;;  %v6903_v50 = vand.u32 4294901760, %v6902_v28 }
 0x340   :  { %6815 = vmatpush.msrb.mxu0 %v11614_v60  ;;  %v5549_v35 = vpop.f32.mrf.mxu0  ;;  %7015 = vmatpush.msrb.mxu3 %v11641_v40  ;;  %v5630_v54 = vpop.f32.mrf.mxu1  ;;  %v6908_v29 = vsub.f32 %v11695_v16, %v6907_v37  ;;  %v11729_v43 = vand.u32 4294901760, %v6786_v13  ;;  %v11741_v3 = vand.u32 4294901760, %v6785_v57 }
 0x341   :  { %v5550_v19 = vadd.f32 %v5549_v35, %v5513_v25  ;;  %6874 = vmatpush.msrb.mxu1 %v6873_v31  ;;  %6969 = vmatpush.msrb.mxu2 %v11654_v38  ;;  %v6913_v35 = vand.u32 4294901760, %v11716_v41  ;;  %v5711_v25 = vpop.f32.mrf.mxu3 }
 0x342   :  { %6817 = vmatpush.msrb.mxu0 %v11626_v33  ;;  %7017 = vmatpush.msrb.mxu3 %v11657_v5  ;;  %v6909_v31 = vand.u32 4294901760, %v6908_v29  ;;  %v11757_v15 = vsub.f32 %v6785_v57, %v11741_v3  ;;  %v5845_v29 = vpop.f32.mrf.mxu2 }
 0x343   :  { %6880 = vmatpush.msrb.mxu1 %v6879_v23  ;;  %v5631_v2 = vadd.f32 %v5630_v54, %v5550_v19  ;;  %6972 = vmatpush.msrb.mxu2 %v11671_v18  ;;  %v11739_v19 = vsub.f32 %v6786_v13, %v11729_v43  ;;  %v6914_v51 = vsub.f32 %v11716_v41, %v6913_v35  ;;  %v7160_v18 = vld [vmem:[%s12127_s8 + $0x70] sm:$0xff] }
 0x344   :  { %6819 = vmatpush.msrb.mxu0 %v11641_v40  ;;  %7019 = vmatpush.msrb.mxu3 %v11668_v36  ;;  %v6920_v54 = vsub.f32 %v11727_v39, %v6919_v17 }
 0x345   :  { %6886 = vmatpush.msrb.mxu1 %v6885_v56  ;;  %6975 = vmatpush.msrb.mxu2 %v11682_v21  ;;  %v5677_v11 = vadd.f32 %v5676_v49, %v5631_v2  ;;  %v6925_v56 = vand.u32 4294901760, %v11739_v19  ;;  %v11759_v2 = vand.u32 4294901760, %v6784_v47  ;;  %v6931_v49 = vand.u32 4294901760, %v11757_v15  ;;  %v7159_v21 = vld [vmem:[%s12127_s8 + $0x68] sm:$0xff] }
 0x346   :  { %6821 = vmatpush.msrb.mxu0 %v11657_v5  ;;  %7021 = vmatpush.msrb.mxu3 %v11684_v9  ;;  %v6921_v59 = vand.u32 4294901760, %v6920_v54 }
 0x347   :  { %6892 = vmatpush.msrb.mxu1 %v6891_v0  ;;  %6978 = vmatpush.msrb.mxu2 %v11695_v16  ;;  %v5712_v23 = vadd.f32 %v5711_v25, %v5677_v11  ;;  %v6915_v0 = vand.u32 4294901760, %v6914_v51  ;;  %v6926_v1 = vsub.f32 %v11739_v19, %v6925_v56  ;;  %v11769_v28 = vsub.f32 %v6784_v47, %v11759_v2 }
 0x348   :  { %6823 = vmatpush.msrb.mxu0 %v11668_v36  ;;  %7023 = vmatpush.msrb.mxu3 %v11701_v14  ;;  %v5768_v34 = vpop.f32.mrf.mxu0  ;;  %v11841_v16 = vand.u32 4294901760, %v7159_v21 }
 0x349   :  { %6898 = vmatpush.msrb.mxu1 %v6897_v12  ;;  %6981 = vmatpush.msrb.mxu2 %v11716_v41  ;;  %v5769_v30 = vadd.f32 %v5768_v34, %v5712_v23  ;;  %v6927_v11 = vand.u32 4294901760, %v6926_v1  ;;  %v6932_v12 = vsub.f32 %v11757_v15, %v6931_v49  ;;  %v6937_v13 = vand.u32 4294901760, %v11769_v28 }
 0x34a   :  { %6825 = vmatpush.msrb.mxu0 %v11684_v9  ;;  %7025 = vmatpush.msrb.mxu3 %v11712_v48  ;;  %v11868_v54 = vsub.f32 %v7159_v21, %v11841_v16 }
 0x34b   :  { %6904 = vmatpush.msrb.mxu1 %v6903_v50  ;;  %6984 = vmatpush.msrb.mxu2 %v11727_v39  ;;  %v5801_v50 = vpop.f32.mrf.mxu1  ;;  %v6933_v25 = vand.u32 4294901760, %v6932_v12  ;;  %v6938_v34 = vsub.f32 %v11769_v28, %v6937_v13  ;;  %v7601_v12 = vld [vmem:[%s12124_s5] ss:$0 sm:$0xff] }
 0x34c   :  { %6827 = vmatpush.msrb.mxu0 %v11701_v14  ;;  %7027 = vmatpush.msrb.mxu3 %v11729_v43  ;;  %v5802_v57 = vadd.f32 %v5801_v50, %v5769_v30 }
 0x34d   :  { %6910 = vmatpush.msrb.mxu1 %v6909_v31  ;;  %6987 = vmatpush.msrb.mxu2 %v11739_v19  ;;  %v6939_v27 = vand.u32 4294901760, %v6938_v34 }
 0x34e   :  { %6829 = vmatpush.msrb.mxu0 %v11712_v48  ;;  %7029 = vmatpush.msrb.mxu3 %v11741_v3  ;;  %v5846_v31 = vadd.f32 %v5845_v29, %v5802_v57 }
 0x34f   :  { %6916 = vmatpush.msrb.mxu1 %v6915_v0  ;;  %6990 = vmatpush.msrb.mxu2 %v11757_v15 }
 0x350   :  { %6831 = vmatpush.msrb.mxu0 %v11729_v43  ;;  %7031 = vmatpush.msrb.mxu3 %v11759_v2 }
 0x351   :  { %6922 = vmatpush.msrb.mxu1 %v6921_v59  ;;  %6993 = vmatpush.msrb.mxu2 %v11769_v28  ;;  %v7221_v28 = vand.u32 4294901760, %v11868_v54 }
 0x352   :  { %6833 = vmatpush.msrb.mxu0 %v11741_v3 }
 0x353   :  { %6928 = vmatpush.msrb.mxu1 %v6927_v11  ;;  %v6039_v55 = vpop.f32.mrf.mxu1 }
 0x354   :  { %6835 = vmatpush.msrb.mxu0 %v11759_v2  ;;  %v6000_v23 = vpop.f32.mrf.mxu0 }
 0x355   :  { %6934 = vmatpush.msrb.mxu1 %v6933_v25 }
 0x356   :  { %7042 = vmatpush.msra.mxu0 %v6847_v58  ;;  %v5946_v58 = vpop.f32.mrf.mxu3 }
 0x357   :  { %6940 = vmatpush.msrb.mxu1 %v6939_v27  ;;  %v5947_v51 = vadd.f32 %v5946_v58, %v5846_v31  ;;  %v7222_v31 = vsub.f32 %v11868_v54, %v7221_v28 }
 0x358   :  { %7046 = vmatpush.msra.mxu0 %v6853_v52 }
 0x359   :  { %7109 = vmatpush.msra.mxu1 %v11547_v32  ;;  %v6001_v22 = vadd.f32 %v6000_v23, %v5947_v51  ;;  %v7154_v51 = vld [vmem:[%s12127_s8 + $0x40] sm:$0xff] }
 0x35a   :  { %7050 = vmatpush.msra.mxu0 %v6859_v26 }
 0x35b   :  { %7111 = vmatpush.msra.mxu1 %v11555_v8  ;;  %v6040_v52 = vadd.f32 %v6039_v55, %v6001_v22  ;;  %v7153_v22 = vld [vmem:[%s12127_s8 + $0x38] sm:$0xff]  ;;  %v7152_v55 = vld [vmem:[%s12127_s8 + $0x30] sm:$0xff] }
 0x35c   :  { %7054 = vmatpush.msra.mxu0 %v6865_v63 }
 0x35d   :  { %7113 = vmatpush.msra.mxu1 %v11565_v10  ;;  %v6108_v42 = vpop.f32.mrf.mxu2 }
 0x35e   :  { %7058 = vmatpush.msra.mxu0 %v6871_v46  ;;  %v6109_v32 = vadd.f32 %v6108_v42, %v6040_v52 }
 0x35f   :  { %7115 = vmatpush.msra.mxu1 %v11567_v24 }
 0x360   :  { %7062 = vmatpush.msra.mxu0 %v6877_v62  ;;  %v6145_v8 = vpop.f32.mrf.mxu3 }
 0x361   :  { %7117 = vmatpush.msra.mxu1 %v11597_v7  ;;  %v6146_v26 = vadd.f32 %v6145_v8, %v6109_v32  ;;  %v7151_v32 = vld [vmem:[%s12127_s8 + $0x28] sm:$0xff] }
 0x362   :  { %7066 = vmatpush.msra.mxu0 %v6883_v53 }
 0x363   :  { %7119 = vmatpush.msra.mxu1 %v11614_v60 }
 0x364   :  { %7070 = vmatpush.msra.mxu0 %v6889_v4 }
 0x365   :  { %7121 = vmatpush.msra.mxu1 %v11626_v33 }
 0x366   :  { %7074 = vmatpush.msra.mxu0 %v6895_v61 }
 0x367   :  { %7123 = vmatpush.msra.mxu1 %v11641_v40 }
 0x368   :  { %7078 = vmatpush.msra.mxu0 %v6901_v20  ;;  %v11839_v20 = vand.u32 4294901760, %v7160_v18 }
 0x369   :  { %7125 = vmatpush.msra.mxu1 %v11657_v5 }
 0x36a   :  { %7082 = vmatpush.msra.mxu0 %v6907_v37  ;;  %v7157_v37 = vld [vmem:[%s12127_s8 + $0x58] sm:$0xff]  ;;  %v11865_v47 = vsub.f32 %v7160_v18, %v11839_v20 }
 0x36b   :  { %7127 = vmatpush.msra.mxu1 %v11668_v36  ;;  %v7161_v36 = vld [vmem:[%s12127_s8 + $0x78] sm:$0xff] }
 0x36c   :  { %7086 = vmatpush.msra.mxu0 %v6913_v35  ;;  %v11837_v61 = vand.u32 4294901760, %v7161_v36 }
 0x36d   :  { %7129 = vmatpush.msra.mxu1 %v11684_v9 }
 0x36e   :  { %7090 = vmatpush.msra.mxu0 %v6919_v17  ;;  %v6287_v63 = vpop.f32.mrf.mxu1  ;;  %v7155_v17 = vld [vmem:[%s12127_s8 + $0x48] sm:$0xff]  ;;  %7167 = vmatpush.msra.mxu2 %v11837_v61 }
 0x36f   :  { %7131 = vmatpush.msra.mxu1 %v11701_v14  ;;  %v7158_v14 = vld [vmem:[%s12127_s8 + $0x60] sm:$0xff] }
 0x370   :  { %7094 = vmatpush.msra.mxu0 %v6925_v56  ;;  %v11852_v39 = vand.u32 4294901760, %v7158_v14  ;;  %v11871_v56 = vand.u32 4294901760, %v7155_v17  ;;  %7169 = vmatpush.msra.mxu2 %v11839_v20 }
 0x371   :  { %7133 = vmatpush.msra.mxu1 %v11712_v48  ;;  %v7156_v48 = vld [vmem:[%s12127_s8 + $0x50] sm:$0xff] }
 0x372   :  { %7098 = vmatpush.msra.mxu0 %v6931_v49  ;;  %v11856_v35 = vand.u32 4294901760, %v7156_v48  ;;  %v7215_v49 = vand.u32 4294901760, %v11865_v47  ;;  %v11892_v29 = vsub.f32 %v7155_v17, %v11871_v56  ;;  %7171 = vmatpush.msra.mxu2 %v11841_v16 }
 0x373   :  { %7135 = vmatpush.msra.mxu1 %v11729_v43  ;;  %v11854_v43 = vand.u32 4294901760, %v7157_v37 }
 0x374   :  { %7102 = vmatpush.msra.mxu0 %v6937_v13  ;;  %v11880_v0 = vsub.f32 %v7156_v48, %v11856_v35  ;;  %v7216_v34 = vsub.f32 %v11865_v47, %v7215_v49  ;;  %7173 = vmatpush.msra.mxu2 %v11852_v39 }
 0x375   :  { %7137 = vmatpush.msra.mxu1 %v11741_v3  ;;  %v11862_v3 = vsub.f32 %v7161_v36, %v11837_v61  ;;  %v11877_v30 = vsub.f32 %v7157_v37, %v11854_v43 }
 0x376   :  { %v6186_v10 = vpop.f32.mrf.mxu0  ;;  %v7239_v23 = vand.u32 4294901760, %v11880_v0  ;;  %v7217_v52 = vand.u32 4294901760, %v7216_v34  ;;  %7175 = vmatpush.msra.mxu2 %v11854_v43 }
 0x377   :  { %v6187_v24 = vadd.f32 %v6186_v10, %v6146_v26  ;;  %7139 = vmatpush.msra.mxu1 %v11759_v2  ;;  %v11874_v2 = vsub.f32 %v7158_v14, %v11852_v39  ;;  %v7209_v1 = vand.u32 4294901760, %v11862_v3  ;;  %v7233_v50 = vand.u32 4294901760, %v11877_v30 }
 0x378   :  { %v7245_v26 = vand.u32 4294901760, %v11892_v29  ;;  %7177 = vmatpush.msra.mxu2 %v11856_v35 }
 0x379   :  { %v6288_v6 = vadd.f32 %v6287_v63, %v6187_v24  ;;  %v7227_v13 = vand.u32 4294901760, %v11874_v2  ;;  %v7210_v25 = vsub.f32 %v11862_v3, %v7209_v1  ;;  %v7234_v10 = vsub.f32 %v11877_v30, %v7233_v50  ;;  %v7150_v24 = vld [vmem:[%s12127_s8 + $0x20] sm:$0xff] }
 0x37a   :  { %v7223_v63 = vand.u32 4294901760, %v7222_v31  ;;  %v7246_v21 = vsub.f32 %v11892_v29, %v7245_v26  ;;  %7179 = vmatpush.msra.mxu2 %v11871_v56 }
 0x37b   :  { %v7228_v58 = vsub.f32 %v11874_v2, %v7227_v13  ;;  %v7211_v42 = vand.u32 4294901760, %v7210_v25  ;;  %v7235_v18 = vand.u32 4294901760, %v7234_v10 }
 0x37c   :  { %v7247_v25 = vand.u32 4294901760, %v7246_v21 }
 0x37d   :  { %7212 = vmatpush.msra.mxu3 %v7211_v42 }
 0x37f   :  { %v6341_v7 = vpop.f32.mrf.mxu2  ;;  %7218 = vmatpush.msra.mxu3 %v7217_v52 }
 0x380   :  { %v6342_v60 = vadd.f32 %v6341_v7, %v6288_v6  ;;  %v11928_v7 = vand.u32 4294901760, %v7154_v51  ;;  %v11931_v6 = vand.u32 4294901760, %v7153_v22 }
 0x381   :  { %7224 = vmatpush.msra.mxu3 %v7223_v63 }
 0x382   :  { %v6380_v46 = vpop.f32.mrf.mxu3  ;;  %7181 = vmatpush.msra.mxu2 %v11928_v7 }
 0x383   :  { %v6381_v33 = vadd.f32 %v6380_v46, %v6342_v60  ;;  %v11933_v60 = vand.u32 4294901760, %v7152_v55 }
 0x384   :  { %7183 = vmatpush.msra.mxu2 %v11931_v6 }
 0x386   :  { %7185 = vmatpush.msra.mxu2 %v11933_v60 }
 0x390   :  { %v6486_v45 = vpop.f32.mrf.mxu1 }
 0x398   :  { %v6523_v53 = vpop.f32.mrf.mxu2 }
 0x39a   :  { %v6449_v44 = vpop.f32.mrf.mxu0 }
 0x39b   :  { %v6450_v62 = vadd.f32 %v6449_v44, %v6381_v33  ;;  %v6604_v5 = vpop.f32.mrf.mxu3  ;;  %v7229_v44 = vand.u32 4294901760, %v7228_v58  ;;  %v7240_v33 = vsub.f32 %v11880_v0, %v7239_v23 }
 0x39d   :  { %v6487_v40 = vadd.f32 %v6486_v45, %v6450_v62  ;;  %v11938_v62 = vand.u32 4294901760, %v7151_v32  ;;  %v7149_v45 = vld [vmem:[%s12127_s8 + $0x18] sm:$0xff]  ;;  %7230 = vmatpush.msra.mxu3 %v7229_v44 }
 0x39e   :  { %v11969_v48 = vand.u32 4294901760, %v7149_v45 }
 0x39f   :  { %v6524_v38 = vadd.f32 %v6523_v53, %v6487_v40  ;;  %v11944_v40 = vsub.f32 %v7154_v51, %v11928_v7  ;;  %v11947_v53 = vsub.f32 %v7153_v22, %v11931_v6  ;;  %v11967_v37 = vsub.f32 %v7151_v32, %v11938_v62  ;;  %7236 = vmatpush.msra.mxu3 %v7235_v18 }
 0x3a0   :  { %7187 = vmatpush.msra.mxu2 %v11938_v62 }
 0x3a1   :  { %v6605_v4 = vadd.f32 %v6604_v5, %v6524_v38  ;;  %v11951_v38 = vsub.f32 %v7152_v55, %v11933_v60  ;;  %v11953_v5 = vand.u32 4294901760, %v7150_v24  ;;  %v7257_v14 = vand.u32 4294901760, %v11947_v53 }
 0x3a2   :  { %v7269_v31 = vand.u32 4294901760, %v11967_v37 }
 0x3a3   :  { %v7258_v34 = vsub.f32 %v11947_v53, %v7257_v14  ;;  %7189 = vmatpush.msra.mxu2 %v11953_v5 }
 0x3a4   :  { %v7270_v10 = vsub.f32 %v11967_v37, %v7269_v31 }
 0x3a5   :  { %7191 = vmatpush.msra.mxu2 %v11969_v48 }
 0x3aa   :  { %v6685_v19 = vpop.f32.mrf.mxu1 }
 0x3b2   :  { %v6650_v9 = vpop.f32.mrf.mxu0  ;;  %v6742_v59 = vpop.f32.mrf.mxu2 }
 0x3b3   :  { %v6651_v41 = vadd.f32 %v6650_v9, %v6605_v4  ;;  %v7148_v4 = vld [vmem:[%s12127_s8 + $0x10] sm:$0xff]  ;;  %v7251_v9 = vand.u32 4294901760, %v11944_v40 }
 0x3b4   :  { %v6775_v57 = vpop.f32.mrf.mxu3  ;;  %v11973_v17 = vand.u32 4294901760, %v7148_v4 }
 0x3b5   :  { %v6686_v15 = vadd.f32 %v6685_v19, %v6651_v41  ;;  %v7241_v19 = vand.u32 4294901760, %v7240_v33 }
 0x3b6   :  { %v11996_v51 = vsub.f32 %v7148_v4, %v11973_v17  ;;  %7193 = vmatpush.msra.mxu2 %v11973_v17 }
 0x3b7   :  { %v6743_v11 = vadd.f32 %v6742_v59, %v6686_v15  ;;  %v7252_v15 = vsub.f32 %v11944_v40, %v7251_v9  ;;  %v7263_v59 = vand.u32 4294901760, %v11951_v38  ;;  %7242 = vmatpush.msra.mxu3 %v7241_v19 }
 0x3b8   :  { %v7287_v33 = vand.u32 4294901760, %v11996_v51 }
 0x3b9   :  { %v6776_v27 = vadd.f32 %v6775_v57, %v6743_v11  ;;  %v11981_v11 = vsub.f32 %v7150_v24, %v11953_v5  ;;  %v7147_v57 = vld [vmem:[%s12127_s8 + $0x8] sm:$0xff]  ;;  %v7253_v22 = vand.u32 4294901760, %v7252_v15  ;;  %v7264_v55 = vsub.f32 %v11951_v38, %v7263_v59  ;;  %7248 = vmatpush.msra.mxu3 %v7247_v25 }
 0x3ba   :  { %v12004_v52 = vand.u32 4294901760, %v7147_v57 }
 0x3bb   :  { %v6782_v8 = vadd.f32 %v7601_v12, %v6776_v27  ;;  %v11993_v27 = vsub.f32 %v7149_v45, %v11969_v48  ;;  %v7275_v42 = vand.u32 4294901760, %v11981_v11  ;;  %7254 = vmatpush.msra.mxu3 %v7253_v22  ;;  %v7271_v45 = vand.u32 4294901760, %v7270_v10 }
 0x3bc   :  { %v12013_v63 = vsub.f32 %v7147_v57, %v12004_v52  ;;  %7195 = vmatpush.msra.mxu2 %v12004_v52 }
 0x3bd   :  { %v6783_v46 = vmax.f32 %v6782_v8, 0.0  ;;  %v7259_v8 = vand.u32 4294901760, %v7258_v34  ;;  %v7281_v24 = vand.u32 4294901760, %v11993_v27  ;;  %v7276_v44 = vsub.f32 %v11981_v11, %v7275_v42 }
 0x3be   :  { %v7293_v18 = vand.u32 4294901760, %v12013_v63 }
 0x3bf   :  { %v11958_v36 = vand.u32 4294901760, %v6783_v46  ;;  %7260 = vmatpush.msra.mxu3 %v7259_v8  ;;  %v7282_v4 = vsub.f32 %v11993_v27, %v7281_v24  ;;  %v7277_v21 = vand.u32 4294901760, %v7276_v44 }
 0x3c0   :  { %v7294_v15 = vsub.f32 %v12013_v63, %v7293_v18 }
 0x3c1   :  { %v6837_v41 = vsub.f32 %v6783_v46, %v11958_v36  ;;  %6942 = vmatmul.f32.vlgmr.msrb.gmra.mxu1 %v11958_v36  ;;  %v7265_v46 = vand.u32 4294901760, %v7264_v55  ;;  %v7283_v19 = vand.u32 4294901760, %v7282_v4 }
 0x3c2   :  { %7363 = vmatpush.msrb.mxu1 %v11837_v61  ;;  %v7295_v57 = vand.u32 4294901760, %v7294_v15 }
 0x3c3   :  { %v6838_v12 = vand.u32 4294901760, %v6837_v41  ;;  %6996 = vmatmul.f32.vlgmr.msrb.gmra.mxu2 %v6837_v41  ;;  %7266 = vmatpush.msra.mxu3 %v7265_v46 }
 0x3c4   :  { %7365 = vmatpush.msrb.mxu1 %v11839_v20 }
 0x3c5   :  { %v6839_v58 = vsub.f32 %v6837_v41, %v6838_v12  ;;  %7035 = vmatmul.f32.vlgmr.msrb.gmra.mxu3 %v6838_v12  ;;  %v7288_v41 = vsub.f32 %v11996_v51, %v7287_v33 }
 0x3c6   :  { %7367 = vmatpush.msrb.mxu1 %v11841_v16  ;;  %7272 = vmatpush.msra.mxu3 %v7271_v45 }
 0x3c7   :  { %v6840_v32 = vand.u32 4294901760, %v6839_v58  ;;  %v7289_v12 = vand.u32 4294901760, %v7288_v41 }
 0x3c8   :  { %7369 = vmatpush.msrb.mxu1 %v11852_v39  ;;  %7278 = vmatpush.msra.mxu3 %v7277_v21 }
 0x3c9   :  { %6841 = vmatmul.f32.vlgmr.msrb.gmra.mxu0 %v6840_v32  ;;  %7141 = vmatmul.f32.vlgmr.msra.gmra.mxu1 %v11958_v36 }
 0x3ca   :  { %7310 = vmatpush.msrb.mxu0 %v11862_v3  ;;  %7371 = vmatpush.msrb.mxu1 %v11854_v43 }
 0x3cb   :  { %7284 = vmatpush.msra.mxu3 %v7283_v19 }
 0x3cc   :  { %7313 = vmatpush.msrb.mxu0 %v11865_v47  ;;  %7373 = vmatpush.msrb.mxu1 %v11856_v35 }
 0x3cd   :  { %7290 = vmatpush.msra.mxu3 %v7289_v12 }
 0x3ce   :  { %7316 = vmatpush.msrb.mxu0 %v11868_v54  ;;  %7375 = vmatpush.msrb.mxu1 %v11871_v56 }
 0x3cf   :  { %7296 = vmatpush.msra.mxu3 %v7295_v57 }
 0x3d0   :  { %7319 = vmatpush.msrb.mxu0 %v11874_v2  ;;  %7377 = vmatpush.msrb.mxu1 %v11928_v7 }
 0x3d1   :  { %7104 = vmatmul.f32.vlgmr.msra.gmra.mxu0 %v11958_v36  ;;  %v7146_v36 = vld [vmem:[%s12127_s8] sm:$0xff] }
 0x3d2   :  { %7322 = vmatpush.msrb.mxu0 %v11877_v30  ;;  %7379 = vmatpush.msrb.mxu1 %v11931_v6  ;;  %v7196_v25 = vand.u32 4294901760, %v7146_v36 }
 0x3d4   :  { %7325 = vmatpush.msrb.mxu0 %v11880_v0  ;;  %7381 = vmatpush.msrb.mxu1 %v11933_v60  ;;  %v7298_v34 = vsub.f32 %v7146_v36, %v7196_v25 }
 0x3d5   :  { %7197 = vmatpush.msra.mxu2 %v7196_v25 }
 0x3d6   :  { %7328 = vmatpush.msrb.mxu0 %v11892_v29  ;;  %7383 = vmatpush.msrb.mxu1 %v11938_v62  ;;  %v7299_v58 = vand.u32 4294901760, %v7298_v34 }
 0x3d7   :  { %7404 = vmatpush.msrb.mxu2 %v7209_v1 }
 0x3d8   :  { %7331 = vmatpush.msrb.mxu0 %v11944_v40  ;;  %7385 = vmatpush.msrb.mxu1 %v11953_v5  ;;  %v7300_v22 = vsub.f32 %v7298_v34, %v7299_v58 }
 0x3d9   :  { %7408 = vmatpush.msrb.mxu2 %v7215_v49 }
 0x3da   :  { %7334 = vmatpush.msrb.mxu0 %v11947_v53  ;;  %7387 = vmatpush.msrb.mxu1 %v11969_v48  ;;  %v7301_v55 = vand.u32 4294901760, %v7300_v22 }
 0x3db   :  { %7412 = vmatpush.msrb.mxu2 %v7221_v28 }
 0x3dc   :  { %7337 = vmatpush.msrb.mxu0 %v11951_v38  ;;  %7389 = vmatpush.msrb.mxu1 %v11973_v17 }
 0x3dd   :  { %7416 = vmatpush.msrb.mxu2 %v7227_v13  ;;  %7302 = vmatpush.msra.mxu3 %v7301_v55 }
 0x3de   :  { %7340 = vmatpush.msrb.mxu0 %v11967_v37  ;;  %7391 = vmatpush.msrb.mxu1 %v12004_v52 }
 0x3df   :  { %7471 = vmatpush.msrb.mxu3 %v11837_v61  ;;  %7420 = vmatpush.msrb.mxu2 %v7233_v50  ;;  %v7602_v61 = vld [vmem:[%s12126_s7] ss:$0 sm:$0xff] }
 0x3e0   :  { %7343 = vmatpush.msrb.mxu0 %v11981_v11  ;;  %7393 = vmatpush.msrb.mxu1 %v7196_v25 }
 0x3e1   :  { %7473 = vmatpush.msrb.mxu3 %v11839_v20  ;;  %7424 = vmatpush.msrb.mxu2 %v7239_v23  ;;  %v7603_v23 = vld [vmem:[%s12128_s9] ss:$0 sm:$0xff] }
 0x3e2   :  { %7346 = vmatpush.msrb.mxu0 %v11993_v27 }
 0x3e3   :  { %7475 = vmatpush.msrb.mxu3 %v11841_v16  ;;  %7428 = vmatpush.msrb.mxu2 %v7245_v26 }
 0x3e4   :  { %7349 = vmatpush.msrb.mxu0 %v11996_v51 }
 0x3e5   :  { %7477 = vmatpush.msrb.mxu3 %v11852_v39  ;;  %7432 = vmatpush.msrb.mxu2 %v7251_v9 }
 0x3e6   :  { %7352 = vmatpush.msrb.mxu0 %v12013_v63 }
 0x3e7   :  { %7479 = vmatpush.msrb.mxu3 %v11854_v43  ;;  %7436 = vmatpush.msrb.mxu2 %v7257_v14 }
 0x3e8   :  { %7355 = vmatpush.msrb.mxu0 %v7298_v34 }
 0x3e9   :  { %7481 = vmatpush.msrb.mxu3 %v11856_v35  ;;  %7440 = vmatpush.msrb.mxu2 %v7263_v59 }
 0x3eb   :  { %7483 = vmatpush.msrb.mxu3 %v11871_v56  ;;  %7444 = vmatpush.msrb.mxu2 %v7269_v31 }
 0x3ed   :  { %7485 = vmatpush.msrb.mxu3 %v11928_v7  ;;  %7448 = vmatpush.msrb.mxu2 %v7275_v42 }
 0x3ef   :  { %7487 = vmatpush.msrb.mxu3 %v11931_v6  ;;  %7452 = vmatpush.msrb.mxu2 %v7281_v24 }
 0x3f1   :  { %7489 = vmatpush.msrb.mxu3 %v11933_v60  ;;  %7456 = vmatpush.msrb.mxu2 %v7287_v33 }
 0x3f3   :  { %7491 = vmatpush.msrb.mxu3 %v11938_v62  ;;  %7460 = vmatpush.msrb.mxu2 %v7293_v18 }
 0x3f5   :  { %7493 = vmatpush.msrb.mxu3 %v11953_v5  ;;  %7464 = vmatpush.msrb.mxu2 %v7299_v58 }
 0x3f7   :  { %7495 = vmatpush.msrb.mxu3 %v11969_v48 }
 0x3f9   :  { %7497 = vmatpush.msrb.mxu3 %v11973_v17 }
 0x3fb   :  { %7499 = vmatpush.msrb.mxu3 %v12004_v52 }
 0x3fd   :  { %7501 = vmatpush.msrb.mxu3 %v7196_v25 }
 0x43e   :  { %v6943_v20 = vpop.f32.mrf.mxu1 }
 0x446   :  { %v6842_v16 = vpop.f32.mrf.mxu0  ;;  %v6997_v35 = vpop.f32.mrf.mxu2 }
 0x447   :  { %v6843_v39 = vadd.f32 %v7602_v61, %v6842_v16  ;;  %v7142_v30 = vpop.f32.mrf.mxu1 }
 0x448   :  { %v7036_v47 = vpop.f32.mrf.mxu3 }
 0x449   :  { %v6944_v43 = vadd.f32 %v6943_v20, %v6843_v39 }
 0x44b   :  { %v6998_v3 = vadd.f32 %v6997_v35, %v6944_v43 }
 0x44d   :  { %v7037_v54 = vadd.f32 %v7036_v47, %v6998_v3 }
 0x44e   :  { %v7105_v56 = vpop.f32.mrf.mxu0 }
 0x44f   :  { %v7106_v2 = vadd.f32 %v7105_v56, %v7037_v54 }
 0x451   :  { %v7143_v0 = vadd.f32 %v7142_v30, %v7106_v2 }
 0x453   :  { %v7145_v1 = vmax.f32 %v7143_v0, 0.0 }
 0x455   :  { %v7198_v49 = vand.u32 4294901760, %v7145_v1 }
 0x457   :  { %v7199_v28 = vsub.f32 %v7145_v1, %v7198_v49  ;;  %7304 = vmatmul.f32.vlgmr.msra.gmra.mxu3 %v7198_v49 }
 0x459   :  { %v7200_v13 = vand.u32 4294901760, %v7199_v28  ;;  %7358 = vmatmul.f32.vlgmr.msrb.gmra.mxu0 %v7199_v28 }
 0x45b   :  { %v7201_v50 = vsub.f32 %v7199_v28, %v7200_v13  ;;  %7397 = vmatmul.f32.vlgmr.msrb.gmra.mxu1 %v7200_v13 }
 0x45d   :  { %v7202_v29 = vand.u32 4294901760, %v7201_v50 }
 0x45f   :  { %7203 = vmatmul.f32.vlgmr.msra.gmra.mxu2 %v7202_v29  ;;  %7503 = vmatmul.f32.vlgmr.msrb.gmra.mxu3 %v7198_v49 }
 0x467   :  { %7466 = vmatmul.f32.vlgmr.msrb.gmra.mxu2 %v7198_v49 }
 0x4d6   :  { %v7359_v62 = vpop.f32.mrf.mxu0 }
 0x4d8   :  { %v7398_v53 = vpop.f32.mrf.mxu1 }
 0x4da   :  { %v7305_v26 = vpop.f32.mrf.mxu3 }
 0x4e2   :  { %v7204_v7 = vpop.f32.mrf.mxu2  ;;  %v7504_v14 = vpop.f32.mrf.mxu3 }
 0x4e3   :  { %v7205_v6 = vadd.f32 %v7603_v23, %v7204_v7 }
 0x4e5   :  { %v7306_v60 = vadd.f32 %v7305_v26, %v7205_v6 }
 0x4e7   :  { %v7360_v40 = vadd.f32 %v7359_v62, %v7306_v60 }
 0x4e9   :  { %v7399_v38 = vadd.f32 %v7398_v53, %v7360_v40 }
 0x4ea   :  { %v7467_v5 = vpop.f32.mrf.mxu2 }
 0x4eb   :  { %v7468_v9 = vadd.f32 %v7467_v5, %v7399_v38 }
 0x4ed   :  { %v7505_v37 = vadd.f32 %v7504_v14, %v7468_v9 }
 0x4ef   :  { %7508 = vst.msk [vmem:[#allocation2] sm:$0x3f] %vm7507_vm5, %v7505_v37 }
 0x4f0   :  { %7519 = dma.vmem_to_hbm [thread:$0]  %s7515_s22, 128, %s7517_s25, [#allocation3]  }
 0x4f1   :  { %7628 = dma.done.wait [#allocation3], 128  }
 0x4f2   :  { %7629 = vsyncadd [#allocation3], 4294967168 }
 0x4f3   :  { %7524 = vsyncpa [#allocation3], 1 }

</bundles_post_ra>
